<compile_context>
chip_gen: v7x
topology: tpu7x:2x2x1
jax: 0.10.0
libtpu: 0.0.40
codegen_flags: <defaults>
</compile_context>

<pallas_src>
import jax
import jax.numpy as jnp
from jax.experimental import pallas as pl
from jax.experimental.pallas import tpu as pltpu

BN_EPS = 1e-5

# One tile size for every chip: per-step VMEM footprint at tm=2048 is only a
# few MiB (double-buffered pat/weight/y tiles), well under v5e/v6e/v7x VMEM.
_TM_TARGET = 2048
_VMEM_LIMIT = 64 * 1024 * 1024        # <= physical VMEM on all current chips

_PARAMS = pltpu.CompilerParams(
    dimension_semantics=("parallel", "parallel"),
    vmem_limit_bytes=_VMEM_LIMIT)


# ------------------------------ small helpers ------------------------------

def _round_up(x, m):
    return (x + m - 1) // m * m


def _pad_last(x, mult=128):
    pad = (-x.shape[-1]) % mult
    if pad:
        x = jnp.pad(x, [(0, 0)] * (x.ndim - 1) + [(0, pad)])
    return x


def _tiles(m, target=_TM_TARGET):
    """Pick (padded_M, tile) with tile | padded_M and sublane alignment."""
    if m <= target:
        mp = _round_up(m, 8)
        return mp, mp
    mp = _round_up(m, target)
    return mp, target


# ----------------------------- Pallas kernels ------------------------------

def _matmul_stats_kernel(p_ref, w_ref, y_ref, st_ref):
    """bf16 x bf16 -> f32 MXU matmul + per-tile channel sum / sum-of-squares.

    The weight tile is lane-padded to a 128 multiple so the MXU shape is the
    known-good full width; only the first C_out columns are kept, so the y
    writeback (bf16) and the stats are exactly C_out wide.  Stats are taken
    from the f32 accumulator before the bf16 cast.  Rows 2..7 of st_ref are
    intentionally left uninitialized (never read by the reduction).
    """
    cout = y_ref.shape[-1]
    y = jnp.dot(p_ref[...], w_ref[...],
                preferred_element_type=jnp.float32)[:, :cout]
    y_ref[...] = y.astype(y_ref.dtype)
    st_ref[0:1, :] = jnp.sum(y, axis=0, keepdims=True)
    st_ref[1:2, :] = jnp.sum(y * y, axis=0, keepdims=True)


def _matmul_tanh_kernel(p_ref, w_ref, o_ref):
    """Final-layer matmul + tanh; stores only the real C_out columns (bf16)."""
    cout = o_ref.shape[-1]
    y = jnp.dot(p_ref[...], w_ref[...],
                preferred_element_type=jnp.float32)[:, :cout]
    o_ref[...] = jnp.tanh(y).astype(o_ref.dtype)


# --------------------- phase decomposition (XLA glue) ----------------------

# Sub-pixel taps for ConvTranspose2d(k=4, stride=2, pad=1):
#   output index oy = 2*m + py reads input row m + dy with kernel row kh.
_TAPS_S2 = (((1, 0), (3, -1)),    # py = 0 (even outputs): (kh, dy)
            ((0, 1), (2, 0)))     # py = 1 (odd outputs)


def _phases_stride2(x_nhwc, w_pt):
    """ConvTranspose2d(k=4, s=2, p=1) -> 4 phase matmuls with K = 4*C_in."""
    B, H, W, C = x_nhwc.shape
    cout = w_pt.shape[1]
    xp = jnp.pad(x_nhwc, ((0, 0), (1, 1), (1, 1), (0, 0)))
    patches, weights = [], []
    for py in (0, 1):
        for px in (0, 1):
            feats, wrows = [], []
            for kh, dy in _TAPS_S2[py]:
                for kw, dx in _TAPS_S2[px]:
                    feats.append(xp[:, dy + 1:dy + 1 + H, dx + 1:dx + 1 + W, :])
                    wrows.append(w_pt[:, :, kh, kw])            # (C_in, C_out)
            patches.append(jnp.stack(feats, axis=3).reshape(B * H * W, 4 * C))
            weights.append(jnp.concatenate(wrows, axis=0))      # (4*C_in, C_out)
    pat = jnp.stack(patches, axis=0)                            # (4, M, 4*C_in)
    wm = _pad_last(jnp.stack(weights, axis=0))                  # (4, 4*C_in, Npad)

    def assemble(y):                                            # (4, M, C_out)
        y = y.reshape(2, 2, B, H, W, cout)
        y = jnp.transpose(y, (2, 3, 0, 4, 1, 5))
        return y.reshape(B, 2 * H, 2 * W, cout)

    return pat, wm, assemble, cout


def _phases_1x1(x_nhwc, w_pt):
    """ConvTranspose2d(k=4, s=1, p=0) on a 1x1 input: 16 per-pixel matmuls."""
    B, _, _, C = x_nhwc.shape
    cout = w_pt.shape[1]
    xflat = x_nhwc.reshape(B, C)
    pat = jnp.broadcast_to(xflat[None], (16, B, C))             # (16, B, C_in)
    wm = _pad_last(jnp.transpose(w_pt, (2, 3, 0, 1)).reshape(16, C, cout))

    def assemble(y):                                            # (16, B, C_out)
        y = y.reshape(4, 4, B, cout)
        return jnp.transpose(y, (2, 0, 1, 3))                   # (B, 4, 4, C_out)

    return pat, wm, assemble, cout


def _prep_operands(patches, wmats):
    nph, m, k = patches.shape
    mp, tm = _tiles(m)
    if mp != m:
        patches = jnp.pad(patches, ((0, 0), (0, mp - m), (0, 0)))
    return (patches.astype(jnp.bfloat16), wmats.astype(jnp.bfloat16),
            nph, m, mp, tm, k)


# ------------------------------ layer wrappers ------------------------------

def convt_bn_layer(x_nhwc, w_pt, gamma, beta, phase_fn):
    """ConvTranspose2d(bias=False) + BatchNorm2d(training mode) statistics.

    Returns the *pre-activation* conv output in NHWC (bf16) plus the folded
    per-channel (scale, shift).  The affine + ReLU is applied by the consumer
    (`_bn_relu`), where XLA fuses it into the next layer's patch gather — no
    separate elementwise HBM pass / pallas_call.
    """
    patches, wmats, assemble, cout = phase_fn(x_nhwc, w_pt)
    pat, wm, nph, m, mp, tm, k = _prep_operands(patches, wmats)
    nmt = mp // tm
    npad = wm.shape[-1]

    y, stats = pl.pallas_call(
        _matmul_stats_kernel,
        grid=(nph, nmt),
        in_specs=[pl.BlockSpec((None, tm, k), lambda p, i: (p, i, 0)),
                  pl.BlockSpec((None, k, npad), lambda p, i: (p, 0, 0))],
        out_specs=[pl.BlockSpec((None, tm, cout), lambda p, i: (p, i, 0)),
                   pl.BlockSpec((None, 8, cout), lambda p, i: (p, i, 0))],
        out_shape=[jax.ShapeDtypeStruct((nph, mp, cout), jnp.bfloat16),
                   jax.ShapeDtypeStruct((nph, nmt * 8, cout), jnp.float32)],
        compiler_params=_PARAMS,
    )(pat, wm)

    # Combine per-tile partials over ALL B*H_out*W_out pixels (biased
    # variance; zero-padded rows contribute nothing) and fold gamma/beta.
    st = stats.reshape(nph, nmt, 8, cout)
    count = jnp.float32(nph * m)
    mean = jnp.sum(st[:, :, 0, :], axis=(0, 1)) / count
    var = jnp.maximum(
        jnp.sum(st[:, :, 1, :], axis=(0, 1)) / count - mean * mean, 0.0)
    scale = gamma * jax.lax.rsqrt(var + BN_EPS)
    shift = beta - mean * scale

    return assemble(y[:, :m, :]), scale, shift


def _bn_relu(y_nhwc, scale, shift):
    # Folded BatchNorm affine + ReLU, applied at the consumer so XLA fuses it
    # with the pad/slice/stack building the next layer's phase patches.
    return jnp.maximum(y_nhwc.astype(jnp.float32) * scale + shift, 0.0)


def convt_tanh_layer(x_nhwc, w_pt):
    """Final ConvTranspose2d(bias=False, k=4, s=2, p=1) + Tanh."""
    patches, wmats, assemble, cout = _phases_stride2(x_nhwc, w_pt)
    pat, wm, nph, m, mp, tm, k = _prep_operands(patches, wmats)
    nmt = mp // tm
    npad = wm.shape[-1]
    out = pl.pallas_call(
        _matmul_tanh_kernel,
        grid=(nph, nmt),
        in_specs=[pl.BlockSpec((None, tm, k), lambda p, i: (p, i, 0)),
                  pl.BlockSpec((None, k, npad), lambda p, i: (p, 0, 0))],
        out_specs=pl.BlockSpec((None, tm, cout), lambda p, i: (p, i, 0)),
        out_shape=jax.ShapeDtypeStruct((nph, mp, cout), jnp.bfloat16),
        compiler_params=_PARAMS,
    )(pat, wm)
    return assemble(out[:, :m, :])


# ------------------------------- the model ---------------------------------

class DCGeneratorPallas:
    """Mirrors DCGenerator: 5 ConvTranspose2d(k=4) layers, BN+ReLU x4, Tanh."""

    def __init__(self, latent_size, num_of_gen_filter, img_channel, key):
        ngf = num_of_gen_filter
        dims = [(latent_size, ngf * 8), (ngf * 8, ngf * 4), (ngf * 4, ngf * 2),
                (ngf * 2, ngf), (ngf, img_channel)]
        keys = jax.random.split(key, len(dims))
        # ConvTranspose2d weights, PyTorch layout (C_in, C_out, 4, 4).
        self.weights = [0.02 * jax.random.normal(kk, (ci, co, 4, 4), jnp.float32)
                        for kk, (ci, co) in zip(keys, dims)]
        # BatchNorm2d affine params, PyTorch default init (gamma=1, beta=0).
        self.gammas = [jnp.ones((co,), jnp.float32) for (_, co) in dims[:4]]
        self.betas = [jnp.zeros((co,), jnp.float32) for (_, co) in dims[:4]]
        self.latent_size = latent_size

    def __call__(self, latent_code):
        # _fix_latent_code_size: view(-1, latent_size, 1, 1) (NCHW) -> NHWC
        x = latent_code.reshape(-1, self.latent_size, 1, 1)
        x = jnp.transpose(x, (0, 2, 3, 1))                        # (B,1,1,latent)
        y, sc, sh = convt_bn_layer(x, self.weights[0], self.gammas[0],
                                   self.betas[0], _phases_1x1)    # (B,4,4,8ngf)
        for i in (1, 2, 3):                                       # 8/16/32 spatial
            y, sc, sh = convt_bn_layer(_bn_relu(y, sc, sh), self.weights[i],
                                       self.gammas[i], self.betas[i],
                                       _phases_stride2)
        x = convt_tanh_layer(_bn_relu(y, sc, sh), self.weights[4])  # (B,64,64,C)
        return jnp.transpose(x, (0, 3, 1, 2)).astype(jnp.float32)   # -> NCHW


if __name__ == "__main__":
    key = jax.random.PRNGKey(0)
    pkey, xkey = jax.random.split(key)

    B, latent_size, ngf, img_channel = 2, 32, 8, 3
    model = DCGeneratorPallas(latent_size, ngf, img_channel, pkey)
    latent = jax.random.normal(xkey, (B, latent_size), jnp.float32)

    out = jax.jit(model.__call__)(latent)
    out = jax.block_until_ready(out)

    assert out.shape == (B, img_channel, 64, 64), out.shape
    assert out.dtype == jnp.float32
    assert bool(jnp.all(jnp.isfinite(out)))
    assert bool(jnp.max(jnp.abs(out)) <= 1.0)   # tanh range
    print("KERNEL_OK")
</pallas_src>

<mosaic_0001>
module attributes {stable_mosaic.version = 11 : i64} {
  func.func @_matmul_stats_kernel(%arg0: i32, %arg1: i32, %arg2: memref<1x8x32xbf16, #tpu.memory_space<vmem>>, %arg3: memref<1x32x128xbf16, #tpu.memory_space<vmem>>, %arg4: memref<1x8x64xbf16, #tpu.memory_space<vmem>>, %arg5: memref<1x8x64xf32, #tpu.memory_space<vmem>>) attributes {dimension_semantics = [#tpu.dimension_semantics<parallel>, #tpu.dimension_semantics<parallel>], iteration_bounds = array<i64: 16, 1>, scalar_prefetch = 0 : i64, scratch_operands = 0 : i64, tpu.core_type = #tpu.core_type<tc>, window_params = [{transform_indices = @transform_0, window_bounds = array<i64: 1, 8, 32>}, {transform_indices = @transform_1, window_bounds = array<i64: 1, 32, 128>}, {transform_indices = @transform_2, window_bounds = array<i64: 1, 8, 64>}, {transform_indices = @transform_3, window_bounds = array<i64: 1, 8, 64>}]} {
    %c0 = arith.constant 0 : index
    %c0_0 = arith.constant 0 : index
    %c0_1 = arith.constant 0 : index
    %0 = vector.load %arg2[%c0, %c0_0, %c0_1] : memref<1x8x32xbf16, #tpu.memory_space<vmem>>, vector<1x8x32xbf16>
    %1 = vector.shape_cast %0 : vector<1x8x32xbf16> to vector<8x32xbf16>
    %c0_2 = arith.constant 0 : index
    %c0_3 = arith.constant 0 : index
    %c0_4 = arith.constant 0 : index
    %2 = vector.load %arg3[%c0_2, %c0_3, %c0_4] : memref<1x32x128xbf16, #tpu.memory_space<vmem>>, vector<1x32x128xbf16>
    %3 = vector.shape_cast %2 : vector<1x32x128xbf16> to vector<32x128xbf16>
    %cst = arith.constant dense<0.000000e+00> : vector<8x128xf32>
    %4 = tpu.matmul %1, %3, %cst {dimension_numbers = #tpu.dot_dimension_numbers<[1], [0], [0], [1], [0, 0, 1, 1], [], []>} : vector<8x32xbf16>, vector<32x128xbf16>, vector<8x128xf32> -> vector<8x128xf32>
    %5 = vector.extract_strided_slice %4 {offsets = [0, 0], sizes = [8, 64], strides = [1, 1]} : vector<8x128xf32> to vector<8x64xf32>
    %6 = arith.truncf %5 : vector<8x64xf32> to vector<8x64xbf16>
    %c0_5 = arith.constant 0 : index
    %c0_6 = arith.constant 0 : index
    %c0_7 = arith.constant 0 : index
    %7 = vector.load %arg4[%c0_5, %c0_6, %c0_7] : memref<1x8x64xbf16, #tpu.memory_space<vmem>>, vector<1x8x64xbf16>
    %8 = vector.shape_cast %7 : vector<1x8x64xbf16> to vector<8x64xbf16>
    %9 = vector.shape_cast %6 : vector<8x64xbf16> to vector<1x8x64xbf16>
    tpu.vector_store %arg4[%c0_5, %c0_6, %c0_7], %9 {strides = array<i32>} : memref<1x8x64xbf16, #tpu.memory_space<vmem>>, vector<1x8x64xbf16>,
    %cst_8 = arith.constant dense<0.000000e+00> : vector<64xf32>
    %10 = vector.multi_reduction <add>, %5, %cst_8 [0] : vector<8x64xf32> to vector<64xf32>
    %11 = vector.shape_cast %10 : vector<64xf32> to vector<1x64xf32>
    %c0_9 = arith.constant 0 : index
    %c0_10 = arith.constant 0 : index
    %c0_11 = arith.constant 0 : index
    %12 = vector.load %arg5[%c0_9, %c0_10, %c0_11] : memref<1x8x64xf32, #tpu.memory_space<vmem>>, vector<1x1x64xf32>
    %13 = vector.shape_cast %12 : vector<1x1x64xf32> to vector<1x64xf32>
    %14 = vector.shape_cast %11 : vector<1x64xf32> to vector<1x1x64xf32>
    tpu.vector_store %arg5[%c0_9, %c0_10, %c0_11], %14 {strides = array<i32>} : memref<1x8x64xf32, #tpu.memory_space<vmem>>, vector<1x1x64xf32>,
    %15 = arith.mulf %5, %5 : vector<8x64xf32>
    %cst_12 = arith.constant dense<0.000000e+00> : vector<64xf32>
    %16 = vector.multi_reduction <add>, %15, %cst_12 [0] : vector<8x64xf32> to vector<64xf32>
    %17 = vector.shape_cast %16 : vector<64xf32> to vector<1x64xf32>
    %c0_13 = arith.constant 0 : index
    %c1 = arith.constant 1 : index
    %c0_14 = arith.constant 0 : index
    %18 = vector.load %arg5[%c0_13, %c1, %c0_14] : memref<1x8x64xf32, #tpu.memory_space<vmem>>, vector<1x1x64xf32>
    %19 = vector.shape_cast %18 : vector<1x1x64xf32> to vector<1x64xf32>
    %20 = vector.shape_cast %17 : vector<1x64xf32> to vector<1x1x64xf32>
    tpu.vector_store %arg5[%c0_13, %c1, %c0_14], %20 {strides = array<i32>} : memref<1x8x64xf32, #tpu.memory_space<vmem>>, vector<1x1x64xf32>,
    return
  }
  func.func @transform_0(%arg0: i32, %arg1: i32) -> (i32, i32, i32) {
    %c0_i32 = arith.constant 0 : i32
    %c0_i32_0 = arith.constant 0 : i32
    return %arg0, %arg1, %c0_i32 : i32, i32, i32
  }
  func.func @transform_1(%arg0: i32, %arg1: i32) -> (i32, i32, i32) {
    %c0_i32 = arith.constant 0 : i32
    %c0_i32_0 = arith.constant 0 : i32
    %c0_i32_1 = arith.constant 0 : i32
    return %arg0, %c0_i32, %c0_i32_0 : i32, i32, i32
  }
  func.func @transform_2(%arg0: i32, %arg1: i32) -> (i32, i32, i32) {
    %c0_i32 = arith.constant 0 : i32
    %c0_i32_0 = arith.constant 0 : i32
    return %arg0, %arg1, %c0_i32 : i32, i32, i32
  }
  func.func @transform_3(%arg0: i32, %arg1: i32) -> (i32, i32, i32) {
    %c0_i32 = arith.constant 0 : i32
    %c0_i32_0 = arith.constant 0 : i32
    return %arg0, %arg1, %c0_i32 : i32, i32, i32
  }
}

module attributes {stable_mosaic.version = 11 : i64} {
  func.func @_matmul_stats_kernel(%arg0: i32, %arg1: i32, %arg2: memref<1x32x256xbf16, #tpu.memory_space<vmem>>, %arg3: memref<1x256x128xbf16, #tpu.memory_space<vmem>>, %arg4: memref<1x32x32xbf16, #tpu.memory_space<vmem>>, %arg5: memref<1x8x32xf32, #tpu.memory_space<vmem>>) attributes {dimension_semantics = [#tpu.dimension_semantics<parallel>, #tpu.dimension_semantics<parallel>], iteration_bounds = array<i64: 4, 1>, scalar_prefetch = 0 : i64, scratch_operands = 0 : i64, tpu.core_type = #tpu.core_type<tc>, window_params = [{transform_indices = @transform_0, window_bounds = array<i64: 1, 32, 256>}, {transform_indices = @transform_1, window_bounds = array<i64: 1, 256, 128>}, {transform_indices = @transform_2, window_bounds = array<i64: 1, 32, 32>}, {transform_indices = @transform_3, window_bounds = array<i64: 1, 8, 32>}]} {
    %c0 = arith.constant 0 : index
    %c0_0 = arith.constant 0 : index
    %c0_1 = arith.constant 0 : index
    %0 = vector.load %arg2[%c0, %c0_0, %c0_1] : memref<1x32x256xbf16, #tpu.memory_space<vmem>>, vector<1x32x256xbf16>
    %1 = vector.shape_cast %0 : vector<1x32x256xbf16> to vector<32x256xbf16>
    %c0_2 = arith.constant 0 : index
    %c0_3 = arith.constant 0 : index
    %c0_4 = arith.constant 0 : index
    %2 = vector.load %arg3[%c0_2, %c0_3, %c0_4] : memref<1x256x128xbf16, #tpu.memory_space<vmem>>, vector<1x256x128xbf16>
    %3 = vector.shape_cast %2 : vector<1x256x128xbf16> to vector<256x128xbf16>
    %cst = arith.constant dense<0.000000e+00> : vector<32x128xf32>
    %4 = tpu.matmul %1, %3, %cst {dimension_numbers = #tpu.dot_dimension_numbers<[1], [0], [0], [1], [0, 0, 1, 1], [], []>} : vector<32x256xbf16>, vector<256x128xbf16>, vector<32x128xf32> -> vector<32x128xf32>
    %5 = vector.extract_strided_slice %4 {offsets = [0, 0], sizes = [32, 32], strides = [1, 1]} : vector<32x128xf32> to vector<32x32xf32>
    %6 = arith.truncf %5 : vector<32x32xf32> to vector<32x32xbf16>
    %c0_5 = arith.constant 0 : index
    %c0_6 = arith.constant 0 : index
    %c0_7 = arith.constant 0 : index
    %7 = vector.load %arg4[%c0_5, %c0_6, %c0_7] : memref<1x32x32xbf16, #tpu.memory_space<vmem>>, vector<1x32x32xbf16>
    %8 = vector.shape_cast %7 : vector<1x32x32xbf16> to vector<32x32xbf16>
    %9 = vector.shape_cast %6 : vector<32x32xbf16> to vector<1x32x32xbf16>
    tpu.vector_store %arg4[%c0_5, %c0_6, %c0_7], %9 {strides = array<i32>} : memref<1x32x32xbf16, #tpu.memory_space<vmem>>, vector<1x32x32xbf16>,
    %cst_8 = arith.constant dense<0.000000e+00> : vector<32xf32>
    %10 = vector.multi_reduction <add>, %5, %cst_8 [0] : vector<32x32xf32> to vector<32xf32>
    %11 = vector.shape_cast %10 : vector<32xf32> to vector<1x32xf32>
    %c0_9 = arith.constant 0 : index
    %c0_10 = arith.constant 0 : index
    %c0_11 = arith.constant 0 : index
    %12 = vector.load %arg5[%c0_9, %c0_10, %c0_11] : memref<1x8x32xf32, #tpu.memory_space<vmem>>, vector<1x1x32xf32>
    %13 = vector.shape_cast %12 : vector<1x1x32xf32> to vector<1x32xf32>
    %14 = vector.shape_cast %11 : vector<1x32xf32> to vector<1x1x32xf32>
    tpu.vector_store %arg5[%c0_9, %c0_10, %c0_11], %14 {strides = array<i32>} : memref<1x8x32xf32, #tpu.memory_space<vmem>>, vector<1x1x32xf32>,
    %15 = arith.mulf %5, %5 : vector<32x32xf32>
    %cst_12 = arith.constant dense<0.000000e+00> : vector<32xf32>
    %16 = vector.multi_reduction <add>, %15, %cst_12 [0] : vector<32x32xf32> to vector<32xf32>
    %17 = vector.shape_cast %16 : vector<32xf32> to vector<1x32xf32>
    %c0_13 = arith.constant 0 : index
    %c1 = arith.constant 1 : index
    %c0_14 = arith.constant 0 : index
    %18 = vector.load %arg5[%c0_13, %c1, %c0_14] : memref<1x8x32xf32, #tpu.memory_space<vmem>>, vector<1x1x32xf32>
    %19 = vector.shape_cast %18 : vector<1x1x32xf32> to vector<1x32xf32>
    %20 = vector.shape_cast %17 : vector<1x32xf32> to vector<1x1x32xf32>
    tpu.vector_store %arg5[%c0_13, %c1, %c0_14], %20 {strides = array<i32>} : memref<1x8x32xf32, #tpu.memory_space<vmem>>, vector<1x1x32xf32>,
    return
  }
  func.func @transform_0(%arg0: i32, %arg1: i32) -> (i32, i32, i32) {
    %c0_i32 = arith.constant 0 : i32
    %c0_i32_0 = arith.constant 0 : i32
    return %arg0, %arg1, %c0_i32 : i32, i32, i32
  }
  func.func @transform_1(%arg0: i32, %arg1: i32) -> (i32, i32, i32) {
    %c0_i32 = arith.constant 0 : i32
    %c0_i32_0 = arith.constant 0 : i32
    %c0_i32_1 = arith.constant 0 : i32
    return %arg0, %c0_i32, %c0_i32_0 : i32, i32, i32
  }
  func.func @transform_2(%arg0: i32, %arg1: i32) -> (i32, i32, i32) {
    %c0_i32 = arith.constant 0 : i32
    %c0_i32_0 = arith.constant 0 : i32
    return %arg0, %arg1, %c0_i32 : i32, i32, i32
  }
  func.func @transform_3(%arg0: i32, %arg1: i32) -> (i32, i32, i32) {
    %c0_i32 = arith.constant 0 : i32
    %c0_i32_0 = arith.constant 0 : i32
    return %arg0, %arg1, %c0_i32 : i32, i32, i32
  }
}

module attributes {stable_mosaic.version = 11 : i64} {
  func.func @_matmul_stats_kernel(%arg0: i32, %arg1: i32, %arg2: memref<1x128x128xbf16, #tpu.memory_space<vmem>>, %arg3: memref<1x128x128xbf16, #tpu.memory_space<vmem>>, %arg4: memref<1x128x16xbf16, #tpu.memory_space<vmem>>, %arg5: memref<1x8x16xf32, #tpu.memory_space<vmem>>) attributes {dimension_semantics = [#tpu.dimension_semantics<parallel>, #tpu.dimension_semantics<parallel>], iteration_bounds = array<i64: 4, 1>, scalar_prefetch = 0 : i64, scratch_operands = 0 : i64, tpu.core_type = #tpu.core_type<tc>, window_params = [{transform_indices = @transform_0, window_bounds = array<i64: 1, 128, 128>}, {transform_indices = @transform_1, window_bounds = array<i64: 1, 128, 128>}, {transform_indices = @transform_2, window_bounds = array<i64: 1, 128, 16>}, {transform_indices = @transform_3, window_bounds = array<i64: 1, 8, 16>}]} {
    %c0 = arith.constant 0 : index
    %c0_0 = arith.constant 0 : index
    %c0_1 = arith.constant 0 : index
    %0 = vector.load %arg2[%c0, %c0_0, %c0_1] : memref<1x128x128xbf16, #tpu.memory_space<vmem>>, vector<1x128x128xbf16>
    %1 = vector.shape_cast %0 : vector<1x128x128xbf16> to vector<128x128xbf16>
    %c0_2 = arith.constant 0 : index
    %c0_3 = arith.constant 0 : index
    %c0_4 = arith.constant 0 : index
    %2 = vector.load %arg3[%c0_2, %c0_3, %c0_4] : memref<1x128x128xbf16, #tpu.memory_space<vmem>>, vector<1x128x128xbf16>
    %3 = vector.shape_cast %2 : vector<1x128x128xbf16> to vector<128x128xbf16>
    %cst = arith.constant dense<0.000000e+00> : vector<128x128xf32>
    %4 = tpu.matmul %1, %3, %cst {dimension_numbers = #tpu.dot_dimension_numbers<[1], [0], [0], [1], [0, 0, 1, 1], [], []>} : vector<128x128xbf16>, vector<128x128xbf16>, vector<128x128xf32> -> vector<128x128xf32>
    %5 = vector.extract_strided_slice %4 {offsets = [0, 0], sizes = [128, 16], strides = [1, 1]} : vector<128x128xf32> to vector<128x16xf32>
    %6 = arith.truncf %5 : vector<128x16xf32> to vector<128x16xbf16>
    %c0_5 = arith.constant 0 : index
    %c0_6 = arith.constant 0 : index
    %c0_7 = arith.constant 0 : index
    %7 = vector.load %arg4[%c0_5, %c0_6, %c0_7] : memref<1x128x16xbf16, #tpu.memory_space<vmem>>, vector<1x128x16xbf16>
    %8 = vector.shape_cast %7 : vector<1x128x16xbf16> to vector<128x16xbf16>
    %9 = vector.shape_cast %6 : vector<128x16xbf16> to vector<1x128x16xbf16>
    tpu.vector_store %arg4[%c0_5, %c0_6, %c0_7], %9 {strides = array<i32>} : memref<1x128x16xbf16, #tpu.memory_space<vmem>>, vector<1x128x16xbf16>,
    %cst_8 = arith.constant dense<0.000000e+00> : vector<16xf32>
    %10 = vector.multi_reduction <add>, %5, %cst_8 [0] : vector<128x16xf32> to vector<16xf32>
    %11 = vector.shape_cast %10 : vector<16xf32> to vector<1x16xf32>
    %c0_9 = arith.constant 0 : index
    %c0_10 = arith.constant 0 : index
    %c0_11 = arith.constant 0 : index
    %12 = vector.load %arg5[%c0_9, %c0_10, %c0_11] : memref<1x8x16xf32, #tpu.memory_space<vmem>>, vector<1x1x16xf32>
    %13 = vector.shape_cast %12 : vector<1x1x16xf32> to vector<1x16xf32>
    %14 = vector.shape_cast %11 : vector<1x16xf32> to vector<1x1x16xf32>
    tpu.vector_store %arg5[%c0_9, %c0_10, %c0_11], %14 {strides = array<i32>} : memref<1x8x16xf32, #tpu.memory_space<vmem>>, vector<1x1x16xf32>,
    %15 = arith.mulf %5, %5 : vector<128x16xf32>
    %cst_12 = arith.constant dense<0.000000e+00> : vector<16xf32>
    %16 = vector.multi_reduction <add>, %15, %cst_12 [0] : vector<128x16xf32> to vector<16xf32>
    %17 = vector.shape_cast %16 : vector<16xf32> to vector<1x16xf32>
    %c0_13 = arith.constant 0 : index
    %c1 = arith.constant 1 : index
    %c0_14 = arith.constant 0 : index
    %18 = vector.load %arg5[%c0_13, %c1, %c0_14] : memref<1x8x16xf32, #tpu.memory_space<vmem>>, vector<1x1x16xf32>
    %19 = vector.shape_cast %18 : vector<1x1x16xf32> to vector<1x16xf32>
    %20 = vector.shape_cast %17 : vector<1x16xf32> to vector<1x1x16xf32>
    tpu.vector_store %arg5[%c0_13, %c1, %c0_14], %20 {strides = array<i32>} : memref<1x8x16xf32, #tpu.memory_space<vmem>>, vector<1x1x16xf32>,
    return
  }
  func.func @transform_0(%arg0: i32, %arg1: i32) -> (i32, i32, i32) {
    %c0_i32 = arith.constant 0 : i32
    %c0_i32_0 = arith.constant 0 : i32
    return %arg0, %arg1, %c0_i32 : i32, i32, i32
  }
  func.func @transform_1(%arg0: i32, %arg1: i32) -> (i32, i32, i32) {
    %c0_i32 = arith.constant 0 : i32
    %c0_i32_0 = arith.constant 0 : i32
    %c0_i32_1 = arith.constant 0 : i32
    return %arg0, %c0_i32, %c0_i32_0 : i32, i32, i32
  }
  func.func @transform_2(%arg0: i32, %arg1: i32) -> (i32, i32, i32) {
    %c0_i32 = arith.constant 0 : i32
    %c0_i32_0 = arith.constant 0 : i32
    return %arg0, %arg1, %c0_i32 : i32, i32, i32
  }
  func.func @transform_3(%arg0: i32, %arg1: i32) -> (i32, i32, i32) {
    %c0_i32 = arith.constant 0 : i32
    %c0_i32_0 = arith.constant 0 : i32
    return %arg0, %arg1, %c0_i32 : i32, i32, i32
  }
}

module attributes {stable_mosaic.version = 11 : i64} {
  func.func @_matmul_stats_kernel(%arg0: i32, %arg1: i32, %arg2: memref<1x512x64xbf16, #tpu.memory_space<vmem>>, %arg3: memref<1x64x128xbf16, #tpu.memory_space<vmem>>, %arg4: memref<1x512x8xbf16, #tpu.memory_space<vmem>>, %arg5: memref<1x8x8xf32, #tpu.memory_space<vmem>>) attributes {dimension_semantics = [#tpu.dimension_semantics<parallel>, #tpu.dimension_semantics<parallel>], iteration_bounds = array<i64: 4, 1>, scalar_prefetch = 0 : i64, scratch_operands = 0 : i64, tpu.core_type = #tpu.core_type<tc>, window_params = [{transform_indices = @transform_0, window_bounds = array<i64: 1, 512, 64>}, {transform_indices = @transform_1, window_bounds = array<i64: 1, 64, 128>}, {transform_indices = @transform_2, window_bounds = array<i64: 1, 512, 8>}, {transform_indices = @transform_3, window_bounds = array<i64: 1, 8, 8>}]} {
    %c0 = arith.constant 0 : index
    %c0_0 = arith.constant 0 : index
    %c0_1 = arith.constant 0 : index
    %0 = vector.load %arg2[%c0, %c0_0, %c0_1] : memref<1x512x64xbf16, #tpu.memory_space<vmem>>, vector<1x512x64xbf16>
    %1 = vector.shape_cast %0 : vector<1x512x64xbf16> to vector<512x64xbf16>
    %c0_2 = arith.constant 0 : index
    %c0_3 = arith.constant 0 : index
    %c0_4 = arith.constant 0 : index
    %2 = vector.load %arg3[%c0_2, %c0_3, %c0_4] : memref<1x64x128xbf16, #tpu.memory_space<vmem>>, vector<1x64x128xbf16>
    %3 = vector.shape_cast %2 : vector<1x64x128xbf16> to vector<64x128xbf16>
    %cst = arith.constant dense<0.000000e+00> : vector<512x128xf32>
    %4 = tpu.matmul %1, %3, %cst {dimension_numbers = #tpu.dot_dimension_numbers<[1], [0], [0], [1], [0, 0, 1, 1], [], []>} : vector<512x64xbf16>, vector<64x128xbf16>, vector<512x128xf32> -> vector<512x128xf32>
    %5 = vector.extract_strided_slice %4 {offsets = [0, 0], sizes = [512, 8], strides = [1, 1]} : vector<512x128xf32> to vector<512x8xf32>
    %6 = arith.truncf %5 : vector<512x8xf32> to vector<512x8xbf16>
    %c0_5 = arith.constant 0 : index
    %c0_6 = arith.constant 0 : index
    %c0_7 = arith.constant 0 : index
    %7 = vector.load %arg4[%c0_5, %c0_6, %c0_7] : memref<1x512x8xbf16, #tpu.memory_space<vmem>>, vector<1x512x8xbf16>
    %8 = vector.shape_cast %7 : vector<1x512x8xbf16> to vector<512x8xbf16>
    %9 = vector.shape_cast %6 : vector<512x8xbf16> to vector<1x512x8xbf16>
    tpu.vector_store %arg4[%c0_5, %c0_6, %c0_7], %9 {strides = array<i32>} : memref<1x512x8xbf16, #tpu.memory_space<vmem>>, vector<1x512x8xbf16>,
    %cst_8 = arith.constant dense<0.000000e+00> : vector<8xf32>
    %10 = vector.multi_reduction <add>, %5, %cst_8 [0] : vector<512x8xf32> to vector<8xf32>
    %11 = vector.shape_cast %10 : vector<8xf32> to vector<1x8xf32>
    %c0_9 = arith.constant 0 : index
    %c0_10 = arith.constant 0 : index
    %c0_11 = arith.constant 0 : index
    %12 = vector.load %arg5[%c0_9, %c0_10, %c0_11] : memref<1x8x8xf32, #tpu.memory_space<vmem>>, vector<1x1x8xf32>
    %13 = vector.shape_cast %12 : vector<1x1x8xf32> to vector<1x8xf32>
    %14 = vector.shape_cast %11 : vector<1x8xf32> to vector<1x1x8xf32>
    tpu.vector_store %arg5[%c0_9, %c0_10, %c0_11], %14 {strides = array<i32>} : memref<1x8x8xf32, #tpu.memory_space<vmem>>, vector<1x1x8xf32>,
    %15 = arith.mulf %5, %5 : vector<512x8xf32>
    %cst_12 = arith.constant dense<0.000000e+00> : vector<8xf32>
    %16 = vector.multi_reduction <add>, %15, %cst_12 [0] : vector<512x8xf32> to vector<8xf32>
    %17 = vector.shape_cast %16 : vector<8xf32> to vector<1x8xf32>
    %c0_13 = arith.constant 0 : index
    %c1 = arith.constant 1 : index
    %c0_14 = arith.constant 0 : index
    %18 = vector.load %arg5[%c0_13, %c1, %c0_14] : memref<1x8x8xf32, #tpu.memory_space<vmem>>, vector<1x1x8xf32>
    %19 = vector.shape_cast %18 : vector<1x1x8xf32> to vector<1x8xf32>
    %20 = vector.shape_cast %17 : vector<1x8xf32> to vector<1x1x8xf32>
    tpu.vector_store %arg5[%c0_13, %c1, %c0_14], %20 {strides = array<i32>} : memref<1x8x8xf32, #tpu.memory_space<vmem>>, vector<1x1x8xf32>,
    return
  }
  func.func @transform_0(%arg0: i32, %arg1: i32) -> (i32, i32, i32) {
    %c0_i32 = arith.constant 0 : i32
    %c0_i32_0 = arith.constant 0 : i32
    return %arg0, %arg1, %c0_i32 : i32, i32, i32
  }
  func.func @transform_1(%arg0: i32, %arg1: i32) -> (i32, i32, i32) {
    %c0_i32 = arith.constant 0 : i32
    %c0_i32_0 = arith.constant 0 : i32
    %c0_i32_1 = arith.constant 0 : i32
    return %arg0, %c0_i32, %c0_i32_0 : i32, i32, i32
  }
  func.func @transform_2(%arg0: i32, %arg1: i32) -> (i32, i32, i32) {
    %c0_i32 = arith.constant 0 : i32
    %c0_i32_0 = arith.constant 0 : i32
    return %arg0, %arg1, %c0_i32 : i32, i32, i32
  }
  func.func @transform_3(%arg0: i32, %arg1: i32) -> (i32, i32, i32) {
    %c0_i32 = arith.constant 0 : i32
    %c0_i32_0 = arith.constant 0 : i32
    return %arg0, %arg1, %c0_i32 : i32, i32, i32
  }
}

module attributes {stable_mosaic.version = 11 : i64} {
  func.func @_matmul_tanh_kernel(%arg0: i32, %arg1: i32, %arg2: memref<1x2048x32xbf16, #tpu.memory_space<vmem>>, %arg3: memref<1x32x128xbf16, #tpu.memory_space<vmem>>, %arg4: memref<1x2048x3xbf16, #tpu.memory_space<vmem>>) attributes {dimension_semantics = [#tpu.dimension_semantics<parallel>, #tpu.dimension_semantics<parallel>], iteration_bounds = array<i64: 4, 1>, scalar_prefetch = 0 : i64, scratch_operands = 0 : i64, tpu.core_type = #tpu.core_type<tc>, window_params = [{transform_indices = @transform_0, window_bounds = array<i64: 1, 2048, 32>}, {transform_indices = @transform_1, window_bounds = array<i64: 1, 32, 128>}, {transform_indices = @transform_2, window_bounds = array<i64: 1, 2048, 3>}]} {
    %c0 = arith.constant 0 : index
    %c0_0 = arith.constant 0 : index
    %c0_1 = arith.constant 0 : index
    %0 = vector.load %arg2[%c0, %c0_0, %c0_1] : memref<1x2048x32xbf16, #tpu.memory_space<vmem>>, vector<1x2048x32xbf16>
    %1 = vector.shape_cast %0 : vector<1x2048x32xbf16> to vector<2048x32xbf16>
    %c0_2 = arith.constant 0 : index
    %c0_3 = arith.constant 0 : index
    %c0_4 = arith.constant 0 : index
    %2 = vector.load %arg3[%c0_2, %c0_3, %c0_4] : memref<1x32x128xbf16, #tpu.memory_space<vmem>>, vector<1x32x128xbf16>
    %3 = vector.shape_cast %2 : vector<1x32x128xbf16> to vector<32x128xbf16>
    %cst = arith.constant dense<0.000000e+00> : vector<2048x128xf32>
    %4 = tpu.matmul %1, %3, %cst {dimension_numbers = #tpu.dot_dimension_numbers<[1], [0], [0], [1], [0, 0, 1, 1], [], []>} : vector<2048x32xbf16>, vector<32x128xbf16>, vector<2048x128xf32> -> vector<2048x128xf32>
    %5 = vector.extract_strided_slice %4 {offsets = [0, 0], sizes = [2048, 3], strides = [1, 1]} : vector<2048x128xf32> to vector<2048x3xf32>
    %6 = math.tanh %5 : vector<2048x3xf32>
    %7 = arith.truncf %6 : vector<2048x3xf32> to vector<2048x3xbf16>
    %c0_5 = arith.constant 0 : index
    %c0_6 = arith.constant 0 : index
    %c0_7 = arith.constant 0 : index
    %8 = vector.load %arg4[%c0_5, %c0_6, %c0_7] : memref<1x2048x3xbf16, #tpu.memory_space<vmem>>, vector<1x2048x3xbf16>
    %9 = vector.shape_cast %8 : vector<1x2048x3xbf16> to vector<2048x3xbf16>
    %10 = vector.shape_cast %7 : vector<2048x3xbf16> to vector<1x2048x3xbf16>
    tpu.vector_store %arg4[%c0_5, %c0_6, %c0_7], %10 {strides = array<i32>} : memref<1x2048x3xbf16, #tpu.memory_space<vmem>>, vector<1x2048x3xbf16>,
    return
  }
  func.func @transform_0(%arg0: i32, %arg1: i32) -> (i32, i32, i32) {
    %c0_i32 = arith.constant 0 : i32
    %c0_i32_0 = arith.constant 0 : i32
    return %arg0, %arg1, %c0_i32 : i32, i32, i32
  }
  func.func @transform_1(%arg0: i32, %arg1: i32) -> (i32, i32, i32) {
    %c0_i32 = arith.constant 0 : i32
    %c0_i32_0 = arith.constant 0 : i32
    %c0_i32_1 = arith.constant 0 : i32
    return %arg0, %c0_i32, %c0_i32_0 : i32, i32, i32
  }
  func.func @transform_2(%arg0: i32, %arg1: i32) -> (i32, i32, i32) {
    %c0_i32 = arith.constant 0 : i32
    %c0_i32_0 = arith.constant 0 : i32
    return %arg0, %arg1, %c0_i32 : i32, i32, i32
  }
}

</mosaic_0001>

<bundles_post_ra>
// kernel: a_call__.5
= control target key start
LH: loop header
LB: loop body
LE: loop exit
PB: predicated region body
PF: predicated region fallthrough
CT: control target
= control target key end

     0   :  { %9 = vsyncpa [#allocation3], 0  ;;  %s1083_s0 = inlined_call_operand.hbm [shape: bf16[16,8,32], index: 0, kind: input, shape index: {}]   ;;  %s1084_s1 = inlined_call_operand.hbm [shape: bf16[16,32,128], index: 1, kind: input, shape index: {}]   ;;  %s1085_s2 = inlined_call_operand.hbm [shape: bf16[16,8,64], index: 2, kind: output, shape index: {0}]   ;;  %s1086_s3 = inlined_call_operand.hbm [shape: f32[16,8,64], index: 3, kind: output, shape index: {1}]  }
   0x1   :  { %11 = vsyncpa [#allocation3 + $0x1], 0 }
   0x2   :  { %12 = vsyncpa [#allocation6], 0 }
   0x3   :  { %14 = vsyncpa [#allocation6 + $0x1], 0 }
   0x4   :  { %15 = vsyncpa [#allocation4], 0 }
   0x5   :  { %17 = vsyncpa [#allocation4 + $0x1], 0 }
   0x6   :  { %18 = vsyncpa [#allocation9], 0 }
   0x7   :  { %20 = vsyncpa [#allocation9 + $0x1], 0  ;;  %s831_s12 = smov 0   ;;  %s833_s13 = smov 0  }
   0x8   :  { %s835_s14 = smov 0   ;;  %s837_s15 = smov 0  }
   0x9   :  { %s839_s16 = smov 0   ;;  %s841_s17 = smov 0  }
   0xa LB: > { %s510_s18 = sadd.s32 4294967295, %s801_s17   ;;  %s511_s19 = sadd.s32 4294967294, %s801_s17   ;;  %s801_s17 = sphi %s841_s17, %s26_s17   ;;  %s797_s16 = sphi %s839_s16, %s1104_s16   ;;  %s793_s15 = sphi %s837_s15, %s1103_s15   ;;  %s789_s14 = sphi %s835_s14, %s1102_s14   ;;  %s785_s13 = sphi %s833_s13, %s1101_s13   ;;  %s781_s12 = sphi %s831_s12, %s1100_s12  }
   0xb   : > { %s38_s20 = sadd.s32 1, %s797_s16  ;;  %s47_s21 = sadd.s32 1, %s789_s14 }
   0xc   : > { %p40_p0 = scmp.ge.s32.totalorder %s38_s20, 16  ;;  %p54_p1 = scmp.ne.s32.totalorder %s789_s14, %s785_s13 }
   0xd   : > { %p55_p2 = scmp.eq.s32.totalorder %s801_s17, 0  ;;  %p60_p3 = scmp.ne.s32.totalorder %s785_s13, %s781_s12 }
   0xe   : > { %s1106_s20 = smov (%p40_p0, %s38_s20), 0  ;;  %p61_p5 = scmp.eq.s32.totalorder %s510_s18, 0 }
   0xf   : > { %p872_p4 = por %p55_p2, %p54_p1  ;;  %s42_s23 = ssub.s32 %s797_s16, %s1106_s20 }
  0x10   : > { %p112_p6 = scmp.eq.s32.totalorder %s510_s18, 15  ;;  %p45_p7 = scmp.eq.s32.totalorder %s42_s23, 0 }
  0x11   : > { %p878_p8 = por %p61_p5, %p60_p3  ;;  %p118_p10 = scmp.eq.s32.totalorder %s511_s19, 15 }
  0x12   : > { %p882_p9 = por %p112_p6, %p54_p1  ;;  %p567_p12 = scmp.lt.s32.totalorder %s801_s17, 16 }
  0x13   : > { %s1090_s24 = scalar_select %p878_p8, 1, 0 }
  0x14   : > { %s1091_s25 = scalar_select %p882_p9, 1, 0 }
  0x15   : > { %s887_s26 = scalar_select %p45_p7, %s789_s14, %s47_s21  }
  0x16   : > { %p889_p11 = por %p118_p10, %p60_p3  ;;  %s895_s28 = sand.u32 1, %s789_s14  }
  0x17   : > { %s514_s29 = sshll.u32 %s895_s28, 2  ;;  %s515_s30 = sshll.u32 %s797_s16, 6 }
  0x18   : > { %s1092_s27 = scalar_select %p889_p11, 1, 0 }
  0x19   : > { %s902_s6 = scalar_lea.hbm %s1083_s0, %s515_s30  ;;  %s170_s7 = scalar_lea.vmem [#allocation2], %s514_s29 }
  0x1a   : > { %s178_s8 = sshll.u32 %s170_s7, 4  ;;  %p908_p13 = pnand %p567_p12, %p872_p4  ;;  %s904_s8 = int_to_ptr.vmem [resolvable:$true] %s178_s8 }
  0x1b   : > { %s167_s10 = scalar_lea.sflag [#allocation3], %s895_s28  ;;  %s623_s11 = scalar_lea.hbm %s902_s6, 64 }
  0x1c   : > { %p624_p2 = scmp.ne.s32.totalorder %s902_s6, %s623_s11  ;;  %p625_p3 = pneg %p908_p13 }
  0x1d   : > { %s628_s21 = scalar_lea.hbm %s1083_s0, 1024  ;;  %p629_p4 = scmp.lt.u32.totalorder %s902_s6, %s1083_s0 }
  0x1e   : > { %p626_p5 = pnand %p625_p3, %p624_p2  ;;  %p630_p7 = scmp.lt.u32.totalorder %s628_s21, %s623_s11 }
  0x1f   : > { %p632_p12 = scmp.lt.u32.totalorder %s623_s11, %s902_s6 }
  0x20   : > { %p627_p6 = pneg %p626_p5  ;;  %p631_p10 = por %p630_p7, %p629_p4 }
  0x22   : > { %p633_p0 = por %p632_p12, %p631_p10 }
  0x24   : > { %p634_p1 = pnand %p633_p0, %p627_p6 }
  0x26   : > { %637 = shalt.err (!%p634_p1)
}
  0x27   : > { %s638_s29 = scalar_lea.vmem %s904_s8, 64  ;;  %s803_s30 = smov [#allocation2]  }
  0x28   : > { %p639_p2 = scmp.ne.s32.totalorder %s904_s8, %s638_s29  ;;  %s643_s4 = sshll.u32 %s803_s30, 4  ;;  %s644_s4 = int_to_ptr.vmem [resolvable:$false] %s643_s4 }
  0x29   : > { %s645_s5 = scalar_lea.vmem %s644_s4, 128  ;;  %p646_p9 = scmp.lt.s32.totalorder %s904_s8, %s644_s4 }
  0x2a   : > { %p641_p5 = pnand %p639_p2, %p625_p3  ;;  %p647_p4 = scmp.lt.s32.totalorder %s645_s5, %s638_s29 }
  0x2c   : > { %p642_p11 = pneg %p641_p5  ;;  %p648_p7 = por %p647_p4, %p646_p9 }
  0x2e   : > { %p649_p10 = pnand %p648_p7, %p642_p11 }
  0x30   : > { %652 = shalt.err (!%p649_p10)
}
  0x31   : > { %556 = dma.hbm_to_vmem [thread:$0]  (!%p908_p13), %s902_s6, 64, %s904_s8, %s167_s10  }
  0x32   : > { %p1094_p0 = scmp.lt.s32.totalorder %s801_s17, 17  ;;  %p1095_p1 = scmp.ge.s32.totalorder %s801_s17, 1 }
  0x33   : > { %s516_s11 = sshll.u32 %s895_s28, 4  ;;  %s533_s18 = sshll.u32 %s797_s16, 8 }
  0x34   : > { %p944_p6 = pnand %p1095_p1, %p1094_p0  ;;  %s953_s22 = scalar_lea.hbm %s1084_s1, %s533_s18 }
  0x35   : > { %s189_s23 = scalar_lea.vmem [#allocation5], %s516_s11  ;;  %s186_s6 = scalar_lea.sflag [#allocation6], %s895_s28 }
  0x36   : > { %s196_s29 = sshll.u32 %s189_s23, 4  ;;  %s653_s8 = scalar_lea.hbm %s953_s22, 256  ;;  %s955_s29 = int_to_ptr.vmem [resolvable:$true] %s196_s29 }
  0x37   : > { %p654_p9 = scmp.ne.s32.totalorder %s953_s22, %s653_s8  ;;  %s658_s4 = scalar_lea.hbm %s1084_s1, 4096 }
  0x38   : > { %p659_p2 = scmp.lt.u32.totalorder %s953_s22, %s1084_s1  ;;  %p660_p5 = scmp.lt.u32.totalorder %s658_s4, %s653_s8 }
  0x39   : > { %p656_p11 = pnand %p654_p9, %p625_p3  ;;  %p662_p7 = scmp.lt.u32.totalorder %s653_s8, %s953_s22 }
  0x3a   : > { %p661_p4 = por %p660_p5, %p659_p2 }
  0x3b   : > { %p657_p12 = pneg %p656_p11 }
  0x3c   : > { %p663_p10 = por %p662_p7, %p661_p4 }
  0x3e   : > { %p664_p0 = pnand %p663_p10, %p657_p12 }
  0x40   : > { %667 = shalt.err (!%p664_p0)
}
  0x41   : > { %s668_s11 = scalar_lea.vmem %s955_s29, 256  ;;  %s804_s19 = smov [#allocation5]  }
  0x42   : > { %p669_p1 = scmp.ne.s32.totalorder %s955_s29, %s668_s11  ;;  %s673_s21 = sshll.u32 %s804_s19, 4  ;;  %s674_s21 = int_to_ptr.vmem [resolvable:$false] %s673_s21 }
  0x43   : > { %s675_s23 = scalar_lea.vmem %s674_s21, 512  ;;  %p676_p8 = scmp.lt.s32.totalorder %s955_s29, %s674_s21 }
  0x44   : > { %p671_p9 = pnand %p669_p1, %p625_p3  ;;  %p677_p2 = scmp.lt.s32.totalorder %s675_s23, %s668_s11 }
  0x46   : > { %p672_p11 = pneg %p671_p9  ;;  %p678_p5 = por %p677_p2, %p676_p8 }
  0x48   : > { %p679_p4 = pnand %p678_p5, %p672_p11 }
  0x4a   : > { %682 = shalt.err (!%p679_p4)
}
  0x4b   : > { %s805_s8 = smov 64   ;;  %s806_s10 = smov 4  }
  0x4c   : > { %559 = dma.hbm_to_vmem [thread:$0]  (!%p908_p13), %s953_s22, 256, %s955_s29, %s186_s6, %s805_s8, %s805_s8, %s806_s10  }
  0x4d   : > { %208 = sbr.rel (%p944_p6) target bundleno = 351 (0x15f), region = 28  ;;  %s986_s30 = sand.u32 (!%p944_p6), 1, %s785_s13  }
  0x4e   : > { %s520_s4 = sshll.u32 (!%p944_p6), %s986_s30, 2  ;;  %s211_s5 = scalar_lea.sflag (!%p944_p6), [#allocation3], %s986_s30 }
  0x4f   : > { %s214_s18 = scalar_lea.vmem (!%p944_p6), [#allocation2], %s520_s4  ;;  %p1097_p8 = scmp.ne.s32.totalorder (!%p944_p6), %s1090_s24, 0 }
  0x54   : > { %764 = dma.done.wait (%p1097_p8), %s211_s5, 64  }
  0x55   : > { %766 = vsyncadd (%p1097_p8), %s211_s5, 4294967232  ;;  %s521_s28 = sshll.u32 %s986_s30, 4  ;;  %s220_s9 = scalar_lea.sflag [#allocation6], %s986_s30 }
  0x56   : > { %s223_s7 = scalar_lea.vmem [#allocation5], %s521_s28 }
  0x57   : > { %768 = dma.done.wait (%p1097_p8), %s220_s9, 256  }
  0x58   : > { %770 = vsyncadd (%p1097_p8), %s220_s9, 4294967040  ;;  %v807_v0 = vmov 0.0   ;;  %vm808_vm0 = vmmov 0   ;;  %v621_v1 = vld [vmem:[%s223_s7] sm:$0xff]   ;;  %v622_v2 = vld [vmem:[%s223_s7 + $0x8] sm:$0xff]   ;;  %vm274_vm1 = vcmask 261120  }
  0x59   : > { %537 = vmatprep.subr.bf16.mxu0 %v807_v0  ;;  %541 = vmatprep.mubr.msk.bf16.mxu0 %vm808_vm0, %v807_v0  ;;  %v257_v3 = vld [vmem:[%s214_s18] sm:$0xf]  ;;  %vm321_vm2 = vcmask 523264   ;;  %s529_s22 = sshll.u32 %s793_s15, 6  ;;  %s248_s29 = scalar_lea.vmem [#allocation7], %s520_s4  ;;  %vm319_vm3 = vcmask 519168  }
  0x5a   : > { %538 = vmatpush3.bf16.msra.mxu0 %v621_v1  ;;  %s360_s6 = sshll.u32 %s248_s29, 4  ;;  %s1004_s19 = scalar_lea.hbm %s1085_s2, %s529_s22  ;;  %s1006_s6 = int_to_ptr.vmem [resolvable:$true] %s360_s6 }
  0x5b   : > { %539 = vmatprep.subr.bf16.mxu0 %v807_v0  ;;  %s341_s21 = scalar_lea.sflag [#allocation4], %s986_s30  ;;  %s683_s23 = scalar_lea.vmem %s1006_s6, 64 }
  0x5c   : > { %p684_p13 = scmp.ne.s32.totalorder %s1006_s6, %s683_s23  ;;  %p1098_p3 = scmp.ne.s32.totalorder %s1091_s25, 0 }
  0x5d   : > { %s809_s8 = smov [#allocation7]  }
  0x5e   : > { %540 = vmatpush3.bf16.msra.mxu0 %v622_v2  ;;  %p685_p6 = pnand %p684_p13, %p1098_p3  ;;  %s687_s10 = sshll.u32 %s809_s8, 4  ;;  %s688_s10 = int_to_ptr.vmem [resolvable:$false] %s687_s10 }
  0x5f   : > { %s689_s4 = scalar_lea.vmem %s688_s10, 128  ;;  %p690_p7 = scmp.lt.s32.totalorder %s1006_s6, %s688_s10 }
  0x60   : > { %p686_p12 = pneg %p685_p6  ;;  %p691_p10 = scmp.lt.s32.totalorder %s689_s4, %s683_s23 }
  0x61   : > { %542 = vmatmul.mubr.msk.bf16.vlgmr.msra.gmra.mrb[0].mxu0 %vm274_vm1, %v257_v3 }
  0x62   : > { %p692_p0 = por %p691_p10, %p690_p7 }
  0x64   : > { %p693_p1 = pnand %p692_p0, %p686_p12 }
 0x134   : > { %v312_v4 = vpop.f32.mrb[0].mxu0 }
 0x135   : > { %v318_v5 = vpack.c.bf16 %v312_v4, %v312_v4  ;;  %v322_v6 = vsel %vm321_vm2, %v312_v4, 0.0  ;;  %v331_v7 = vmul.f32 %v312_v4, %v312_v4  ;;  %v543_v8 = vpop.f32.mrb[1].mxu0 }
 0x136   : > { %v323_v9 = vrot.slane %v322_v6, 4  ;;  %v315_v10 = vpop.f32.mrb[2].mxu0 }
 0x137   : > { %v332_v11 = vsel %vm321_vm2, %v331_v7, 0.0  ;;  %v544_v12 = vpop.f32.mrb[3].mxu0  ;;  %320 = vst.msk [vmem:[%s248_s29] sm:$0xf] %vm319_vm3, %v318_v5 }
 0x138   : > { %v324_v13 = vadd.f32 %v323_v9, %v322_v6  ;;  %v333_v14 = vrot.slane %v332_v11, 4 }
 0x139   : > { %696 = shalt.err (!%p693_p1)
}
 0x13a   : > { %s697_s5 = scalar_lea.hbm %s1004_s19, 64  ;;  %s701_s9 = scalar_lea.hbm %s1085_s2, 1024 }
 0x13b   : > { %p698_p9 = scmp.ne.s32.totalorder %s1004_s19, %s697_s5  ;;  %p702_p5 = scmp.lt.u32.totalorder %s1004_s19, %s1085_s2 }
 0x13c   : > { %p703_p4 = scmp.lt.u32.totalorder %s701_s9, %s697_s5  ;;  %p705_p13 = scmp.lt.u32.totalorder %s697_s5, %s1004_s19 }
 0x13d   : > { %p699_p11 = pnand %p698_p9, %p1098_p3 }
 0x13e   : > { %p704_p8 = por %p703_p4, %p702_p5 }
 0x13f   : > { %p700_p2 = pneg %p699_p11 }
 0x140   : > { %p706_p6 = por %p705_p13, %p704_p8 }
 0x142   : > { %p707_p12 = pnand %p706_p6, %p700_p2 }
 0x144   : > { %710 = shalt.err (!%p707_p12)
}
 0x145   : > { %549 = dma.vmem_to_hbm [thread:$0]  (%p1098_p3), %s1006_s6, 64, %s1004_s19, %s341_s21   ;;  %v325_v15 = vrot.slane %v324_v13, 2  ;;  %v334_v16 = vadd.f32 %v333_v14, %v332_v11  ;;  %vm329_vm4 = vcmask 516096  }
 0x146   : > { %s523_s29 = sshll.u32 %s986_s30, 3  ;;  %s530_s24 = sshll.u32 %s793_s15, 7 }
 0x147   : > { %v326_v17 = vadd.f32 %v325_v15, %v324_v13  ;;  %v335_v18 = vrot.slane %v334_v16, 2  ;;  %s255_s11 = scalar_lea.vmem [#allocation8], %s523_s29  ;;  %s1035_s6 = scalar_lea.hbm %s1086_s3, %s530_s24 }
 0x148   : > { %s374_s23 = sshll.u32 %s255_s11, 4  ;;  %s346_s19 = scalar_lea.sflag [#allocation9], %s986_s30  ;;  %s1037_s23 = int_to_ptr.vmem [resolvable:$true] %s374_s23 }
 0x149   : > { %v327_v19 = vrot.slane %v326_v17, 1  ;;  %v336_v20 = vadd.f32 %v335_v18, %v334_v16  ;;  %s711_s21 = scalar_lea.vmem %s1037_s23, 128  ;;  %s810_s15 = smov [#allocation8]  }
 0x14a   : > { %p712_p7 = scmp.ne.s32.totalorder %s1037_s23, %s711_s21  ;;  %s715_s4 = sshll.u32 %s810_s15, 4  ;;  %s716_s4 = int_to_ptr.vmem [resolvable:$false] %s715_s4 }
 0x14b   : > { %v328_v21 = vadd.f32 %v327_v19, %v326_v17  ;;  %v337_v22 = vrot.slane %v336_v20, 1  ;;  %s717_s5 = scalar_lea.vmem %s716_s4, 256  ;;  %p718_p1 = scmp.lt.s32.totalorder %s1037_s23, %s716_s4 }
 0x14c   : > { %p713_p10 = pnand %p712_p7, %p1098_p3  ;;  %p719_p9 = scmp.lt.s32.totalorder %s717_s5, %s711_s21 }
 0x14d   : > { %v338_v23 = vadd.f32 %v337_v22, %v336_v20  ;;  %330 = vst.msk [vmem:[%s255_s11] sm:$0x1] %vm329_vm4, %v328_v21 }
 0x14e   : > { %p714_p0 = pneg %p713_p10  ;;  %p720_p11 = por %p719_p9, %p718_p1 }
 0x14f   : > { %339 = vst.msk [vmem:[%s255_s11 + $0x1] sm:$0x1] %vm329_vm4, %v338_v23 }
 0x150   : > { %p721_p2 = pnand %p720_p11, %p714_p0 }
 0x152   : > { %724 = shalt.err (!%p721_p2)
}
 0x153   : > { %s725_s30 = scalar_lea.hbm %s1035_s6, 128  ;;  %s729_s9 = scalar_lea.hbm %s1086_s3, 2048 }
 0x154   : > { %p726_p5 = scmp.ne.s32.totalorder %s1035_s6, %s725_s30  ;;  %p730_p13 = scmp.lt.u32.totalorder %s1035_s6, %s1086_s3 }
 0x155   : > { %p731_p6 = scmp.lt.u32.totalorder %s729_s9, %s725_s30  ;;  %p733_p7 = scmp.lt.u32.totalorder %s725_s30, %s1035_s6 }
 0x156   : > { %p727_p4 = pnand %p726_p5, %p1098_p3 }
 0x157   : > { %p732_p12 = por %p731_p6, %p730_p13 }
 0x158   : > { %p728_p8 = pneg %p727_p4 }
 0x159   : > { %p734_p10 = por %p733_p7, %p732_p12 }
 0x15b   : > { %p735_p0 = pnand %p734_p10, %p728_p8 }
 0x15d   : > { %738 = shalt.err (!%p735_p0)
}
 0x15e   : > { %550 = dma.vmem_to_hbm [thread:$0]  (%p1098_p3), %s1037_s23, 128, %s1035_s6, %s346_s19  }
 0x15f PF: > { %p568_p1 = scmp.ge.s32.totalorder %s801_s17, 2  ;;  %s386_s29 = sand.u32 1, %s781_s12  }
 0x160   : > { %p1099_p9 = scmp.ne.s32.totalorder %s1092_s27, 0  ;;  %s387_s24 = scalar_lea.sflag [#allocation4], %s386_s29 }
 0x162   : > { %p561_p11 = pnand %p568_p1, %p1099_p9 }
 0x164   : > { %772 = dma.done.wait (!%p561_p11), %s387_s24, 64  }
 0x165   : > { %774 = vsyncadd (!%p561_p11), %s387_s24, 4294967232  ;;  %s396_s11 = scalar_lea.sflag [#allocation9], %s386_s29 }
 0x166   : > { %776 = dma.done.wait (!%p561_p11), %s396_s11, 128  }
 0x167   : > { %778 = vsyncadd (!%p561_p11), %s396_s11, 4294967168  ;;  %s26_s17 = sadd.s32 1, %s801_s17   ;;  %s1100_s12 = smov %s785_s13 }
 0x168   : > { %p23_p2 = scmp.ge.s32.totalorder %s26_s17, 18   ;;  %s1101_s13 = smov %s789_s14 }
 0x169   : > { %s1102_s14 = smov %s887_s26  ;;  %s1103_s15 = smov %s797_s16 }
 0x16a   : > { %s1104_s16 = smov %s1106_s20  ;;  %25 = sbr.rel (!%p23_p2) target bundleno = 10 (0xa), region = 103 }
 0x171   :  { %401 = vsyncpa [#allocation3], 1 }
 0x172   :  { %403 = vsyncpa [#allocation3 + $0x1], 1 }
 0x173   :  { %404 = vsyncpa [#allocation6], 1 }
 0x174   :  { %406 = vsyncpa [#allocation6 + $0x1], 1 }
 0x175   :  { %407 = vsyncpa [#allocation4], 1 }
 0x176   :  { %409 = vsyncpa [#allocation4 + $0x1], 1 }
 0x177   :  { %410 = vsyncpa [#allocation9], 1 }
 0x178   :  { %412 = vsyncpa [#allocation9 + $0x1], 1 }

// kernel: a_call__.6
= control target key start
LH: loop header
LB: loop body
LE: loop exit
PB: predicated region body
PF: predicated region fallthrough
CT: control target
= control target key end

     0   :  { %9 = vsyncpa [#allocation3], 0  ;;  %s1396_s0 = inlined_call_operand.hbm [shape: bf16[4,32,256], index: 0, kind: input, shape index: {}]   ;;  %s1397_s1 = inlined_call_operand.hbm [shape: bf16[4,256,128], index: 1, kind: input, shape index: {}]   ;;  %s1398_s2 = inlined_call_operand.hbm [shape: bf16[4,32,32], index: 2, kind: output, shape index: {0}]   ;;  %s1399_s3 = inlined_call_operand.hbm [shape: f32[4,8,32], index: 3, kind: output, shape index: {1}]  }
   0x1   :  { %11 = vsyncpa [#allocation3 + $0x1], 0 }
   0x2   :  { %12 = vsyncpa [#allocation6], 0 }
   0x3   :  { %14 = vsyncpa [#allocation6 + $0x1], 0 }
   0x4   :  { %15 = vsyncpa [#allocation4], 0 }
   0x5   :  { %17 = vsyncpa [#allocation4 + $0x1], 0 }
   0x6   :  { %18 = vsyncpa [#allocation9], 0 }
   0x7   :  { %20 = vsyncpa [#allocation9 + $0x1], 0  ;;  %s1105_s12 = smov 0   ;;  %s1107_s13 = smov 0  }
   0x8   :  { %s1109_s14 = smov 0   ;;  %s1111_s15 = smov 0  }
   0x9   :  { %s1113_s16 = smov 0   ;;  %s1115_s17 = smov 0  }
   0xa LB: > { %s698_s18 = sadd.s32 4294967295, %s1073_s17   ;;  %s699_s19 = sadd.s32 4294967294, %s1073_s17   ;;  %s1073_s17 = sphi %s1115_s17, %s26_s17   ;;  %s1069_s16 = sphi %s1113_s16, %s1416_s16   ;;  %s1065_s15 = sphi %s1111_s15, %s1415_s15   ;;  %s1061_s14 = sphi %s1109_s14, %s1414_s14   ;;  %s1057_s13 = sphi %s1107_s13, %s1413_s13   ;;  %s1053_s12 = sphi %s1105_s12, %s1412_s12  }
   0xb   : > { %s38_s20 = sadd.s32 1, %s1069_s16  ;;  %s47_s21 = sadd.s32 1, %s1061_s14 }
   0xc   : > { %p40_p0 = scmp.ge.s32.totalorder %s38_s20, 4  ;;  %p54_p1 = scmp.ne.s32.totalorder %s1061_s14, %s1057_s13 }
   0xd   : > { %p55_p2 = scmp.eq.s32.totalorder %s1073_s17, 0  ;;  %p60_p3 = scmp.ne.s32.totalorder %s1057_s13, %s1053_s12 }
   0xe   : > { %s1418_s20 = smov (%p40_p0, %s38_s20), 0  ;;  %p61_p5 = scmp.eq.s32.totalorder %s698_s18, 0 }
   0xf   : > { %p1146_p4 = por %p55_p2, %p54_p1  ;;  %s42_s23 = ssub.s32 %s1069_s16, %s1418_s20 }
  0x10   : > { %p112_p6 = scmp.eq.s32.totalorder %s698_s18, 3  ;;  %p45_p7 = scmp.eq.s32.totalorder %s42_s23, 0 }
  0x11   : > { %p1152_p8 = por %p61_p5, %p60_p3  ;;  %p118_p10 = scmp.eq.s32.totalorder %s699_s19, 3 }
  0x12   : > { %p1156_p9 = por %p112_p6, %p54_p1  ;;  %p817_p12 = scmp.lt.s32.totalorder %s1073_s17, 4 }
  0x13   : > { %s1403_s24 = scalar_select %p1152_p8, 1, 0 }
  0x14   : > { %s1404_s25 = scalar_select %p1156_p9, 1, 0 }
  0x15   : > { %s1161_s26 = scalar_select %p45_p7, %s1061_s14, %s47_s21  }
  0x16   : > { %p1163_p11 = por %p118_p10, %p60_p3  ;;  %s1169_s28 = sand.u32 1, %s1061_s14  }
  0x17   : > { %s702_s29 = sshll.u32 %s1169_s28, 5  ;;  %s744_s30 = sshll.u32 %s1069_s16, 9 }
  0x18   : > { %s1405_s27 = scalar_select %p1163_p11, 1, 0 }
  0x19   : > { %s1176_s6 = scalar_lea.hbm %s1396_s0, %s744_s30  ;;  %s170_s7 = scalar_lea.vmem [#allocation2], %s702_s29 }
  0x1a   : > { %s180_s8 = sshll.u32 %s170_s7, 4  ;;  %p1182_p13 = pnand %p817_p12, %p1146_p4  ;;  %s1178_s8 = int_to_ptr.vmem [resolvable:$true] %s180_s8 }
  0x1b   : > { %s167_s10 = scalar_lea.sflag [#allocation3], %s1169_s28  ;;  %s895_s11 = scalar_lea.hbm %s1176_s6, 512 }
  0x1c   : > { %p896_p1 = scmp.ne.s32.totalorder %s1176_s6, %s895_s11  ;;  %p897_p2 = pneg %p1182_p13 }
  0x1d   : > { %s900_s21 = scalar_lea.hbm %s1396_s0, 2048  ;;  %p901_p4 = scmp.lt.u32.totalorder %s1176_s6, %s1396_s0 }
  0x1e   : > { %p898_p3 = pnand %p897_p2, %p896_p1  ;;  %p902_p6 = scmp.lt.u32.totalorder %s900_s21, %s895_s11 }
  0x1f   : > { %p904_p10 = scmp.lt.u32.totalorder %s895_s11, %s1176_s6 }
  0x20   : > { %p899_p5 = pneg %p898_p3  ;;  %p903_p7 = por %p902_p6, %p901_p4 }
  0x22   : > { %p905_p12 = por %p904_p10, %p903_p7 }
  0x24   : > { %p906_p0 = pnand %p905_p12, %p899_p5 }
  0x26   : > { %909 = shalt.err (!%p906_p0)
}
  0x27   : > { %s910_s29 = scalar_lea.vmem %s1178_s8, 512  ;;  %s1075_s30 = smov [#allocation2]  }
  0x28   : > { %p911_p1 = scmp.ne.s32.totalorder %s1178_s8, %s910_s29  ;;  %s915_s4 = sshll.u32 %s1075_s30, 4  ;;  %s916_s4 = int_to_ptr.vmem [resolvable:$false] %s915_s4 }
  0x29   : > { %s917_s5 = scalar_lea.vmem %s916_s4, 1024  ;;  %p918_p9 = scmp.lt.s32.totalorder %s1178_s8, %s916_s4 }
  0x2a   : > { %p913_p3 = pnand %p911_p1, %p897_p2  ;;  %p919_p4 = scmp.lt.s32.totalorder %s917_s5, %s910_s29 }
  0x2c   : > { %p914_p11 = pneg %p913_p3  ;;  %p920_p6 = por %p919_p4, %p918_p9 }
  0x2e   : > { %p921_p7 = pnand %p920_p6, %p914_p11 }
  0x30   : > { %924 = shalt.err (!%p921_p7)
}
  0x31   : > { %s1076_s7 = smov 128   ;;  %s1077_s11 = smov 8  }
  0x32   : > { %806 = dma.hbm_to_vmem [thread:$0]  (!%p1182_p13), %s1176_s6, 512, %s1178_s8, %s167_s10, %s1076_s7, %s1076_s7, %s1077_s11  }
  0x33   : > { %p209_p0 = scmp.lt.s32.totalorder %s1073_s17, 5  ;;  %s705_s18 = sshll.u32 %s1169_s28, 7 }
  0x34   : > { %s745_s19 = sshll.u32 %s1069_s16, 11  ;;  %p1407_p9 = scmp.ge.s32.totalorder %s1073_s17, 1 }
  0x35   : > { %s1227_s29 = scalar_lea.hbm %s1397_s1, %s745_s19  ;;  %s194_s30 = scalar_lea.vmem [#allocation5], %s705_s18 }
  0x36   : > { %p1220_p11 = pnand %p1407_p9, %p209_p0  ;;  %s201_s4 = sshll.u32 %s194_s30, 4  ;;  %s1229_s4 = int_to_ptr.vmem [resolvable:$true] %s201_s4 }
  0x37   : > { %s191_s6 = scalar_lea.sflag [#allocation6], %s1169_s28  ;;  %s925_s8 = scalar_lea.hbm %s1227_s29, 2048 }
  0x38   : > { %p926_p5 = scmp.ne.s32.totalorder %s1227_s29, %s925_s8  ;;  %s930_s7 = scalar_lea.hbm %s1397_s1, 8192 }
  0x39   : > { %p931_p1 = scmp.lt.u32.totalorder %s1227_s29, %s1397_s1  ;;  %p932_p3 = scmp.lt.u32.totalorder %s930_s7, %s925_s8 }
  0x3a   : > { %p928_p10 = pnand %p926_p5, %p897_p2  ;;  %p934_p6 = scmp.lt.u32.totalorder %s925_s8, %s1227_s29 }
  0x3b   : > { %p933_p4 = por %p932_p3, %p931_p1 }
  0x3c   : > { %p929_p12 = pneg %p928_p10 }
  0x3d   : > { %p935_p7 = por %p934_p6, %p933_p4 }
  0x3f   : > { %p936_p0 = pnand %p935_p7, %p929_p12 }
  0x41   : > { %939 = shalt.err (!%p936_p0)
}
  0x42   : > { %s940_s18 = scalar_lea.vmem %s1229_s4, 2048  ;;  %s1078_s22 = smov [#allocation5]  }
  0x43   : > { %p941_p9 = scmp.ne.s32.totalorder %s1229_s4, %s940_s18  ;;  %s945_s23 = sshll.u32 %s1078_s22, 4  ;;  %s946_s23 = int_to_ptr.vmem [resolvable:$false] %s945_s23 }
  0x44   : > { %s947_s30 = scalar_lea.vmem %s946_s23, 4096  ;;  %p948_p8 = scmp.lt.s32.totalorder %s1229_s4, %s946_s23 }
  0x45   : > { %p943_p5 = pnand %p941_p9, %p897_p2  ;;  %p949_p1 = scmp.lt.s32.totalorder %s947_s30, %s940_s18 }
  0x47   : > { %p944_p10 = pneg %p943_p5  ;;  %p950_p3 = por %p949_p1, %p948_p8 }
  0x49   : > { %p951_p4 = pnand %p950_p3, %p944_p10 }
  0x4b   : > { %954 = shalt.err (!%p951_p4)
}
  0x4c   : > { %s1079_s8 = smov 64   ;;  %s1080_s10 = smov 4  }
  0x4d   : > { %809 = dma.hbm_to_vmem [thread:$0]  (!%p1182_p13), %s1227_s29, 2048, %s1229_s4, %s191_s6, %s1079_s8, %s1079_s8, %s1080_s10  }
  0x4e   : > { %213 = sbr.rel (%p1220_p11) target bundleno = 386 (0x182), region = 28  ;;  %s1260_s5 = sand.u32 (!%p1220_p11), 1, %s1057_s13  }
  0x4f   : > { %s709_s7 = sshll.u32 (!%p1220_p11), %s1260_s5, 5  ;;  %s216_s11 = scalar_lea.sflag (!%p1220_p11), [#allocation3], %s1260_s5 }
  0x50   : > { %s1264_s19 = scalar_lea.vmem (!%p1220_p11), [#allocation2], %s709_s7  ;;  %p1409_p8 = scmp.ne.s32.totalorder (!%p1220_p11), %s1403_s24, 0 }
  0x55   : > { %1036 = dma.done.wait (%p1409_p8), %s216_s11, 512  }
  0x56   : > { %1038 = vsyncadd (%p1409_p8), %s216_s11, 4294966784  ;;  %s710_s28 = sshll.u32 %s1260_s5, 7  ;;  %s225_s9 = scalar_lea.sflag [#allocation6], %s1260_s5 }
  0x57   : > { %s1272_s21 = scalar_lea.vmem [#allocation5], %s710_s28 }
  0x58   : > { %1040 = dma.done.wait (%p1409_p8), %s225_s9, 2048  }
  0x59   : > { %1042 = vsyncadd (%p1409_p8), %s225_s9, 4294965248  ;;  %v873_v0 = vld [vmem:[%s1272_s21 + $0x40] sm:$0xff]   ;;  %v875_v2 = vld [vmem:[%s1272_s21 + $0x48] sm:$0xff]   ;;  %s711_s24 = sshll.u32 %s1260_s5, 4  ;;  %vm481_vm0 = vcmask 257024   ;;  %vm486_vm1 = vcmask 261120  }
  0x5a   : > { %v874_v1 = vld [vmem:[%s1272_s21] sm:$0xff]   ;;  %751 = vmatprep.subr.bf16.mxu0 %v873_v0  ;;  %779 = vmatprep.subr.bf16.mxu1 %v873_v0  ;;  %v876_v3 = vld [vmem:[%s1272_s21 + $0x8] sm:$0xff]   ;;  %v877_v4 = vld [vmem:[%s1272_s21 + $0x50] sm:$0xff]   ;;  %s750_s29 = sshll.u32 %s1065_s15, 8  ;;  %s253_s4 = scalar_lea.vmem [#allocation7], %s711_s24 }
  0x5b   : > { %752 = vmatpush3.bf16.msra.mxu0 %v874_v1  ;;  %787 = vmatpush3.bf16.msra.mxu1 %v874_v1  ;;  %v878_v5 = vld [vmem:[%s1272_s21 + $0x10] sm:$0xff]   ;;  %v879_v6 = vld [vmem:[%s1272_s21 + $0x58] sm:$0xff]   ;;  %v881_v8 = vld [vmem:[%s1272_s21 + $0x60] sm:$0xff]   ;;  %s541_s6 = sshll.u32 %s253_s4, 4  ;;  %s1308_s23 = scalar_lea.hbm %s1398_s2, %s750_s29  ;;  %s1310_s6 = int_to_ptr.vmem [resolvable:$true] %s541_s6 }
  0x5c   : > { %753 = vmatprep.subr.bf16.mxu0 %v875_v2  ;;  %780 = vmatprep.subr.bf16.mxu1 %v875_v2  ;;  %v880_v7 = vld [vmem:[%s1272_s21 + $0x18] sm:$0xff]   ;;  %v882_v9 = vld [vmem:[%s1272_s21 + $0x20] sm:$0xff]   ;;  %v883_v10 = vld [vmem:[%s1272_s21 + $0x68] sm:$0xff]   ;;  %s521_s30 = scalar_lea.sflag [#allocation4], %s1260_s5  ;;  %s955_s8 = scalar_lea.vmem %s1310_s6, 256 }
  0x5d   : > { %v891_v11 = vld [vmem:[%s1264_s19 + $0x4] ss:$8 sps:$4 sm:$0xff]   ;;  %v894_v12 = vld [vmem:[%s1264_s19 + $0x14] ss:$8 sps:$4 sm:$0xff]   ;;  %v889_v18 = vld [vmem:[%s1264_s19] ss:$8 sps:$4 sm:$0xff]   ;;  %p956_p13 = scmp.ne.s32.totalorder %s1310_s6, %s955_s8 }
  0x5e   : > { %v884_v13 = vld [vmem:[%s1272_s21 + $0x28] sm:$0xff]   ;;  %v885_v14 = vld [vmem:[%s1272_s21 + $0x70] sm:$0xff]   ;;  %448 = vmatprep.mubr.bf16.mxu0 %v891_v11  ;;  %456 = vmatprep.mubr.bf16.mxu1 %v894_v12  ;;  %v887_v16 = vld [vmem:[%s1272_s21 + $0x78] sm:$0xff]   ;;  %p1410_p2 = scmp.ne.s32.totalorder %s1404_s25, 0  ;;  %s1081_s10 = smov [#allocation7]  }
  0x5f   : > { %754 = vmatpush3.bf16.msra.mxu0 %v876_v3  ;;  %788 = vmatpush3.bf16.msra.mxu1 %v876_v3  ;;  %v886_v15 = vld [vmem:[%s1272_s21 + $0x30] sm:$0xff]   ;;  %v888_v17 = vld [vmem:[%s1272_s21 + $0x38] sm:$0xff]   ;;  %s959_s7 = sshll.u32 %s1081_s10, 4  ;;  %s960_s7 = int_to_ptr.vmem [resolvable:$false] %s959_s7 }
  0x60   : > { %755 = vmatprep.subr.bf16.mxu0 %v877_v4  ;;  %781 = vmatprep.subr.bf16.mxu1 %v877_v4  ;;  %v892_v19 = vld [vmem:[%s1264_s19 + $0x10] ss:$8 sps:$4 sm:$0xff]   ;;  %p957_p11 = pnand %p956_p13, %p1410_p2  ;;  %s961_s11 = scalar_lea.vmem %s960_s7, 512 }
  0x61   : > { %p962_p6 = scmp.lt.s32.totalorder %s1310_s6, %s960_s7  ;;  %p963_p7 = scmp.lt.s32.totalorder %s961_s11, %s955_s8 }
  0x62   : > { %p958_p12 = pneg %p957_p11 }
  0x63   : > { %756 = vmatpush3.bf16.msra.mxu0 %v878_v5  ;;  %789 = vmatpush3.bf16.msra.mxu1 %v878_v5  ;;  %p964_p0 = por %p963_p7, %p962_p6 }
  0x64   : > { %757 = vmatprep.subr.bf16.mxu0 %v879_v6  ;;  %782 = vmatprep.subr.bf16.mxu1 %v879_v6 }
  0x65   : > { %p965_p9 = pnand %p964_p0, %p958_p12 }
  0x67   : > { %758 = vmatpush3.bf16.msra.mxu0 %v880_v7  ;;  %790 = vmatpush3.bf16.msra.mxu1 %v880_v7 }
  0x68   : > { %759 = vmatprep.subr.bf16.mxu0 %v881_v8  ;;  %783 = vmatprep.subr.bf16.mxu1 %v881_v8 }
  0x6b   : > { %760 = vmatpush3.bf16.msra.mxu0 %v882_v9  ;;  %791 = vmatpush3.bf16.msra.mxu1 %v882_v9 }
  0x6c   : > { %761 = vmatprep.subr.bf16.mxu0 %v883_v10  ;;  %784 = vmatprep.subr.bf16.mxu1 %v883_v10 }
  0x6f   : > { %762 = vmatpush3.bf16.msra.mxu0 %v884_v13  ;;  %792 = vmatpush3.bf16.msra.mxu1 %v884_v13 }
  0x70   : > { %763 = vmatprep.subr.bf16.mxu0 %v885_v14  ;;  %785 = vmatprep.subr.bf16.mxu1 %v885_v14 }
  0x73   : > { %764 = vmatpush3.bf16.msra.mxu0 %v886_v15  ;;  %793 = vmatpush3.bf16.msra.mxu1 %v886_v15 }
  0x74   : > { %765 = vmatprep.subr.bf16.mxu0 %v887_v16  ;;  %786 = vmatprep.subr.bf16.mxu1 %v887_v16 }
  0x77   : > { %766 = vmatpush3.bf16.msra.mxu0 %v888_v17  ;;  %794 = vmatpush3.bf16.msra.mxu1 %v888_v17 }
  0x7a   : > { %449 = vmatmul.mubr.bf16.vlgmr.msra.gmra.mrb[0].mxu0 %v889_v18  ;;  %457 = vmatmul.mubr.bf16.vlgmr.msra.gmra.mrb[0].mxu1 %v892_v19 }
 0x14d   : > { %v767_v20 = vpop.f32.mrb[0].mxu0  ;;  %v773_v21 = vpop.f32.mrb[0].mxu1 }
 0x14e   : > { %v768_v22 = vpop.f32.mrb[1].mxu0  ;;  %v774_v23 = vpop.f32.mrb[1].mxu1 }
 0x14f   : > { %v769_v24 = vadd.f32 %v768_v22, %v767_v20  ;;  %v770_v25 = vpop.f32.mrb[2].mxu0  ;;  %v775_v26 = vadd.f32 %v774_v23, %v773_v21  ;;  %v776_v27 = vpop.f32.mrb[2].mxu1 }
 0x150   : > { %v771_v28 = vpop.f32.mrb[3].mxu0  ;;  %v777_v29 = vpop.f32.mrb[3].mxu1 }
 0x151   : > { %v746_v30 = vpack.c.bf16 %v769_v24, %v769_v24  ;;  %v748_v31 = vpack.c.bf16 %v775_v26, %v775_v26  ;;  %v502_v32 = vmul.f32 %v769_v24, %v769_v24  ;;  %v504_v33 = vmul.f32 %v775_v26, %v775_v26 }
 0x152   : > { %v772_v34 = vadd.f32 %v771_v28, %v770_v25  ;;  %v778_v35 = vadd.f32 %v777_v29, %v776_v27  ;;  %v487_v36 = vsel %vm486_vm1, %v769_v24, 0.0  ;;  %v490_v37 = vsel %vm486_vm1, %v775_v26, 0.0 }
 0x153   : > { %482 = vst.msk [vmem:[%s253_s4] sm:$0xf] %vm481_vm0, %v746_v30  ;;  %484 = vst.msk [vmem:[%s253_s4 + $0x8] sm:$0xf] %vm481_vm0, %v748_v31  ;;  %v506_v43 = vsel %vm486_vm1, %v502_v32, 0.0  ;;  %v509_v44 = vsel %vm486_vm1, %v504_v33, 0.0 }
 0x154   : > { %v747_v38 = vpack.c.bf16 %v772_v34, %v772_v34  ;;  %v488_v39 = vsel %vm486_vm1, %v772_v34, 0.0  ;;  %v503_v40 = vmul.f32 %v772_v34, %v772_v34  ;;  %v749_v42 = vpack.c.bf16 %v778_v35, %v778_v35 }
 0x155   : > { %v489_v41 = vadd.f32 %v488_v39, %v487_v36  ;;  %v505_v46 = vmul.f32 %v778_v35, %v778_v35  ;;  %v492_v49 = vsel %vm486_vm1, %v778_v35, 0.0 }
 0x156   : > { %483 = vst.msk [vmem:[%s253_s4 + $0x4] sm:$0xf] %vm481_vm0, %v747_v38  ;;  %v507_v45 = vsel %vm486_vm1, %v503_v40, 0.0  ;;  %485 = vst.msk [vmem:[%s253_s4 + $0xc] sm:$0xf] %vm481_vm0, %v749_v42 }
 0x157   : > { %v508_v47 = vadd.f32 %v507_v45, %v506_v43  ;;  %v491_v48 = vadd.f32 %v490_v37, %v489_v41 }
 0x158   : > { %968 = shalt.err (!%p965_p9)
}
 0x159   : > { %s969_s19 = scalar_lea.hbm %s1308_s23, 256  ;;  %s973_s21 = scalar_lea.hbm %s1398_s2, 1024 }
 0x15a   : > { %p970_p5 = scmp.ne.s32.totalorder %s1308_s23, %s969_s19  ;;  %p974_p3 = scmp.lt.u32.totalorder %s1308_s23, %s1398_s2 }
 0x15b   : > { %p975_p4 = scmp.lt.u32.totalorder %s973_s21, %s969_s19  ;;  %p977_p13 = scmp.lt.u32.totalorder %s969_s19, %s1308_s23 }
 0x15c   : > { %p971_p10 = pnand %p970_p5, %p1410_p2 }
 0x15d   : > { %p976_p8 = por %p975_p4, %p974_p3 }
 0x15e   : > { %p972_p1 = pneg %p971_p10 }
 0x15f   : > { %p978_p11 = por %p977_p13, %p976_p8 }
 0x161   : > { %p979_p12 = pnand %p978_p11, %p972_p1 }
 0x163   : > { %982 = shalt.err (!%p979_p12)
}
 0x164   : > { %s1082_s4 = smov 64   ;;  %s1083_s18 = smov 4   ;;  %v493_v50 = vadd.f32 %v492_v49, %v491_v48  ;;  %v510_v51 = vadd.f32 %v509_v44, %v508_v47  ;;  %v511_v52 = vsel %vm486_vm1, %v505_v46, 0.0  ;;  %vm500_vm2 = vcmask 253952  }
 0x165   : > { %799 = dma.vmem_to_hbm [thread:$0]  (%p1410_p2), %s1310_s6, 256, %s1308_s23, %s521_s30, %s1082_s4, %s1082_s4, %s1083_s18  }
 0x166   : > { %v494_v53 = vrot.slane %v493_v50, 4  ;;  %v512_v54 = vadd.f32 %v511_v52, %v510_v51  ;;  %s712_s22 = sshll.u32 %s1260_s5, 3  ;;  %s741_s6 = sshll.u32 %s1065_s15, 7 }
 0x167   : > { %s260_s23 = scalar_lea.vmem [#allocation8], %s712_s22  ;;  %s1348_s7 = scalar_lea.hbm %s1399_s3, %s741_s6 }
 0x168   : > { %v495_v55 = vadd.f32 %v494_v53, %v493_v50  ;;  %v513_v56 = vrot.slane %v512_v54, 4  ;;  %s558_s30 = sshll.u32 %s260_s23, 4  ;;  %s526_s11 = scalar_lea.sflag [#allocation9], %s1260_s5  ;;  %s1350_s30 = int_to_ptr.vmem [resolvable:$true] %s558_s30 }
 0x169   : > { %s983_s19 = scalar_lea.vmem %s1350_s30, 128  ;;  %s1084_s15 = smov [#allocation8]  }
 0x16a   : > { %v496_v57 = vrot.slane %v495_v55, 2  ;;  %v514_v58 = vadd.f32 %v513_v56, %v512_v54  ;;  %p984_p6 = scmp.ne.s32.totalorder %s1350_s30, %s983_s19  ;;  %s987_s28 = sshll.u32 %s1084_s15, 4  ;;  %s988_s28 = int_to_ptr.vmem [resolvable:$false] %s987_s28 }
 0x16b   : > { %s989_s9 = scalar_lea.vmem %s988_s28, 256  ;;  %p990_p9 = scmp.lt.s32.totalorder %s1350_s30, %s988_s28 }
 0x16c   : > { %v497_v59 = vadd.f32 %v496_v57, %v495_v55  ;;  %v515_v60 = vrot.slane %v514_v58, 2  ;;  %p985_p7 = pnand %p984_p6, %p1410_p2  ;;  %p991_p5 = scmp.lt.s32.totalorder %s989_s9, %s983_s19 }
 0x16e   : > { %v498_v61 = vrot.slane %v497_v59, 1  ;;  %v516_v62 = vadd.f32 %v515_v60, %v514_v58  ;;  %p986_p0 = pneg %p985_p7  ;;  %p992_p10 = por %p991_p5, %p990_p9 }
 0x170   : > { %v499_v63 = vadd.f32 %v498_v61, %v497_v59  ;;  %v517_v0 = vrot.slane %v516_v62, 1  ;;  %p993_p1 = pnand %p992_p10, %p986_p0 }
 0x172   : > { %v518_v1 = vadd.f32 %v517_v0, %v516_v62  ;;  %501 = vst.msk [vmem:[%s260_s23] sm:$0x1] %vm500_vm2, %v499_v63 }
 0x174   : > { %519 = vst.msk [vmem:[%s260_s23 + $0x1] sm:$0x1] %vm500_vm2, %v518_v1 }
 0x175   : > { %996 = shalt.err (!%p993_p1)
}
 0x176   : > { %s997_s5 = scalar_lea.hbm %s1348_s7, 128  ;;  %s1001_s29 = scalar_lea.hbm %s1399_s3, 512 }
 0x177   : > { %p998_p3 = scmp.ne.s32.totalorder %s1348_s7, %s997_s5  ;;  %p1002_p13 = scmp.lt.u32.totalorder %s1348_s7, %s1399_s3 }
 0x178   : > { %p1003_p11 = scmp.lt.u32.totalorder %s1001_s29, %s997_s5  ;;  %p1005_p6 = scmp.lt.u32.totalorder %s997_s5, %s1348_s7 }
 0x179   : > { %p999_p4 = pnand %p998_p3, %p1410_p2 }
 0x17a   : > { %p1004_p12 = por %p1003_p11, %p1002_p13 }
 0x17b   : > { %p1000_p8 = pneg %p999_p4 }
 0x17c   : > { %p1006_p7 = por %p1005_p6, %p1004_p12 }
 0x17e   : > { %p1007_p0 = pnand %p1006_p7, %p1000_p8 }
 0x180   : > { %1010 = shalt.err (!%p1007_p0)
}
 0x181   : > { %800 = dma.vmem_to_hbm [thread:$0]  (%p1410_p2), %s1350_s30, 128, %s1348_s7, %s526_s11  }
 0x182 PF: > { %p818_p9 = scmp.ge.s32.totalorder %s1073_s17, 2  ;;  %s570_s22 = sand.u32 1, %s1053_s12  }
 0x183   : > { %p1411_p5 = scmp.ne.s32.totalorder %s1405_s27, 0  ;;  %s571_s6 = scalar_lea.sflag [#allocation4], %s570_s22 }
 0x185   : > { %p811_p10 = pnand %p818_p9, %p1411_p5 }
 0x187   : > { %1044 = dma.done.wait (!%p811_p10), %s571_s6, 256  }
 0x188   : > { %1046 = vsyncadd (!%p811_p10), %s571_s6, 4294967040  ;;  %s580_s23 = scalar_lea.sflag [#allocation9], %s570_s22 }
 0x189   : > { %1048 = dma.done.wait (!%p811_p10), %s580_s23, 128  }
 0x18a   : > { %1050 = vsyncadd (!%p811_p10), %s580_s23, 4294967168  ;;  %s26_s17 = sadd.s32 1, %s1073_s17   ;;  %s1412_s12 = smov %s1057_s13 }
 0x18b   : > { %p23_p1 = scmp.ge.s32.totalorder %s26_s17, 6   ;;  %s1413_s13 = smov %s1061_s14 }
 0x18c   : > { %s1414_s14 = smov %s1161_s26  ;;  %s1415_s15 = smov %s1069_s16 }
 0x18d   : > { %s1416_s16 = smov %s1418_s20  ;;  %25 = sbr.rel (!%p23_p1) target bundleno = 10 (0xa), region = 103 }
 0x194   :  { %585 = vsyncpa [#allocation3], 1 }
 0x195   :  { %587 = vsyncpa [#allocation3 + $0x1], 1 }
 0x196   :  { %588 = vsyncpa [#allocation6], 1 }
 0x197   :  { %590 = vsyncpa [#allocation6 + $0x1], 1 }
 0x198   :  { %591 = vsyncpa [#allocation4], 1 }
 0x199   :  { %593 = vsyncpa [#allocation4 + $0x1], 1 }
 0x19a   :  { %594 = vsyncpa [#allocation9], 1 }
 0x19b   :  { %596 = vsyncpa [#allocation9 + $0x1], 1 }

// kernel: a_call__.7
= control target key start
LH: loop header
LB: loop body
LE: loop exit
PB: predicated region body
PF: predicated region fallthrough
CT: control target
= control target key end

     0   :  { %9 = vsyncpa [#allocation3], 0  ;;  %s1691_s0 = inlined_call_operand.hbm [shape: bf16[4,128,128], index: 0, kind: input, shape index: {}]   ;;  %s1692_s1 = inlined_call_operand.hbm [shape: bf16[4,128,128], index: 1, kind: input, shape index: {}]   ;;  %s1693_s2 = inlined_call_operand.hbm [shape: bf16[4,128,16], index: 2, kind: output, shape index: {0}]   ;;  %s1694_s3 = inlined_call_operand.hbm [shape: f32[4,8,16], index: 3, kind: output, shape index: {1}]  }
   0x1   :  { %11 = vsyncpa [#allocation3 + $0x1], 0 }
   0x2   :  { %12 = vsyncpa [#allocation6], 0 }
   0x3   :  { %14 = vsyncpa [#allocation6 + $0x1], 0 }
   0x4   :  { %15 = vsyncpa [#allocation4], 0 }
   0x5   :  { %17 = vsyncpa [#allocation4 + $0x1], 0 }
   0x6   :  { %18 = vsyncpa [#allocation9], 0 }
   0x7   :  { %20 = vsyncpa [#allocation9 + $0x1], 0  ;;  %s1278_s12 = smov 0   ;;  %s1280_s13 = smov 0  }
   0x8   :  { %s1282_s14 = smov 0   ;;  %s1284_s15 = smov 0  }
   0x9   :  { %s1286_s16 = smov 0   ;;  %s1288_s17 = smov 0  }
   0xa LB: > { %s841_s18 = sadd.s32 4294967295, %s1248_s17   ;;  %s842_s19 = sadd.s32 4294967294, %s1248_s17   ;;  %s1248_s17 = sphi %s1288_s17, %s26_s17   ;;  %s1244_s16 = sphi %s1286_s16, %s1711_s16   ;;  %s1240_s15 = sphi %s1284_s15, %s1710_s15   ;;  %s1236_s14 = sphi %s1282_s14, %s1709_s14   ;;  %s1232_s13 = sphi %s1280_s13, %s1708_s13   ;;  %s1228_s12 = sphi %s1278_s12, %s1707_s12  }
   0xb   : > { %s38_s20 = sadd.s32 1, %s1244_s16  ;;  %s47_s21 = sadd.s32 1, %s1236_s14 }
   0xc   : > { %p40_p0 = scmp.ge.s32.totalorder %s38_s20, 4  ;;  %p54_p1 = scmp.ne.s32.totalorder %s1236_s14, %s1232_s13 }
   0xd   : > { %p55_p2 = scmp.eq.s32.totalorder %s1248_s17, 0  ;;  %p60_p3 = scmp.ne.s32.totalorder %s1232_s13, %s1228_s12 }
   0xe   : > { %s1713_s20 = smov (%p40_p0, %s38_s20), 0  ;;  %p61_p5 = scmp.eq.s32.totalorder %s841_s18, 0 }
   0xf   : > { %p1319_p4 = por %p55_p2, %p54_p1  ;;  %s42_s23 = ssub.s32 %s1244_s16, %s1713_s20 }
  0x10   : > { %p112_p6 = scmp.eq.s32.totalorder %s841_s18, 3  ;;  %p45_p7 = scmp.eq.s32.totalorder %s42_s23, 0 }
  0x11   : > { %p1325_p8 = por %p61_p5, %p60_p3  ;;  %p118_p10 = scmp.eq.s32.totalorder %s842_s19, 3 }
  0x12   : > { %p1329_p9 = por %p112_p6, %p54_p1  ;;  %p1000_p12 = scmp.lt.s32.totalorder %s1248_s17, 4 }
  0x13   : > { %s1698_s24 = scalar_select %p1325_p8, 1, 0 }
  0x14   : > { %s1699_s25 = scalar_select %p1329_p9, 1, 0 }
  0x15   : > { %s1334_s26 = scalar_select %p45_p7, %s1236_s14, %s47_s21  }
  0x16   : > { %p1336_p11 = por %p118_p10, %p60_p3  ;;  %s1342_s28 = sand.u32 1, %s1236_s14  }
  0x17   : > { %s845_s29 = sshll.u32 %s1342_s28, 6  ;;  %s895_s30 = sshll.u32 %s1244_s16, 10 }
  0x18   : > { %s1700_s27 = scalar_select %p1336_p11, 1, 0 }
  0x19   : > { %s1351_s6 = scalar_lea.hbm %s1691_s0, %s895_s30  ;;  %s170_s7 = scalar_lea.vmem [#allocation2], %s845_s29 }
  0x1a   : > { %s179_s8 = sshll.u32 %s170_s7, 4  ;;  %p1359_p13 = pnand %p1000_p12, %p1319_p4  ;;  %s1355_s8 = int_to_ptr.vmem [resolvable:$true] %s179_s8 }
  0x1b   : > { %s167_s10 = scalar_lea.sflag [#allocation3], %s1342_s28  ;;  %s1070_s11 = scalar_lea.hbm %s1351_s6, 1024 }
  0x1c   : > { %p1071_p1 = scmp.ne.s32.totalorder %s1351_s6, %s1070_s11  ;;  %p1072_p2 = pneg %p1359_p13 }
  0x1d   : > { %s1075_s21 = scalar_lea.hbm %s1691_s0, 4096  ;;  %p1076_p4 = scmp.lt.u32.totalorder %s1351_s6, %s1691_s0 }
  0x1e   : > { %p1073_p3 = pnand %p1072_p2, %p1071_p1  ;;  %p1077_p6 = scmp.lt.u32.totalorder %s1075_s21, %s1070_s11 }
  0x1f   : > { %p1079_p10 = scmp.lt.u32.totalorder %s1070_s11, %s1351_s6 }
  0x20   : > { %p1074_p5 = pneg %p1073_p3  ;;  %p1078_p7 = por %p1077_p6, %p1076_p4 }
  0x22   : > { %p1080_p12 = por %p1079_p10, %p1078_p7 }
  0x24   : > { %p1081_p0 = pnand %p1080_p12, %p1074_p5 }
  0x26   : > { %1084 = shalt.err (!%p1081_p0)
}
  0x27   : > { %s1085_s4 = scalar_lea.vmem %s1355_s8, 1024  ;;  %s1250_s5 = smov [#allocation2]  }
  0x28   : > { %p1086_p1 = scmp.ne.s32.totalorder %s1355_s8, %s1085_s4  ;;  %s1090_s7 = sshll.u32 %s1250_s5, 4  ;;  %s1091_s7 = int_to_ptr.vmem [resolvable:$false] %s1090_s7 }
  0x29   : > { %s1092_s18 = scalar_lea.vmem %s1091_s7, 2048  ;;  %p1093_p9 = scmp.lt.s32.totalorder %s1355_s8, %s1091_s7 }
  0x2a   : > { %p1088_p3 = pnand %p1086_p1, %p1072_p2  ;;  %p1094_p4 = scmp.lt.s32.totalorder %s1092_s18, %s1085_s4 }
  0x2c   : > { %p1089_p11 = pneg %p1088_p3  ;;  %p1095_p6 = por %p1094_p4, %p1093_p9 }
  0x2e   : > { %p1096_p7 = pnand %p1095_p6, %p1089_p11 }
  0x30   : > { %1099 = shalt.err (!%p1096_p7)
}
  0x31   : > { %s1251_s11 = smov 64   ;;  %s1252_s19 = smov 4  }
  0x32   : > { %989 = dma.hbm_to_vmem [thread:$0]  (!%p1359_p13), %s1351_s6, 1024, %s1355_s8, %s167_s10, %s1251_s11, %s1251_s11, %s1252_s19  }
  0x33   : > { %p208_p9 = scmp.lt.s32.totalorder %s1248_s17, 5  ;;  %s1401_s23 = scalar_lea.hbm %s1692_s1, %s895_s30 }
  0x34   : > { %p1702_p11 = scmp.ge.s32.totalorder %s1248_s17, 1  ;;  %s193_s5 = scalar_lea.vmem [#allocation5], %s845_s29 }
  0x35   : > { %s200_s7 = sshll.u32 %s193_s5, 4  ;;  %s190_s6 = scalar_lea.sflag [#allocation6], %s1342_s28  ;;  %s1411_s7 = int_to_ptr.vmem [resolvable:$true] %s200_s7 }
  0x36   : > { %p1405_p0 = pnand %p1702_p11, %p208_p9  ;;  %s1100_s8 = scalar_lea.hbm %s1401_s23, 1024 }
  0x37   : > { %p1101_p5 = scmp.ne.s32.totalorder %s1401_s23, %s1100_s8  ;;  %s1105_s18 = scalar_lea.hbm %s1692_s1, 4096 }
  0x38   : > { %p1106_p1 = scmp.lt.u32.totalorder %s1401_s23, %s1692_s1  ;;  %p1107_p3 = scmp.lt.u32.totalorder %s1105_s18, %s1100_s8 }
  0x39   : > { %p1103_p10 = pnand %p1101_p5, %p1072_p2  ;;  %p1109_p6 = scmp.lt.u32.totalorder %s1100_s8, %s1401_s23 }
  0x3a   : > { %p1108_p4 = por %p1107_p3, %p1106_p1 }
  0x3b   : > { %p1104_p12 = pneg %p1103_p10 }
  0x3c   : > { %p1110_p7 = por %p1109_p6, %p1108_p4 }
  0x3e   : > { %p1111_p9 = pnand %p1110_p7, %p1104_p12 }
  0x40   : > { %1114 = shalt.err (!%p1111_p9)
}
  0x41   : > { %s1115_s29 = scalar_lea.vmem %s1411_s7, 1024  ;;  %s1253_s5 = smov [#allocation5]  }
  0x42   : > { %p1116_p11 = scmp.ne.s32.totalorder %s1411_s7, %s1115_s29  ;;  %s1120_s30 = sshll.u32 %s1253_s5, 4  ;;  %s1121_s30 = int_to_ptr.vmem [resolvable:$false] %s1120_s30 }
  0x43   : > { %s1122_s10 = scalar_lea.vmem %s1121_s30, 2048  ;;  %p1123_p8 = scmp.lt.s32.totalorder %s1411_s7, %s1121_s30 }
  0x44   : > { %p1118_p5 = pnand %p1116_p11, %p1072_p2  ;;  %p1124_p1 = scmp.lt.s32.totalorder %s1122_s10, %s1115_s29 }
  0x46   : > { %p1119_p10 = pneg %p1118_p5  ;;  %p1125_p3 = por %p1124_p1, %p1123_p8 }
  0x48   : > { %p1126_p4 = pnand %p1125_p3, %p1119_p10 }
  0x4a   : > { %1129 = shalt.err (!%p1126_p4)
}
  0x4b   : > { %992 = dma.hbm_to_vmem [thread:$0]  (!%p1359_p13), %s1401_s23, 1024, %s1411_s7, %s190_s6, %s1251_s11, %s1251_s11, %s1252_s19  }
  0x4c   : > { %212 = sbr.rel (%p1405_p0) target bundleno = 404 (0x194), region = 28  ;;  %s1445_s8 = sand.u32 (!%p1405_p0), 1, %s1232_s13  }
  0x4d   : > { %s1448_s18 = sshll.u32 (!%p1405_p0), %s1445_s8, 6  ;;  %s215_s9 = scalar_lea.sflag (!%p1405_p0), [#allocation3], %s1445_s8 }
  0x4e   : > { %s1452_s21 = scalar_lea.vmem (!%p1405_p0), [#allocation2], %s1448_s18  ;;  %p1704_p8 = scmp.ne.s32.totalorder (!%p1405_p0), %s1698_s24, 0 }
  0x53   : > { %1211 = dma.done.wait (%p1704_p8), %s215_s9, 1024  }
  0x54   : > { %1213 = vsyncadd (%p1704_p8), %s215_s9, 4294966272  ;;  %s224_s28 = scalar_lea.sflag [#allocation6], %s1445_s8  ;;  %s1460_s11 = scalar_lea.vmem [#allocation5], %s1448_s18 }
  0x55   : > { %1215 = dma.done.wait (%p1704_p8), %s224_s28, 1024  }
  0x56   : > { %1217 = vsyncadd (%p1704_p8), %s224_s28, 4294966272  ;;  %v1054_v0 = vld [vmem:[%s1460_s11] sm:$0xff]   ;;  %v1055_v1 = vld [vmem:[%s1460_s11 + $0x8] sm:$0xff]   ;;  %vm552_vm0 = vcmask 125952   ;;  %vm569_vm1 = vcmask 130048   ;;  %s1491_s24 = scalar_lea.vmem [#allocation7], %s1448_s18 }
  0x57   : > { %930 = vmatprep.subr.bf16.mxu0 %v1054_v0  ;;  %962 = vmatprep.subr.bf16.mxu1 %v1054_v0  ;;  %v1056_v2 = vld [vmem:[%s1460_s11 + $0x10] sm:$0xff]   ;;  %v1057_v3 = vld [vmem:[%s1460_s11 + $0x18] sm:$0xff]   ;;  %v1062_v4 = vld [vmem:[%s1452_s21] sm:$0xff]   ;;  %s913_s19 = sshll.u32 %s1240_s15, 10  ;;  %s684_s23 = sshll.u32 %s1491_s24, 4  ;;  %s1569_s23 = int_to_ptr.vmem [resolvable:$true] %s684_s23 }
  0x58   : > { %931 = vmatpush3.bf16.msra.mxu0 %v1054_v0  ;;  %970 = vmatpush3.bf16.msra.mxu1 %v1054_v0  ;;  %v1058_v5 = vld [vmem:[%s1460_s11 + $0x20] sm:$0xff]   ;;  %v1059_v7 = vld [vmem:[%s1460_s11 + $0x28] sm:$0xff]   ;;  %v1060_v8 = vld [vmem:[%s1460_s11 + $0x30] sm:$0xff]   ;;  %s1567_s6 = scalar_lea.hbm %s1693_s2, %s913_s19  ;;  %s664_s22 = scalar_lea.sflag [#allocation4], %s1445_s8 }
  0x59   : > { %932 = vmatprep.subr.bf16.mxu0 %v1055_v1  ;;  %963 = vmatprep.subr.bf16.mxu1 %v1055_v1  ;;  %v1066_v6 = vld [vmem:[%s1452_s21 + $0x20] sm:$0xff]   ;;  %v1061_v9 = vld [vmem:[%s1460_s11 + $0x38] sm:$0xff]   ;;  %v1063_v10 = vld [vmem:[%s1452_s21 + $0x8] sm:$0xff]   ;;  %s1130_s29 = scalar_lea.vmem %s1569_s23, 1024  ;;  %p1705_p2 = scmp.ne.s32.totalorder %s1699_s25, 0 }
  0x5a   : > { %946 = vmatprep.mubr.bf16.mxu0 %v1062_v4  ;;  %954 = vmatprep.mubr.bf16.mxu1 %v1066_v6  ;;  %v1067_v11 = vld [vmem:[%s1452_s21 + $0x28] sm:$0xff]   ;;  %v1064_v12 = vld [vmem:[%s1452_s21 + $0x10] sm:$0xff]   ;;  %v1065_v14 = vld [vmem:[%s1452_s21 + $0x18] sm:$0xff]   ;;  %p1131_p13 = scmp.ne.s32.totalorder %s1569_s23, %s1130_s29  ;;  %s1254_s5 = smov [#allocation7]  }
  0x5b   : > { %v1068_v13 = vld [vmem:[%s1452_s21 + $0x30] sm:$0xff]   ;;  %v1069_v15 = vld [vmem:[%s1452_s21 + $0x38] sm:$0xff]   ;;  %s1134_s30 = sshll.u32 %s1254_s5, 4  ;;  %s1135_s30 = int_to_ptr.vmem [resolvable:$false] %s1134_s30 }
  0x5c   : > { %933 = vmatpush3.bf16.msra.mxu0 %v1055_v1  ;;  %971 = vmatpush3.bf16.msra.mxu1 %v1055_v1  ;;  %p1132_p0 = pnand %p1131_p13, %p1705_p2  ;;  %s1136_s10 = scalar_lea.vmem %s1135_s30, 2048 }
  0x5d   : > { %934 = vmatprep.subr.bf16.mxu0 %v1056_v2  ;;  %964 = vmatprep.subr.bf16.mxu1 %v1056_v2  ;;  %p1137_p6 = scmp.lt.s32.totalorder %s1569_s23, %s1135_s30  ;;  %p1138_p7 = scmp.lt.s32.totalorder %s1136_s10, %s1130_s29 }
  0x5e   : > { %p1133_p12 = pneg %p1132_p0 }
  0x5f   : > { %p1139_p9 = por %p1138_p7, %p1137_p6 }
  0x60   : > { %935 = vmatpush3.bf16.msra.mxu0 %v1056_v2  ;;  %972 = vmatpush3.bf16.msra.mxu1 %v1056_v2 }
  0x61   : > { %936 = vmatprep.subr.bf16.mxu0 %v1057_v3  ;;  %965 = vmatprep.subr.bf16.mxu1 %v1057_v3  ;;  %p1140_p11 = pnand %p1139_p9, %p1133_p12 }
  0x64   : > { %937 = vmatpush3.bf16.msra.mxu0 %v1057_v3  ;;  %973 = vmatpush3.bf16.msra.mxu1 %v1057_v3 }
  0x65   : > { %938 = vmatprep.subr.bf16.mxu0 %v1058_v5  ;;  %966 = vmatprep.subr.bf16.mxu1 %v1058_v5 }
  0x68   : > { %939 = vmatpush3.bf16.msra.mxu0 %v1058_v5  ;;  %974 = vmatpush3.bf16.msra.mxu1 %v1058_v5 }
  0x69   : > { %940 = vmatprep.subr.bf16.mxu0 %v1059_v7  ;;  %967 = vmatprep.subr.bf16.mxu1 %v1059_v7 }
  0x6c   : > { %941 = vmatpush3.bf16.msra.mxu0 %v1059_v7  ;;  %975 = vmatpush3.bf16.msra.mxu1 %v1059_v7 }
  0x6d   : > { %942 = vmatprep.subr.bf16.mxu0 %v1060_v8  ;;  %968 = vmatprep.subr.bf16.mxu1 %v1060_v8 }
  0x70   : > { %943 = vmatpush3.bf16.msra.mxu0 %v1060_v8  ;;  %976 = vmatpush3.bf16.msra.mxu1 %v1060_v8 }
  0x71   : > { %944 = vmatprep.subr.bf16.mxu0 %v1061_v9  ;;  %969 = vmatprep.subr.bf16.mxu1 %v1061_v9 }
  0x74   : > { %945 = vmatpush3.bf16.msra.mxu0 %v1061_v9  ;;  %977 = vmatpush3.bf16.msra.mxu1 %v1061_v9 }
  0x77   : > { %947 = vmatmul.mubr.bf16.vlgmr.msra.gmra.mrb[0].mxu0 %v1063_v10  ;;  %955 = vmatmul.mubr.bf16.vlgmr.msra.gmra.mrb[0].mxu1 %v1067_v11 }
  0x78   : > { %950 = vmatprep.mubr.bf16.mxu0 %v1064_v12  ;;  %958 = vmatprep.mubr.bf16.mxu1 %v1068_v13 }
  0x7f   : > { %951 = vmatmul.mubr.bf16.gmra.mrb[4].mxu0 %v1065_v14  ;;  %959 = vmatmul.mubr.bf16.gmra.mrb[4].mxu1 %v1069_v15 }
 0x14a   : > { %v948_v16 = vpop.f32.mrb[0].mxu0  ;;  %v1482_v17 = vpop.f32.mrb[0].mxu1 }
 0x14b   : > { %v899_v18 = vpack.c.bf16 %v948_v16, %v948_v16  ;;  %v425_v19 = vpop.f32.mrb[1].mxu0  ;;  %v907_v20 = vpack.c.bf16 %v1482_v17, %v1482_v17  ;;  %v1486_v21 = vpop.f32.mrb[1].mxu1  ;;  %v611_v26 = vmul.f32 %v948_v16, %v948_v16  ;;  %v573_v37 = vsel %vm569_vm1, %v948_v16, 0.0 }
 0x14c   : > { %v897_v22 = vpack.c.bf16 %v425_v19, %v425_v19  ;;  %v609_v23 = vmul.f32 %v425_v19, %v425_v19  ;;  %v949_v24 = vpop.f32.mrb[2].mxu0  ;;  %v1488_v25 = vpop.f32.mrb[2].mxu1  ;;  %v570_v30 = vsel %vm569_vm1, %v425_v19, 0.0  ;;  %v905_v36 = vpack.c.bf16 %v1486_v21, %v1486_v21 }
 0x14d   : > { %555 = vst.msk [vmem:[%s1491_s24 + $0x8] sm:$0xf] %vm552_vm0, %v899_v18  ;;  %v900_v27 = vpack.c.bf16 %v949_v24, %v949_v24  ;;  %v428_v28 = vpop.f32.mrb[3].mxu0  ;;  %563 = vst.msk [vmem:[%s1491_s24 + $0x28] sm:$0xf] %vm552_vm0, %v907_v20  ;;  %v1497_v29 = vpop.f32.mrb[3].mxu1  ;;  %v612_v34 = vmul.f32 %v949_v24, %v949_v24  ;;  %v908_v40 = vpack.c.bf16 %v1488_v25, %v1488_v25 }
 0x14e   : > { %553 = vst.msk [vmem:[%s1491_s24] sm:$0xf] %vm552_vm0, %v897_v22  ;;  %v898_v31 = vpack.c.bf16 %v428_v28, %v428_v28  ;;  %v571_v32 = vsel %vm569_vm1, %v428_v28, 0.0  ;;  %v610_v33 = vmul.f32 %v428_v28, %v428_v28  ;;  %v625_v38 = vsel %vm569_vm1, %v609_v23, 0.0  ;;  %561 = vst.msk [vmem:[%s1491_s24 + $0x20] sm:$0xf] %vm552_vm0, %v905_v36 }
 0x14f   : > { %556 = vst.msk [vmem:[%s1491_s24 + $0xc] sm:$0xf] %vm552_vm0, %v900_v27  ;;  %v572_v35 = vadd.f32 %v571_v32, %v570_v30  ;;  %v628_v43 = vsel %vm569_vm1, %v611_v26, 0.0  ;;  %564 = vst.msk [vmem:[%s1491_s24 + $0x2c] sm:$0xf] %vm552_vm0, %v908_v40  ;;  %v906_v45 = vpack.c.bf16 %v1497_v29, %v1497_v29  ;;  %v575_v47 = vsel %vm569_vm1, %v949_v24, 0.0 }
 0x150   : > { %554 = vst.msk [vmem:[%s1491_s24 + $0x4] sm:$0xf] %vm552_vm0, %v898_v31  ;;  %v626_v39 = vsel %vm569_vm1, %v610_v33, 0.0  ;;  %v630_v48 = vsel %vm569_vm1, %v612_v34, 0.0  ;;  %v617_v7 = vmul.f32 %v1486_v21, %v1486_v21  ;;  %v585_v18 = vsel %vm569_vm1, %v1486_v21, 0.0 }
 0x151   : > { %v574_v41 = vadd.f32 %v573_v37, %v572_v35  ;;  %v627_v42 = vadd.f32 %v626_v39, %v625_v38  ;;  %562 = vst.msk [vmem:[%s1491_s24 + $0x24] sm:$0xf] %vm552_vm0, %v906_v45  ;;  %v618_v26 = vmul.f32 %v1497_v29, %v1497_v29  ;;  %v619_v30 = vmul.f32 %v1482_v17, %v1482_v17 }
 0x152   : > { %v952_v44 = vpop.f32.mrb[4].mxu0  ;;  %v1521_v46 = vpop.f32.mrb[4].mxu1  ;;  %v640_v24 = vsel %vm569_vm1, %v617_v7, 0.0  ;;  %v587_v31 = vsel %vm569_vm1, %v1497_v29, 0.0 }
 0x153   : > { %v629_v49 = vadd.f32 %v628_v43, %v627_v42  ;;  %v903_v50 = vpack.c.bf16 %v952_v44, %v952_v44  ;;  %v441_v51 = vpop.f32.mrb[5].mxu0  ;;  %v1525_v52 = vpop.f32.mrb[5].mxu1  ;;  %v576_v54 = vadd.f32 %v575_v47, %v574_v41  ;;  %v615_v2 = vmul.f32 %v952_v44, %v952_v44 }
 0x154   : > { %v901_v53 = vpack.c.bf16 %v441_v51, %v441_v51  ;;  %v577_v55 = vsel %vm569_vm1, %v441_v51, 0.0  ;;  %v613_v56 = vmul.f32 %v441_v51, %v441_v51  ;;  %v953_v57 = vpop.f32.mrb[6].mxu0  ;;  %v1530_v58 = vpop.f32.mrb[6].mxu1  ;;  %v911_v8 = vpack.c.bf16 %v1521_v46, %v1521_v46 }
 0x155   : > { %559 = vst.msk [vmem:[%s1491_s24 + $0x18] sm:$0xf] %vm552_vm0, %v903_v50  ;;  %v631_v59 = vadd.f32 %v630_v48, %v629_v49  ;;  %v904_v60 = vpack.c.bf16 %v953_v57, %v953_v57  ;;  %v444_v61 = vpop.f32.mrb[7].mxu0  ;;  %v1534_v62 = vpop.f32.mrb[7].mxu1  ;;  %v578_v63 = vadd.f32 %v577_v55, %v576_v54  ;;  %v581_v9 = vsel %vm569_vm1, %v952_v44, 0.0 }
 0x156   : > { %557 = vst.msk [vmem:[%s1491_s24 + $0x10] sm:$0xf] %vm552_vm0, %v901_v53  ;;  %v632_v0 = vsel %vm569_vm1, %v613_v56, 0.0  ;;  %v902_v1 = vpack.c.bf16 %v444_v61, %v444_v61  ;;  %v579_v4 = vsel %vm569_vm1, %v444_v61, 0.0  ;;  %v614_v5 = vmul.f32 %v444_v61, %v444_v61  ;;  %567 = vst.msk [vmem:[%s1491_s24 + $0x38] sm:$0xf] %vm552_vm0, %v911_v8 }
 0x157   : > { %v633_v3 = vadd.f32 %v632_v0, %v631_v59  ;;  %560 = vst.msk [vmem:[%s1491_s24 + $0x1c] sm:$0xf] %vm552_vm0, %v904_v60  ;;  %v580_v6 = vadd.f32 %v579_v4, %v578_v63  ;;  %v616_v10 = vmul.f32 %v953_v57, %v953_v57  ;;  %v909_v12 = vpack.c.bf16 %v1525_v52, %v1525_v52 }
 0x158   : > { %558 = vst.msk [vmem:[%s1491_s24 + $0x14] sm:$0xf] %vm552_vm0, %v902_v1  ;;  %v634_v11 = vsel %vm569_vm1, %v614_v5, 0.0  ;;  %v636_v15 = vsel %vm569_vm1, %v615_v2, 0.0  ;;  %v583_v16 = vsel %vm569_vm1, %v953_v57, 0.0  ;;  %v912_v19 = vpack.c.bf16 %v1530_v58, %v1530_v58 }
 0x159   : > { %v582_v13 = vadd.f32 %v581_v9, %v580_v6  ;;  %v635_v14 = vadd.f32 %v634_v11, %v633_v3  ;;  %565 = vst.msk [vmem:[%s1491_s24 + $0x30] sm:$0xf] %vm552_vm0, %v909_v12  ;;  %v910_v21 = vpack.c.bf16 %v1534_v62, %v1534_v62  ;;  %v638_v23 = vsel %vm569_vm1, %v616_v10, 0.0 }
 0x15a   : > { %568 = vst.msk [vmem:[%s1491_s24 + $0x3c] sm:$0xf] %vm552_vm0, %v912_v19 }
 0x15b   : > { %v637_v20 = vadd.f32 %v636_v15, %v635_v14  ;;  %v584_v22 = vadd.f32 %v583_v16, %v582_v13  ;;  %566 = vst.msk [vmem:[%s1491_s24 + $0x34] sm:$0xf] %vm552_vm0, %v910_v21 }
 0x15d   : > { %v586_v27 = vadd.f32 %v585_v18, %v584_v22  ;;  %v639_v28 = vadd.f32 %v638_v23, %v637_v20 }
 0x15e   : > { %1143 = shalt.err (!%p1140_p11)
}
 0x15f   : > { %s1144_s18 = scalar_lea.hbm %s1567_s6, 1024  ;;  %s1148_s28 = scalar_lea.hbm %s1693_s2, 4096 }
 0x160   : > { %p1145_p5 = scmp.ne.s32.totalorder %s1567_s6, %s1144_s18  ;;  %p1149_p3 = scmp.lt.u32.totalorder %s1567_s6, %s1693_s2 }
 0x161   : > { %p1150_p4 = scmp.lt.u32.totalorder %s1148_s28, %s1144_s18  ;;  %p1152_p13 = scmp.lt.u32.totalorder %s1144_s18, %s1567_s6 }
 0x162   : > { %p1146_p10 = pnand %p1145_p5, %p1705_p2 }
 0x163   : > { %p1151_p8 = por %p1150_p4, %p1149_p3 }
 0x164   : > { %p1147_p1 = pneg %p1146_p10 }
 0x165   : > { %p1153_p0 = por %p1152_p13, %p1151_p8 }
 0x167   : > { %p1154_p12 = pnand %p1153_p0, %p1147_p1 }
 0x169   : > { %1157 = shalt.err (!%p1154_p12)
}
 0x16a   : > { %s1255_s19 = smov 64   ;;  %s1256_s4 = smov 4   ;;  %v641_v29 = vadd.f32 %v640_v24, %v639_v28  ;;  %v588_v32 = vadd.f32 %v587_v31, %v586_v27  ;;  %v589_v33 = vsel %vm569_vm1, %v1482_v17, 0.0  ;;  %v620_v34 = vmul.f32 %v1488_v25, %v1488_v25 }
 0x16b   : > { %982 = dma.vmem_to_hbm [thread:$0]  (%p1705_p2), %s1569_s23, 1024, %s1567_s6, %s664_s22, %s1255_s19, %s1255_s19, %s1256_s4   ;;  %v642_v35 = vsel %vm569_vm1, %v618_v26, 0.0  ;;  %v621_v36 = vmul.f32 %v1525_v52, %v1525_v52  ;;  %v644_v39 = vsel %vm569_vm1, %v619_v30, 0.0  ;;  %v591_v40 = vsel %vm569_vm1, %v1488_v25, 0.0 }
 0x16c   : > { %v590_v37 = vadd.f32 %v589_v33, %v588_v32  ;;  %v643_v38 = vadd.f32 %v642_v35, %v641_v29  ;;  %v593_v41 = vsel %vm569_vm1, %v1525_v52, 0.0  ;;  %v646_v43 = vsel %vm569_vm1, %v620_v34, 0.0  ;;  %s855_s23 = sshll.u32 %s1445_s8, 3  ;;  %s892_s7 = sshll.u32 %s1240_s15, 7 }
 0x16d   : > { %v648_v44 = vsel %vm569_vm1, %v621_v36, 0.0  ;;  %v622_v45 = vmul.f32 %v1534_v62, %v1534_v62  ;;  %v623_v49 = vmul.f32 %v1521_v46, %v1521_v46  ;;  %v595_v25 = vsel %vm569_vm1, %v1534_v62, 0.0  ;;  %s259_s6 = scalar_lea.vmem [#allocation8], %s855_s23  ;;  %s1643_s30 = scalar_lea.hbm %s1694_s3, %s892_s7 }
 0x16e   : > { %v645_v42 = vadd.f32 %v644_v39, %v643_v38  ;;  %v592_v17 = vadd.f32 %v591_v40, %v590_v37  ;;  %v597_v52 = vsel %vm569_vm1, %v1521_v46, 0.0  ;;  %v624_v53 = vmul.f32 %v1530_v58, %v1530_v58  ;;  %s701_s22 = sshll.u32 %s259_s6, 4  ;;  %s669_s10 = scalar_lea.sflag [#allocation9], %s1445_s8  ;;  %s1645_s22 = int_to_ptr.vmem [resolvable:$true] %s701_s22 }
 0x16f   : > { %v650_v54 = vsel %vm569_vm1, %v622_v45, 0.0  ;;  %v652_v57 = vsel %vm569_vm1, %v623_v49, 0.0  ;;  %v599_v59 = vsel %vm569_vm1, %v1530_v58, 0.0  ;;  %vm607_vm2 = vcmask 122880   ;;  %s1158_s18 = scalar_lea.vmem %s1645_s22, 128  ;;  %s1257_s15 = smov [#allocation8]  }
 0x170   : > { %v594_v47 = vadd.f32 %v593_v41, %v592_v17  ;;  %v647_v48 = vadd.f32 %v646_v43, %v645_v42  ;;  %v654_v62 = vsel %vm569_vm1, %v624_v53, 0.0  ;;  %p1159_p6 = scmp.ne.s32.totalorder %s1645_s22, %s1158_s18  ;;  %s1162_s9 = sshll.u32 %s1257_s15, 4  ;;  %s1163_s9 = int_to_ptr.vmem [resolvable:$false] %s1162_s9 }
 0x171   : > { %s1164_s21 = scalar_lea.vmem %s1163_s9, 256  ;;  %p1165_p11 = scmp.lt.s32.totalorder %s1645_s22, %s1163_s9 }
 0x172   : > { %v649_v50 = vadd.f32 %v648_v44, %v647_v48  ;;  %v596_v51 = vadd.f32 %v595_v25, %v594_v47  ;;  %p1160_p7 = pnand %p1159_p6, %p1705_p2  ;;  %p1166_p5 = scmp.lt.s32.totalorder %s1164_s21, %s1158_s18 }
 0x174   : > { %v598_v55 = vadd.f32 %v597_v52, %v596_v51  ;;  %v651_v56 = vadd.f32 %v650_v54, %v649_v50  ;;  %p1161_p9 = pneg %p1160_p7  ;;  %p1167_p10 = por %p1166_p5, %p1165_p11 }
 0x176   : > { %v600_v60 = vadd.f32 %v599_v59, %v598_v55  ;;  %v653_v61 = vadd.f32 %v652_v57, %v651_v56  ;;  %p1168_p1 = pnand %p1167_p10, %p1161_p9 }
 0x178   : > { %v601_v63 = vrot.slane %v600_v60, 4  ;;  %v655_v0 = vadd.f32 %v654_v62, %v653_v61 }
 0x17a   : > { %v602_v46 = vadd.f32 %v601_v63, %v600_v60  ;;  %v656_v1 = vrot.slane %v655_v0, 4 }
 0x17c   : > { %v603_v2 = vrot.slane %v602_v46, 2  ;;  %v657_v3 = vadd.f32 %v656_v1, %v655_v0 }
 0x17e   : > { %v604_v4 = vadd.f32 %v603_v2, %v602_v46  ;;  %v658_v5 = vrot.slane %v657_v3, 2 }
 0x180   : > { %v605_v6 = vrot.slane %v604_v4, 1  ;;  %v659_v7 = vadd.f32 %v658_v5, %v657_v3 }
 0x182   : > { %v606_v58 = vadd.f32 %v605_v6, %v604_v4  ;;  %v660_v8 = vrot.slane %v659_v7, 1 }
 0x184   : > { %v661_v9 = vadd.f32 %v660_v8, %v659_v7  ;;  %608 = vst.msk [vmem:[%s259_s6] sm:$0x1] %vm607_vm2, %v606_v58 }
 0x186   : > { %662 = vst.msk [vmem:[%s259_s6 + $0x1] sm:$0x1] %vm607_vm2, %v661_v9 }
 0x187   : > { %1171 = shalt.err (!%p1168_p1)
}
 0x188   : > { %s1172_s8 = scalar_lea.hbm %s1643_s30, 128  ;;  %s1176_s24 = scalar_lea.hbm %s1694_s3, 512 }
 0x189   : > { %p1173_p3 = scmp.ne.s32.totalorder %s1643_s30, %s1172_s8  ;;  %p1177_p13 = scmp.lt.u32.totalorder %s1643_s30, %s1694_s3 }
 0x18a   : > { %p1178_p0 = scmp.lt.u32.totalorder %s1176_s24, %s1172_s8  ;;  %p1180_p6 = scmp.lt.u32.totalorder %s1172_s8, %s1643_s30 }
 0x18b   : > { %p1174_p4 = pnand %p1173_p3, %p1705_p2 }
 0x18c   : > { %p1179_p12 = por %p1178_p0, %p1177_p13 }
 0x18d   : > { %p1175_p8 = pneg %p1174_p4 }
 0x18e   : > { %p1181_p7 = por %p1180_p6, %p1179_p12 }
 0x190   : > { %p1182_p9 = pnand %p1181_p7, %p1175_p8 }
 0x192   : > { %1185 = shalt.err (!%p1182_p9)
}
 0x193   : > { %983 = dma.vmem_to_hbm [thread:$0]  (%p1705_p2), %s1645_s22, 128, %s1643_s30, %s669_s10  }
 0x194 PF: > { %p1001_p11 = scmp.ge.s32.totalorder %s1248_s17, 2  ;;  %s713_s23 = sand.u32 1, %s1228_s12  }
 0x195   : > { %p1706_p5 = scmp.ne.s32.totalorder %s1700_s27, 0  ;;  %s714_s7 = scalar_lea.sflag [#allocation4], %s713_s23 }
 0x197   : > { %p994_p10 = pnand %p1001_p11, %p1706_p5 }
 0x199   : > { %1219 = dma.done.wait (!%p994_p10), %s714_s7, 1024  }
 0x19a   : > { %1221 = vsyncadd (!%p994_p10), %s714_s7, 4294966272  ;;  %s723_s6 = scalar_lea.sflag [#allocation9], %s713_s23 }
 0x19b   : > { %1223 = dma.done.wait (!%p994_p10), %s723_s6, 128  }
 0x19c   : > { %1225 = vsyncadd (!%p994_p10), %s723_s6, 4294967168  ;;  %s26_s17 = sadd.s32 1, %s1248_s17   ;;  %s1707_s12 = smov %s1232_s13 }
 0x19d   : > { %p23_p1 = scmp.ge.s32.totalorder %s26_s17, 6   ;;  %s1708_s13 = smov %s1236_s14 }
 0x19e   : > { %s1709_s14 = smov %s1334_s26  ;;  %s1710_s15 = smov %s1244_s16 }
 0x19f   : > { %s1711_s16 = smov %s1713_s20  ;;  %25 = sbr.rel (!%p23_p1) target bundleno = 10 (0xa), region = 103 }
 0x1a6   :  { %728 = vsyncpa [#allocation3], 1 }
 0x1a7   :  { %730 = vsyncpa [#allocation3 + $0x1], 1 }
 0x1a8   :  { %731 = vsyncpa [#allocation6], 1 }
 0x1a9   :  { %733 = vsyncpa [#allocation6 + $0x1], 1 }
 0x1aa   :  { %734 = vsyncpa [#allocation4], 1 }
 0x1ab   :  { %736 = vsyncpa [#allocation4 + $0x1], 1 }
 0x1ac   :  { %737 = vsyncpa [#allocation9], 1 }
 0x1ad   :  { %739 = vsyncpa [#allocation9 + $0x1], 1 }

// kernel: a_call__.8
= control target key start
LH: loop header
LB: loop body
LE: loop exit
PB: predicated region body
PF: predicated region fallthrough
CT: control target
= control target key end

     0   :  { %9 = vsyncpa [#allocation3], 0  ;;  %s3208_s0 = inlined_call_operand.hbm [shape: bf16[4,512,64], index: 0, kind: input, shape index: {}]   ;;  %s3209_s1 = inlined_call_operand.hbm [shape: bf16[4,64,128], index: 1, kind: input, shape index: {}]   ;;  %s3210_s2 = inlined_call_operand.hbm [shape: bf16[4,512,8], index: 2, kind: output, shape index: {0}]   ;;  %s3211_s3 = inlined_call_operand.hbm [shape: f32[4,8,8], index: 3, kind: output, shape index: {1}]  }
   0x1   :  { %11 = vsyncpa [#allocation3 + $0x1], 0 }
   0x2   :  { %12 = vsyncpa [#allocation6], 0 }
   0x3   :  { %14 = vsyncpa [#allocation6 + $0x1], 0 }
   0x4   :  { %15 = vsyncpa [#allocation4], 0 }
   0x5   :  { %17 = vsyncpa [#allocation4 + $0x1], 0 }
   0x6   :  { %18 = vsyncpa [#allocation9], 0 }
   0x7   :  { %20 = vsyncpa [#allocation9 + $0x1], 0  ;;  %s2395_s12 = smov 0   ;;  %s2397_s13 = smov 0  }
   0x8   :  { %s2399_s14 = smov 0   ;;  %s2401_s15 = smov 0  }
   0x9   :  { %s2403_s16 = smov 0   ;;  %s2405_s17 = smov 0  }
   0xa LB: > { %s1738_s18 = sadd.s32 4294967295, %s2365_s17   ;;  %s1739_s19 = sadd.s32 4294967294, %s2365_s17   ;;  %s2365_s17 = sphi %s2405_s17, %s26_s17   ;;  %s2361_s16 = sphi %s2403_s16, %s3228_s16   ;;  %s2357_s15 = sphi %s2401_s15, %s3227_s15   ;;  %s2353_s14 = sphi %s2399_s14, %s3226_s14   ;;  %s2349_s13 = sphi %s2397_s13, %s3225_s13   ;;  %s2345_s12 = sphi %s2395_s12, %s3224_s12  }
   0xb   : > { %s38_s20 = sadd.s32 1, %s2361_s16  ;;  %s47_s21 = sadd.s32 1, %s2353_s14 }
   0xc   : > { %p40_p0 = scmp.ge.s32.totalorder %s38_s20, 4  ;;  %p54_p1 = scmp.ne.s32.totalorder %s2353_s14, %s2349_s13 }
   0xd   : > { %p55_p2 = scmp.eq.s32.totalorder %s2365_s17, 0  ;;  %p60_p3 = scmp.ne.s32.totalorder %s2349_s13, %s2345_s12 }
   0xe   : > { %s3230_s20 = smov (%p40_p0, %s38_s20), 0  ;;  %p61_p5 = scmp.eq.s32.totalorder %s1738_s18, 0 }
   0xf   : > { %p2436_p4 = por %p55_p2, %p54_p1  ;;  %s42_s23 = ssub.s32 %s2361_s16, %s3230_s20 }
  0x10   : > { %p112_p6 = scmp.eq.s32.totalorder %s1738_s18, 3  ;;  %p45_p7 = scmp.eq.s32.totalorder %s42_s23, 0 }
  0x11   : > { %p2442_p8 = por %p61_p5, %p60_p3  ;;  %p118_p10 = scmp.eq.s32.totalorder %s1739_s19, 3 }
  0x12   : > { %p2446_p9 = por %p112_p6, %p54_p1  ;;  %p2097_p12 = scmp.lt.s32.totalorder %s2365_s17, 4 }
  0x13   : > { %s3215_s24 = scalar_select %p2442_p8, 1, 0 }
  0x14   : > { %s3216_s25 = scalar_select %p2446_p9, 1, 0 }
  0x15   : > { %s2451_s26 = scalar_select %p45_p7, %s2353_s14, %s47_s21  }
  0x16   : > { %p2453_p11 = por %p118_p10, %p60_p3  ;;  %s2459_s28 = sand.u32 1, %s2353_s14  }
  0x17   : > { %s1742_s29 = sshll.u32 %s2459_s28, 8  ;;  %s1892_s30 = sshll.u32 %s2361_s16, 12 }
  0x18   : > { %s3217_s27 = scalar_select %p2453_p11, 1, 0 }
  0x19   : > { %s2466_s6 = scalar_lea.hbm %s3208_s0, %s1892_s30  ;;  %s170_s7 = scalar_lea.vmem [#allocation2], %s1742_s29 }
  0x1a   : > { %s179_s8 = sshll.u32 %s170_s7, 4  ;;  %p2472_p13 = pnand %p2097_p12, %p2436_p4  ;;  %s2468_s8 = int_to_ptr.vmem [resolvable:$true] %s179_s8 }
  0x1b   : > { %s167_s10 = scalar_lea.sflag [#allocation3], %s2459_s28  ;;  %s2187_s11 = scalar_lea.hbm %s2466_s6, 4096 }
  0x1c   : > { %p2188_p1 = scmp.ne.s32.totalorder %s2466_s6, %s2187_s11  ;;  %p2189_p2 = pneg %p2472_p13 }
  0x1d   : > { %s2192_s21 = scalar_lea.hbm %s3208_s0, 16384  ;;  %p2193_p4 = scmp.lt.u32.totalorder %s2466_s6, %s3208_s0 }
  0x1e   : > { %p2190_p3 = pnand %p2189_p2, %p2188_p1  ;;  %p2194_p6 = scmp.lt.u32.totalorder %s2192_s21, %s2187_s11 }
  0x1f   : > { %p2196_p10 = scmp.lt.u32.totalorder %s2187_s11, %s2466_s6 }
  0x20   : > { %p2191_p5 = pneg %p2190_p3  ;;  %p2195_p7 = por %p2194_p6, %p2193_p4 }
  0x22   : > { %p2197_p12 = por %p2196_p10, %p2195_p7 }
  0x24   : > { %p2198_p0 = pnand %p2197_p12, %p2191_p5 }
  0x26   : > { %2201 = shalt.err (!%p2198_p0)
}
  0x27   : > { %s2202_s29 = scalar_lea.vmem %s2468_s8, 4096  ;;  %s2367_s30 = smov [#allocation2]  }
  0x28   : > { %p2203_p1 = scmp.ne.s32.totalorder %s2468_s8, %s2202_s29  ;;  %s2207_s4 = sshll.u32 %s2367_s30, 4  ;;  %s2208_s4 = int_to_ptr.vmem [resolvable:$false] %s2207_s4 }
  0x29   : > { %s2209_s5 = scalar_lea.vmem %s2208_s4, 8192  ;;  %p2210_p9 = scmp.lt.s32.totalorder %s2468_s8, %s2208_s4 }
  0x2a   : > { %p2205_p3 = pnand %p2203_p1, %p2189_p2  ;;  %p2211_p4 = scmp.lt.s32.totalorder %s2209_s5, %s2202_s29 }
  0x2c   : > { %p2206_p11 = pneg %p2205_p3  ;;  %p2212_p6 = por %p2211_p4, %p2210_p9 }
  0x2e   : > { %p2213_p7 = pnand %p2212_p6, %p2206_p11 }
  0x30   : > { %2216 = shalt.err (!%p2213_p7)
}
  0x31   : > { %s2368_s7 = smov 64   ;;  %s2369_s11 = smov 4  }
  0x32   : > { %2086 = dma.hbm_to_vmem [thread:$0]  (!%p2472_p13), %s2466_s6, 4096, %s2468_s8, %s167_s10, %s2368_s7, %s2368_s7, %s2369_s11  }
  0x33   : > { %p208_p9 = scmp.lt.s32.totalorder %s2365_s17, 5  ;;  %s1745_s18 = sshll.u32 %s2459_s28, 5 }
  0x34   : > { %s1893_s19 = sshll.u32 %s2361_s16, 9  ;;  %p3219_p11 = scmp.ge.s32.totalorder %s2365_s17, 1 }
  0x35   : > { %s2520_s29 = scalar_lea.hbm %s3209_s1, %s1893_s19  ;;  %s193_s30 = scalar_lea.vmem [#allocation5], %s1745_s18 }
  0x36   : > { %p2513_p0 = pnand %p3219_p11, %p208_p9  ;;  %s200_s4 = sshll.u32 %s193_s30, 4  ;;  %s2522_s4 = int_to_ptr.vmem [resolvable:$true] %s200_s4 }
  0x37   : > { %s190_s6 = scalar_lea.sflag [#allocation6], %s2459_s28  ;;  %s2217_s8 = scalar_lea.hbm %s2520_s29, 512 }
  0x38   : > { %p2218_p5 = scmp.ne.s32.totalorder %s2520_s29, %s2217_s8  ;;  %s2222_s19 = scalar_lea.hbm %s3209_s1, 2048 }
  0x39   : > { %p2223_p1 = scmp.lt.u32.totalorder %s2520_s29, %s3209_s1  ;;  %p2224_p3 = scmp.lt.u32.totalorder %s2222_s19, %s2217_s8 }
  0x3a   : > { %p2220_p10 = pnand %p2218_p5, %p2189_p2  ;;  %p2226_p6 = scmp.lt.u32.totalorder %s2217_s8, %s2520_s29 }
  0x3b   : > { %p2225_p4 = por %p2224_p3, %p2223_p1 }
  0x3c   : > { %p2221_p12 = pneg %p2220_p10 }
  0x3d   : > { %p2227_p7 = por %p2226_p6, %p2225_p4 }
  0x3f   : > { %p2228_p9 = pnand %p2227_p7, %p2221_p12 }
  0x41   : > { %2231 = shalt.err (!%p2228_p9)
}
  0x42   : > { %s2232_s18 = scalar_lea.vmem %s2522_s4, 512  ;;  %s2370_s30 = smov [#allocation5]  }
  0x43   : > { %p2233_p11 = scmp.ne.s32.totalorder %s2522_s4, %s2232_s18  ;;  %s2237_s10 = sshll.u32 %s2370_s30, 4  ;;  %s2238_s10 = int_to_ptr.vmem [resolvable:$false] %s2237_s10 }
  0x44   : > { %s2239_s5 = scalar_lea.vmem %s2238_s10, 1024  ;;  %p2240_p8 = scmp.lt.s32.totalorder %s2522_s4, %s2238_s10 }
  0x45   : > { %p2235_p5 = pnand %p2233_p11, %p2189_p2  ;;  %p2241_p1 = scmp.lt.s32.totalorder %s2239_s5, %s2232_s18 }
  0x47   : > { %p2236_p10 = pneg %p2235_p5  ;;  %p2242_p3 = por %p2241_p1, %p2240_p8 }
  0x49   : > { %p2243_p4 = pnand %p2242_p3, %p2236_p10 }
  0x4b   : > { %2246 = shalt.err (!%p2243_p4)
}
  0x4c   : > { %2089 = dma.hbm_to_vmem [thread:$0]  (!%p2472_p13), %s2520_s29, 512, %s2522_s4, %s190_s6, %s2368_s7, %s2368_s7, %s2369_s11  }
  0x4d   : > { %212 = sbr.rel (%p2513_p0) target bundleno = 487 (0x1e7), region = 28  ;;  %s2556_s8 = sand.u32 (!%p2513_p0), 1, %s2349_s13  }
  0x4e   : > { %s1749_s19 = sshll.u32 (!%p2513_p0), %s2556_s8, 8  ;;  %s215_s9 = scalar_lea.sflag (!%p2513_p0), [#allocation3], %s2556_s8 }
  0x4f   : > { %s2562_s22 = scalar_lea.vmem (!%p2513_p0), [#allocation2], %s1749_s19  ;;  %p3221_p8 = scmp.ne.s32.totalorder (!%p2513_p0), %s3215_s24, 0 }
  0x54   : > { %2328 = dma.done.wait (%p3221_p8), %s215_s9, 4096  }
  0x55   : > { %2330 = vsyncadd (%p3221_p8), %s215_s9, 4294963200  ;;  %s1750_s28 = sshll.u32 %s2556_s8, 5  ;;  %s224_s7 = scalar_lea.sflag [#allocation6], %s2556_s8 }
  0x56   : > { %s227_s11 = scalar_lea.vmem [#allocation5], %s1750_s28 }
  0x57   : > { %2332 = dma.done.wait (%p3221_p8), %s224_s7, 512  }
  0x58   : > { %2334 = vsyncadd (%p3221_p8), %s224_s7, 4294966784  ;;  %v2151_v0 = vld [vmem:[%s227_s11] sm:$0xff]   ;;  %v2152_v1 = vld [vmem:[%s227_s11 + $0x8] sm:$0xff]   ;;  %vm519_vm0 = vcmask 523264   ;;  %vm1161_vm1 = vcmask 60416   ;;  %vm1226_vm2 = vcmask 64512  }
  0x59   : > { %1995 = vmatprep.subr.bf16.mxu0 %v2151_v0  ;;  %2067 = vmatprep.subr.bf16.mxu1 %v2151_v0  ;;  %v2153_v2 = vld [vmem:[%s227_s11 + $0x10] sm:$0xff]   ;;  %v2155_v3 = vld [vmem:[%s2562_s22] sm:$0xff]   ;;  %v2154_v4 = vld [vmem:[%s227_s11 + $0x18] sm:$0xff]   ;;  %s2640_s24 = scalar_lea.vmem [#allocation7], %s1749_s19  ;;  %s1958_s21 = sshll.u32 %s2357_s15, 12 }
  0x5a   : > { %1996 = vmatpush3.bf16.msra.mxu0 %v2151_v0  ;;  %2071 = vmatpush3.bf16.msra.mxu1 %v2151_v0  ;;  %v2156_v5 = vld [vmem:[%s2562_s22 + $0x8] sm:$0xff]   ;;  %v2157_v6 = vld [vmem:[%s2562_s22 + $0x10] sm:$0xff]   ;;  %v2158_v7 = vld [vmem:[%s2562_s22 + $0x18] sm:$0xff]   ;;  %s1581_s29 = sshll.u32 %s2640_s24, 4  ;;  %s3002_s23 = scalar_lea.hbm %s3210_s2, %s1958_s21  ;;  %s3004_s29 = int_to_ptr.vmem [resolvable:$true] %s1581_s29 }
  0x5b   : > { %1997 = vmatprep.subr.bf16.mxu0 %v2152_v1  ;;  %2068 = vmatprep.subr.bf16.mxu1 %v2152_v1  ;;  %v2171_v8 = vld [vmem:[%s2562_s22 + $0x80] sm:$0xff]   ;;  %v2172_v9 = vld [vmem:[%s2562_s22 + $0x88] sm:$0xff]   ;;  %v2173_v10 = vld [vmem:[%s2562_s22 + $0x90] sm:$0xff]   ;;  %s1561_s18 = scalar_lea.sflag [#allocation4], %s2556_s8  ;;  %s2247_s30 = scalar_lea.vmem %s3004_s29, 4096 }
  0x5c   : > { %2003 = vmatprep.mubr.msk.bf16.mxu0 %vm519_vm0, %v2155_v3  ;;  %2035 = vmatprep.mubr.msk.bf16.mxu1 %vm519_vm0, %v2171_v8  ;;  %v2159_v11 = vld [vmem:[%s2562_s22 + $0x20] sm:$0xff]   ;;  %v2174_v12 = vld [vmem:[%s2562_s22 + $0x98] sm:$0xff]   ;;  %v2160_v14 = vld [vmem:[%s2562_s22 + $0x28] sm:$0xff]   ;;  %p2248_p13 = scmp.ne.s32.totalorder %s3004_s29, %s2247_s30  ;;  %p3222_p2 = scmp.ne.s32.totalorder %s3216_s25, 0 }
  0x5d   : > { %v2175_v13 = vld [vmem:[%s2562_s22 + $0xa0] sm:$0xff]   ;;  %v2161_v15 = vld [vmem:[%s2562_s22 + $0x30] sm:$0xff]   ;;  %v2176_v16 = vld [vmem:[%s2562_s22 + $0xa8] sm:$0xff]   ;;  %s2371_s10 = smov [#allocation7]  }
  0x5e   : > { %1998 = vmatpush3.bf16.msra.mxu0 %v2152_v1  ;;  %2072 = vmatpush3.bf16.msra.mxu1 %v2152_v1  ;;  %v2177_v17 = vld [vmem:[%s2562_s22 + $0xb0] sm:$0xff]   ;;  %v2162_v18 = vld [vmem:[%s2562_s22 + $0x38] sm:$0xff]   ;;  %v2163_v19 = vld [vmem:[%s2562_s22 + $0x40] sm:$0xff]   ;;  %p2249_p0 = pnand %p2248_p13, %p3222_p2  ;;  %s2251_s5 = sshll.u32 %s2371_s10, 4  ;;  %s2252_s5 = int_to_ptr.vmem [resolvable:$false] %s2251_s5 }
  0x5f   : > { %1999 = vmatprep.subr.bf16.mxu0 %v2153_v2  ;;  %2069 = vmatprep.subr.bf16.mxu1 %v2153_v2  ;;  %v2178_v20 = vld [vmem:[%s2562_s22 + $0xb8] sm:$0xff]   ;;  %v2179_v21 = vld [vmem:[%s2562_s22 + $0xc0] sm:$0xff]   ;;  %v2164_v22 = vld [vmem:[%s2562_s22 + $0x48] sm:$0xff]   ;;  %s2253_s19 = scalar_lea.vmem %s2252_s5, 8192  ;;  %p2254_p6 = scmp.lt.s32.totalorder %s3004_s29, %s2252_s5 }
  0x60   : > { %v2165_v23 = vld [vmem:[%s2562_s22 + $0x50] sm:$0xff]   ;;  %v2180_v24 = vld [vmem:[%s2562_s22 + $0xc8] sm:$0xff]   ;;  %v2166_v26 = vld [vmem:[%s2562_s22 + $0x58] sm:$0xff]   ;;  %p2250_p12 = pneg %p2249_p0  ;;  %p2255_p7 = scmp.lt.s32.totalorder %s2253_s19, %s2247_s30 }
  0x61   : > { %v2181_v25 = vld [vmem:[%s2562_s22 + $0xd0] sm:$0xff]   ;;  %v2167_v27 = vld [vmem:[%s2562_s22 + $0x60] sm:$0xff]   ;;  %v2182_v28 = vld [vmem:[%s2562_s22 + $0xd8] sm:$0xff]  }
  0x62   : > { %2000 = vmatpush3.bf16.msra.mxu0 %v2153_v2  ;;  %2073 = vmatpush3.bf16.msra.mxu1 %v2153_v2  ;;  %v2183_v29 = vld [vmem:[%s2562_s22 + $0xe0] sm:$0xff]   ;;  %v2168_v30 = vld [vmem:[%s2562_s22 + $0x68] sm:$0xff]   ;;  %v2169_v31 = vld [vmem:[%s2562_s22 + $0x70] sm:$0xff]   ;;  %p2256_p9 = por %p2255_p7, %p2254_p6 }
  0x63   : > { %2001 = vmatprep.subr.bf16.mxu0 %v2154_v4  ;;  %2070 = vmatprep.subr.bf16.mxu1 %v2154_v4  ;;  %v2184_v32 = vld [vmem:[%s2562_s22 + $0xe8] sm:$0xff]   ;;  %v2185_v33 = vld [vmem:[%s2562_s22 + $0xf0] sm:$0xff]   ;;  %v2170_v34 = vld [vmem:[%s2562_s22 + $0x78] sm:$0xff]  }
  0x64   : > { %v2186_v35 = vld [vmem:[%s2562_s22 + $0xf8] sm:$0xff]   ;;  %p2257_p11 = pnand %p2256_p9, %p2250_p12 }
  0x66   : > { %2002 = vmatpush3.bf16.msra.mxu0 %v2154_v4  ;;  %2074 = vmatpush3.bf16.msra.mxu1 %v2154_v4 }
  0x69   : > { %2004 = vmatmul.mubr.msk.bf16.vlgmr.msra.gmra.mrb[0].mxu0 %vm519_vm0, %v2156_v5  ;;  %2036 = vmatmul.mubr.msk.bf16.vlgmr.msra.gmra.mrb[0].mxu1 %vm519_vm0, %v2172_v9 }
  0x6a   : > { %2007 = vmatprep.mubr.msk.bf16.mxu0 %vm519_vm0, %v2157_v6  ;;  %2039 = vmatprep.mubr.msk.bf16.mxu1 %vm519_vm0, %v2173_v10 }
  0x71   : > { %2008 = vmatmul.mubr.msk.bf16.gmra.mrb[4].mxu0 %vm519_vm0, %v2158_v7  ;;  %2040 = vmatmul.mubr.msk.bf16.gmra.mrb[4].mxu1 %vm519_vm0, %v2174_v12 }
  0x72   : > { %2011 = vmatprep.mubr.msk.bf16.mxu0 %vm519_vm0, %v2159_v11  ;;  %2043 = vmatprep.mubr.msk.bf16.mxu1 %vm519_vm0, %v2175_v13 }
  0x79   : > { %2012 = vmatmul.mubr.msk.bf16.gmra.mrb[8].mxu0 %vm519_vm0, %v2160_v14  ;;  %2044 = vmatmul.mubr.msk.bf16.gmra.mrb[8].mxu1 %vm519_vm0, %v2176_v16 }
  0x7a   : > { %2015 = vmatprep.mubr.msk.bf16.mxu0 %vm519_vm0, %v2161_v15  ;;  %2047 = vmatprep.mubr.msk.bf16.mxu1 %vm519_vm0, %v2177_v17 }
  0x81   : > { %2016 = vmatmul.mubr.msk.bf16.gmra.mrb[12].mxu0 %vm519_vm0, %v2162_v18  ;;  %2048 = vmatmul.mubr.msk.bf16.gmra.mrb[12].mxu1 %vm519_vm0, %v2178_v20 }
  0x82   : > { %2019 = vmatprep.mubr.msk.bf16.mxu0 %vm519_vm0, %v2163_v19  ;;  %2051 = vmatprep.mubr.msk.bf16.mxu1 %vm519_vm0, %v2179_v21 }
  0x89   : > { %2020 = vmatmul.mubr.msk.bf16.gmra.mrb[16].mxu0 %vm519_vm0, %v2164_v22  ;;  %2052 = vmatmul.mubr.msk.bf16.gmra.mrb[16].mxu1 %vm519_vm0, %v2180_v24 }
  0x8a   : > { %2023 = vmatprep.mubr.msk.bf16.mxu0 %vm519_vm0, %v2165_v23  ;;  %2055 = vmatprep.mubr.msk.bf16.mxu1 %vm519_vm0, %v2181_v25 }
  0x91   : > { %2024 = vmatmul.mubr.msk.bf16.gmra.mrb[20].mxu0 %vm519_vm0, %v2166_v26  ;;  %2056 = vmatmul.mubr.msk.bf16.gmra.mrb[20].mxu1 %vm519_vm0, %v2182_v28 }
  0x92   : > { %2027 = vmatprep.mubr.msk.bf16.mxu0 %vm519_vm0, %v2167_v27  ;;  %2059 = vmatprep.mubr.msk.bf16.mxu1 %vm519_vm0, %v2183_v29 }
  0x99   : > { %2028 = vmatmul.mubr.msk.bf16.gmra.mrb[24].mxu0 %vm519_vm0, %v2168_v30  ;;  %2060 = vmatmul.mubr.msk.bf16.gmra.mrb[24].mxu1 %vm519_vm0, %v2184_v32 }
  0x9a   : > { %2031 = vmatprep.mubr.msk.bf16.mxu0 %vm519_vm0, %v2169_v31  ;;  %2063 = vmatprep.mubr.msk.bf16.mxu1 %vm519_vm0, %v2185_v33 }
  0xa1   : > { %2032 = vmatmul.mubr.msk.bf16.gmra.mrb[28].mxu0 %vm519_vm0, %v2170_v34  ;;  %2064 = vmatmul.mubr.msk.bf16.gmra.mrb[28].mxu1 %vm519_vm0, %v2186_v35 }
 0x13c   : > { %v2005_v36 = vpop.f32.mrb[0].mxu0  ;;  %v2650_v51 = vpop.f32.mrb[0].mxu1 }
 0x13d   : > { %v1896_v37 = vpack.c.bf16 %v2005_v36, %v2005_v36  ;;  %v650_v38 = vpop.f32.mrb[1].mxu0  ;;  %v1364_v42 = vmul.f32 %v2005_v36, %v2005_v36  ;;  %v1230_v52 = vsel %vm1226_vm2, %v2005_v36, 0.0  ;;  %v1928_v55 = vpack.c.bf16 %v2650_v51, %v2650_v51  ;;  %v2659_v56 = vpop.f32.mrb[1].mxu1 }
 0x13e   : > { %v1894_v39 = vpack.c.bf16 %v650_v38, %v650_v38  ;;  %v1362_v40 = vmul.f32 %v650_v38, %v650_v38  ;;  %v2006_v41 = vpop.f32.mrb[2].mxu0  ;;  %v1227_v45 = vsel %vm1226_vm2, %v650_v38, 0.0  ;;  %v1926_v59 = vpack.c.bf16 %v2659_v56, %v2659_v56  ;;  %v2663_v60 = vpop.f32.mrb[2].mxu1 }
 0x13f   : > { %1164 = vst.msk [vmem:[%s2640_s24 + $0x8] sm:$0xf] %vm1161_vm1, %v1896_v37  ;;  %v1897_v43 = vpack.c.bf16 %v2006_v41, %v2006_v41  ;;  %v653_v44 = vpop.f32.mrb[3].mxu0  ;;  %v1365_v49 = vmul.f32 %v2006_v41, %v2006_v41  ;;  %v1429_v61 = vsel %vm1226_vm2, %v1364_v42, 0.0  ;;  %1196 = vst.msk [vmem:[%s2640_s24 + $0x88] sm:$0xf] %vm1161_vm1, %v1928_v55  ;;  %v1929_v63 = vpack.c.bf16 %v2663_v60, %v2663_v60 }
 0x140   : > { %1162 = vst.msk [vmem:[%s2640_s24] sm:$0xf] %vm1161_vm1, %v1894_v39  ;;  %v1895_v46 = vpack.c.bf16 %v653_v44, %v653_v44  ;;  %v1228_v47 = vsel %vm1226_vm2, %v653_v44, 0.0  ;;  %v1363_v48 = vmul.f32 %v653_v44, %v653_v44  ;;  %v1426_v53 = vsel %vm1226_vm2, %v1362_v40, 0.0  ;;  %v2670_v0 = vpop.f32.mrb[3].mxu1 }
 0x141   : > { %1165 = vst.msk [vmem:[%s2640_s24 + $0xc] sm:$0xf] %vm1161_vm1, %v1897_v43  ;;  %v1229_v50 = vadd.f32 %v1228_v47, %v1227_v45  ;;  %v1232_v1 = vsel %vm1226_vm2, %v2006_v41, 0.0  ;;  %v1431_v2 = vsel %vm1226_vm2, %v1365_v49, 0.0  ;;  %1194 = vst.msk [vmem:[%s2640_s24 + $0x80] sm:$0xf] %vm1161_vm1, %v1926_v59  ;;  %v1927_v23 = vpack.c.bf16 %v2670_v0, %v2670_v0 }
 0x142   : > { %1163 = vst.msk [vmem:[%s2640_s24 + $0x4] sm:$0xf] %vm1161_vm1, %v1895_v46  ;;  %v1427_v54 = vsel %vm1226_vm2, %v1363_v48, 0.0  ;;  %1197 = vst.msk [vmem:[%s2640_s24 + $0x8c] sm:$0xf] %vm1161_vm1, %v1929_v63 }
 0x143   : > { %v1231_v57 = vadd.f32 %v1230_v52, %v1229_v50  ;;  %v1428_v58 = vadd.f32 %v1427_v54, %v1426_v53  ;;  %1195 = vst.msk [vmem:[%s2640_s24 + $0x84] sm:$0xf] %vm1161_vm1, %v1927_v23 }
 0x144   : > { %v2009_v62 = vpop.f32.mrb[4].mxu0  ;;  %v2687_v21 = vpop.f32.mrb[4].mxu1 }
 0x145   : > { %v1430_v3 = vadd.f32 %v1429_v61, %v1428_v58  ;;  %v1900_v4 = vpack.c.bf16 %v2009_v62, %v2009_v62  ;;  %v666_v5 = vpop.f32.mrb[5].mxu0  ;;  %v1233_v7 = vadd.f32 %v1232_v1, %v1231_v57  ;;  %v1368_v17 = vmul.f32 %v2009_v62, %v2009_v62  ;;  %v2693_v24 = vpop.f32.mrb[5].mxu1 }
 0x146   : > { %v1898_v6 = vpack.c.bf16 %v666_v5, %v666_v5  ;;  %v1234_v8 = vsel %vm1226_vm2, %v666_v5, 0.0  ;;  %v1366_v9 = vmul.f32 %v666_v5, %v666_v5  ;;  %v2010_v10 = vpop.f32.mrb[6].mxu0  ;;  %v1238_v25 = vsel %vm1226_vm2, %v2009_v62, 0.0  ;;  %v2699_v29 = vpop.f32.mrb[6].mxu1 }
 0x147   : > { %1168 = vst.msk [vmem:[%s2640_s24 + $0x18] sm:$0xf] %vm1161_vm1, %v1900_v4  ;;  %v1432_v11 = vadd.f32 %v1431_v2, %v1430_v3  ;;  %v1901_v12 = vpack.c.bf16 %v2010_v10, %v2010_v10  ;;  %v669_v13 = vpop.f32.mrb[7].mxu0  ;;  %v1235_v14 = vadd.f32 %v1234_v8, %v1233_v7  ;;  %v1369_v26 = vmul.f32 %v2010_v10, %v2010_v10  ;;  %v2703_v33 = vpop.f32.mrb[7].mxu1 }
 0x148   : > { %1166 = vst.msk [vmem:[%s2640_s24 + $0x10] sm:$0xf] %vm1161_vm1, %v1898_v6  ;;  %v1433_v15 = vsel %vm1226_vm2, %v1366_v9, 0.0  ;;  %v1899_v16 = vpack.c.bf16 %v669_v13, %v669_v13  ;;  %v1236_v19 = vsel %vm1226_vm2, %v669_v13, 0.0  ;;  %v1367_v20 = vmul.f32 %v669_v13, %v669_v13 }
 0x149   : > { %v1434_v18 = vadd.f32 %v1433_v15, %v1432_v11  ;;  %1169 = vst.msk [vmem:[%s2640_s24 + $0x1c] sm:$0xf] %vm1161_vm1, %v1901_v12  ;;  %v1237_v22 = vadd.f32 %v1236_v19, %v1235_v14  ;;  %v1932_v28 = vpack.c.bf16 %v2687_v21, %v2687_v21  ;;  %v1437_v34 = vsel %vm1226_vm2, %v1368_v17, 0.0 }
 0x14a   : > { %1167 = vst.msk [vmem:[%s2640_s24 + $0x14] sm:$0xf] %vm1161_vm1, %v1899_v16  ;;  %v1435_v27 = vsel %vm1226_vm2, %v1367_v20, 0.0  ;;  %v1240_v35 = vsel %vm1226_vm2, %v2010_v10, 0.0  ;;  %v1439_v43 = vsel %vm1226_vm2, %v1369_v26, 0.0  ;;  %v1930_v59 = vpack.c.bf16 %v2693_v24, %v2693_v24 }
 0x14b   : > { %v1239_v30 = vadd.f32 %v1238_v25, %v1237_v22  ;;  %v1436_v31 = vadd.f32 %v1435_v27, %v1434_v18  ;;  %1200 = vst.msk [vmem:[%s2640_s24 + $0x98] sm:$0xf] %vm1161_vm1, %v1932_v28  ;;  %v1933_v6 = vpack.c.bf16 %v2699_v29, %v2699_v29 }
 0x14c   : > { %v2013_v32 = vpop.f32.mrb[8].mxu0  ;;  %v2719_v55 = vpop.f32.mrb[8].mxu1  ;;  %1198 = vst.msk [vmem:[%s2640_s24 + $0x90] sm:$0xf] %vm1161_vm1, %v1930_v59 }
 0x14d   : > { %v1904_v36 = vpack.c.bf16 %v2013_v32, %v2013_v32  ;;  %v682_v37 = vpop.f32.mrb[9].mxu0  ;;  %v1438_v38 = vadd.f32 %v1437_v34, %v1436_v31  ;;  %v1241_v40 = vadd.f32 %v1240_v35, %v1239_v30  ;;  %v1372_v50 = vmul.f32 %v2013_v32, %v2013_v32  ;;  %v2725_v61 = vpop.f32.mrb[9].mxu1  ;;  %1201 = vst.msk [vmem:[%s2640_s24 + $0x9c] sm:$0xf] %vm1161_vm1, %v1933_v6 }
 0x14e   : > { %v1902_v39 = vpack.c.bf16 %v682_v37, %v682_v37  ;;  %v1242_v41 = vsel %vm1226_vm2, %v682_v37, 0.0  ;;  %v2014_v42 = vpop.f32.mrb[10].mxu0  ;;  %v1370_v44 = vmul.f32 %v682_v37, %v682_v37  ;;  %v1246_v62 = vsel %vm1226_vm2, %v2013_v32, 0.0  ;;  %v2729_v2 = vpop.f32.mrb[10].mxu1 }
 0x14f   : > { %1172 = vst.msk [vmem:[%s2640_s24 + $0x28] sm:$0xf] %vm1161_vm1, %v1904_v36  ;;  %v1905_v45 = vpack.c.bf16 %v2014_v42, %v2014_v42  ;;  %v685_v46 = vpop.f32.mrb[11].mxu0  ;;  %v1243_v47 = vadd.f32 %v1242_v41, %v1241_v40  ;;  %v1440_v48 = vadd.f32 %v1439_v43, %v1438_v38  ;;  %v1373_v63 = vmul.f32 %v2014_v42, %v2014_v42  ;;  %v2735_v7 = vpop.f32.mrb[11].mxu1 }
 0x150   : > { %1170 = vst.msk [vmem:[%s2640_s24 + $0x20] sm:$0xf] %vm1161_vm1, %v1902_v39  ;;  %v1903_v49 = vpack.c.bf16 %v685_v46, %v685_v46  ;;  %v1441_v52 = vsel %vm1226_vm2, %v1370_v44, 0.0  ;;  %v1244_v53 = vsel %vm1226_vm2, %v685_v46, 0.0  ;;  %v1371_v54 = vmul.f32 %v685_v46, %v685_v46 }
 0x151   : > { %1173 = vst.msk [vmem:[%s2640_s24 + $0x2c] sm:$0xf] %vm1161_vm1, %v1905_v45  ;;  %v1442_v57 = vadd.f32 %v1441_v52, %v1440_v48  ;;  %v1245_v58 = vadd.f32 %v1244_v53, %v1243_v47  ;;  %v1445_v8 = vsel %vm1226_vm2, %v1372_v50, 0.0  ;;  %v1248_v9 = vsel %vm1226_vm2, %v2014_v42, 0.0 }
 0x152   : > { %1171 = vst.msk [vmem:[%s2640_s24 + $0x24] sm:$0xf] %vm1161_vm1, %v1903_v49  ;;  %v1443_v1 = vsel %vm1226_vm2, %v1371_v54, 0.0  ;;  %v1447_v17 = vsel %vm1226_vm2, %v1373_v63, 0.0  ;;  %v1931_v35 = vpack.c.bf16 %v2703_v33, %v2703_v33  ;;  %v1936_v44 = vpack.c.bf16 %v2719_v55, %v2719_v55 }
 0x153   : > { %v1247_v3 = vadd.f32 %v1246_v62, %v1245_v58  ;;  %v1444_v4 = vadd.f32 %v1443_v1, %v1442_v57 }
 0x154   : > { %v2017_v5 = vpop.f32.mrb[12].mxu0  ;;  %v2751_v31 = vpop.f32.mrb[12].mxu1  ;;  %1199 = vst.msk [vmem:[%s2640_s24 + $0x94] sm:$0xf] %vm1161_vm1, %v1931_v35  ;;  %1204 = vst.msk [vmem:[%s2640_s24 + $0xa8] sm:$0xf] %vm1161_vm1, %v1936_v44 }
 0x155   : > { %v1908_v10 = vpack.c.bf16 %v2017_v5, %v2017_v5  ;;  %v698_v11 = vpop.f32.mrb[13].mxu0  ;;  %v1446_v12 = vadd.f32 %v1445_v8, %v1444_v4  ;;  %v1249_v14 = vadd.f32 %v1248_v9, %v1247_v3  ;;  %v1376_v26 = vmul.f32 %v2017_v5, %v2017_v5  ;;  %v2757_v36 = vpop.f32.mrb[13].mxu1 }
 0x156   : > { %v1906_v13 = vpack.c.bf16 %v698_v11, %v698_v11  ;;  %v1250_v15 = vsel %vm1226_vm2, %v698_v11, 0.0  ;;  %v2018_v16 = vpop.f32.mrb[14].mxu0  ;;  %v1374_v18 = vmul.f32 %v698_v11, %v698_v11  ;;  %v1254_v37 = vsel %vm1226_vm2, %v2017_v5, 0.0  ;;  %v2761_v40 = vpop.f32.mrb[14].mxu1 }
 0x157   : > { %1176 = vst.msk [vmem:[%s2640_s24 + $0x38] sm:$0xf] %vm1161_vm1, %v1908_v10  ;;  %v1909_v19 = vpack.c.bf16 %v2018_v16, %v2018_v16  ;;  %v701_v20 = vpop.f32.mrb[15].mxu0  ;;  %v1251_v22 = vadd.f32 %v1250_v15, %v1249_v14  ;;  %v1448_v23 = vadd.f32 %v1447_v17, %v1446_v12  ;;  %v1377_v38 = vmul.f32 %v2018_v16, %v2018_v16  ;;  %v2767_v45 = vpop.f32.mrb[15].mxu1 }
 0x158   : > { %1174 = vst.msk [vmem:[%s2640_s24 + $0x30] sm:$0xf] %vm1161_vm1, %v1906_v13  ;;  %v1907_v25 = vpack.c.bf16 %v701_v20, %v701_v20  ;;  %v1449_v27 = vsel %vm1226_vm2, %v1374_v18, 0.0  ;;  %v1252_v28 = vsel %vm1226_vm2, %v701_v20, 0.0  ;;  %v1375_v30 = vmul.f32 %v701_v20, %v701_v20 }
 0x159   : > { %1177 = vst.msk [vmem:[%s2640_s24 + $0x3c] sm:$0xf] %vm1161_vm1, %v1909_v19  ;;  %v1450_v32 = vadd.f32 %v1449_v27, %v1448_v23  ;;  %v1253_v34 = vadd.f32 %v1252_v28, %v1251_v22  ;;  %v1453_v46 = vsel %vm1226_vm2, %v1376_v26, 0.0  ;;  %v1256_v47 = vsel %vm1226_vm2, %v2018_v16, 0.0 }
 0x15a   : > { %1175 = vst.msk [vmem:[%s2640_s24 + $0x34] sm:$0xf] %vm1161_vm1, %v1907_v25  ;;  %v1451_v39 = vsel %vm1226_vm2, %v1375_v30, 0.0  ;;  %v1455_v58 = vsel %vm1226_vm2, %v1377_v38, 0.0  ;;  %v1934_v13 = vpack.c.bf16 %v2725_v61, %v2725_v61  ;;  %v1937_v23 = vpack.c.bf16 %v2729_v2, %v2729_v2 }
 0x15b   : > { %v1255_v41 = vadd.f32 %v1254_v37, %v1253_v34  ;;  %v1452_v42 = vadd.f32 %v1451_v39, %v1450_v32 }
 0x15c   : > { %v2021_v43 = vpop.f32.mrb[16].mxu0  ;;  %v2783_v10 = vpop.f32.mrb[16].mxu1  ;;  %1202 = vst.msk [vmem:[%s2640_s24 + $0xa0] sm:$0xf] %vm1161_vm1, %v1934_v13  ;;  %1205 = vst.msk [vmem:[%s2640_s24 + $0xac] sm:$0xf] %vm1161_vm1, %v1937_v23 }
 0x15d   : > { %v1912_v48 = vpack.c.bf16 %v2021_v43, %v2021_v43  ;;  %v714_v49 = vpop.f32.mrb[17].mxu0  ;;  %v1454_v50 = vadd.f32 %v1453_v46, %v1452_v42  ;;  %v1257_v53 = vadd.f32 %v1256_v47, %v1255_v41  ;;  %v1380_v5 = vmul.f32 %v2021_v43, %v2021_v43  ;;  %v2789_v14 = vpop.f32.mrb[17].mxu1 }
 0x15e   : > { %v1910_v52 = vpack.c.bf16 %v714_v49, %v714_v49  ;;  %v1258_v54 = vsel %vm1226_vm2, %v714_v49, 0.0  ;;  %v2022_v57 = vpop.f32.mrb[18].mxu0  ;;  %v1378_v59 = vmul.f32 %v714_v49, %v714_v49  ;;  %v1262_v15 = vsel %vm1226_vm2, %v2021_v43, 0.0  ;;  %v2793_v18 = vpop.f32.mrb[18].mxu1 }
 0x15f   : > { %1180 = vst.msk [vmem:[%s2640_s24 + $0x48] sm:$0xf] %vm1161_vm1, %v1912_v48  ;;  %v1913_v62 = vpack.c.bf16 %v2022_v57, %v2022_v57  ;;  %v717_v63 = vpop.f32.mrb[19].mxu0  ;;  %v1259_v1 = vadd.f32 %v1258_v54, %v1257_v53  ;;  %v1456_v3 = vadd.f32 %v1455_v58, %v1454_v50  ;;  %v1381_v16 = vmul.f32 %v2022_v57, %v2022_v57  ;;  %v2799_v25 = vpop.f32.mrb[19].mxu1 }
 0x160   : > { %1178 = vst.msk [vmem:[%s2640_s24 + $0x40] sm:$0xf] %vm1161_vm1, %v1910_v52  ;;  %v1911_v4 = vpack.c.bf16 %v717_v63, %v717_v63  ;;  %v1457_v6 = vsel %vm1226_vm2, %v1378_v59, 0.0  ;;  %v1260_v8 = vsel %vm1226_vm2, %v717_v63, 0.0  ;;  %v1379_v9 = vmul.f32 %v717_v63, %v717_v63 }
 0x161   : > { %1181 = vst.msk [vmem:[%s2640_s24 + $0x4c] sm:$0xf] %vm1161_vm1, %v1913_v62  ;;  %v1458_v11 = vadd.f32 %v1457_v6, %v1456_v3  ;;  %v1261_v12 = vadd.f32 %v1260_v8, %v1259_v1  ;;  %v1461_v26 = vsel %vm1226_vm2, %v1380_v5, 0.0  ;;  %v1264_v27 = vsel %vm1226_vm2, %v2022_v57, 0.0 }
 0x162   : > { %1179 = vst.msk [vmem:[%s2640_s24 + $0x44] sm:$0xf] %vm1161_vm1, %v1911_v4  ;;  %v1459_v17 = vsel %vm1226_vm2, %v1379_v9, 0.0  ;;  %v1463_v39 = vsel %vm1226_vm2, %v1381_v16, 0.0  ;;  %v1935_v58 = vpack.c.bf16 %v2735_v7, %v2735_v7  ;;  %v1940_v8 = vpack.c.bf16 %v2751_v31, %v2751_v31 }
 0x163   : > { %v1263_v19 = vadd.f32 %v1262_v15, %v1261_v12  ;;  %v1460_v20 = vadd.f32 %v1459_v17, %v1458_v11 }
 0x164   : > { %v2025_v22 = vpop.f32.mrb[20].mxu0  ;;  %v2815_v53 = vpop.f32.mrb[20].mxu1  ;;  %1203 = vst.msk [vmem:[%s2640_s24 + $0xa4] sm:$0xf] %vm1161_vm1, %v1935_v58  ;;  %1208 = vst.msk [vmem:[%s2640_s24 + $0xb8] sm:$0xf] %vm1161_vm1, %v1940_v8  ;;  %v1941_v58 = vpack.c.bf16 %v2761_v40, %v2761_v40 }
 0x165   : > { %v1916_v28 = vpack.c.bf16 %v2025_v22, %v2025_v22  ;;  %v730_v30 = vpop.f32.mrb[21].mxu0  ;;  %v1462_v32 = vadd.f32 %v1461_v26, %v1460_v20  ;;  %v1265_v35 = vadd.f32 %v1264_v27, %v1263_v19  ;;  %v1384_v48 = vmul.f32 %v2025_v22, %v2025_v22  ;;  %v2821_v59 = vpop.f32.mrb[21].mxu1 }
 0x166   : > { %v1914_v34 = vpack.c.bf16 %v730_v30, %v730_v30  ;;  %v1266_v37 = vsel %vm1226_vm2, %v730_v30, 0.0  ;;  %v2026_v38 = vpop.f32.mrb[22].mxu0  ;;  %v1382_v41 = vmul.f32 %v730_v30, %v730_v30  ;;  %v1270_v62 = vsel %vm1226_vm2, %v2025_v22, 0.0  ;;  %v2825_v3 = vpop.f32.mrb[22].mxu1  ;;  %1209 = vst.msk [vmem:[%s2640_s24 + $0xbc] sm:$0xf] %vm1161_vm1, %v1941_v58 }
 0x167   : > { %1184 = vst.msk [vmem:[%s2640_s24 + $0x58] sm:$0xf] %vm1161_vm1, %v1916_v28  ;;  %v1917_v42 = vpack.c.bf16 %v2026_v38, %v2026_v38  ;;  %v733_v43 = vpop.f32.mrb[23].mxu0  ;;  %v1267_v44 = vadd.f32 %v1266_v37, %v1265_v35  ;;  %v1464_v46 = vadd.f32 %v1463_v39, %v1462_v32  ;;  %v1385_v63 = vmul.f32 %v2026_v38, %v2026_v38  ;;  %v2831_v9 = vpop.f32.mrb[23].mxu1 }
 0x168   : > { %1182 = vst.msk [vmem:[%s2640_s24 + $0x50] sm:$0xf] %vm1161_vm1, %v1914_v34  ;;  %v1915_v47 = vpack.c.bf16 %v733_v43, %v733_v43  ;;  %v1465_v49 = vsel %vm1226_vm2, %v1382_v41, 0.0  ;;  %v1268_v50 = vsel %vm1226_vm2, %v733_v43, 0.0  ;;  %v1383_v52 = vmul.f32 %v733_v43, %v733_v43 }
 0x169   : > { %1185 = vst.msk [vmem:[%s2640_s24 + $0x5c] sm:$0xf] %vm1161_vm1, %v1917_v42  ;;  %v1466_v54 = vadd.f32 %v1465_v49, %v1464_v46  ;;  %v1269_v57 = vadd.f32 %v1268_v50, %v1267_v44  ;;  %v1469_v11 = vsel %vm1226_vm2, %v1384_v48, 0.0  ;;  %v1272_v12 = vsel %vm1226_vm2, %v2026_v38, 0.0 }
 0x16a   : > { %1183 = vst.msk [vmem:[%s2640_s24 + $0x54] sm:$0xf] %vm1161_vm1, %v1915_v47  ;;  %v1467_v1 = vsel %vm1226_vm2, %v1383_v52, 0.0  ;;  %v1471_v23 = vsel %vm1226_vm2, %v1385_v63, 0.0  ;;  %v1938_v44 = vpack.c.bf16 %v2757_v36, %v2757_v36 }
 0x16b   : > { %v1271_v4 = vadd.f32 %v1270_v62, %v1269_v57  ;;  %v1468_v5 = vadd.f32 %v1467_v1, %v1466_v54 }
 0x16c   : > { %v2029_v6 = vpop.f32.mrb[24].mxu0  ;;  %v2847_v41 = vpop.f32.mrb[24].mxu1  ;;  %1206 = vst.msk [vmem:[%s2640_s24 + $0xb0] sm:$0xf] %vm1161_vm1, %v1938_v44  ;;  %v1394_v44 = vmul.f32 %v2659_v56, %v2659_v56 }
 0x16d   : > { %v1920_v13 = vpack.c.bf16 %v2029_v6, %v2029_v6  ;;  %v746_v15 = vpop.f32.mrb[25].mxu0  ;;  %v1470_v16 = vadd.f32 %v1469_v11, %v1468_v5  ;;  %v1273_v19 = vadd.f32 %v1272_v12, %v1271_v4  ;;  %v1388_v35 = vmul.f32 %v2029_v6, %v2029_v6  ;;  %v2853_v46 = vpop.f32.mrb[25].mxu1 }
 0x16e   : > { %v1918_v17 = vpack.c.bf16 %v746_v15, %v746_v15  ;;  %v1274_v20 = vsel %vm1226_vm2, %v746_v15, 0.0  ;;  %v2030_v22 = vpop.f32.mrb[26].mxu0  ;;  %v1386_v26 = vmul.f32 %v746_v15, %v746_v15  ;;  %v1278_v47 = vsel %vm1226_vm2, %v2029_v6, 0.0  ;;  %v2857_v50 = vpop.f32.mrb[26].mxu1 }
 0x16f   : > { %1188 = vst.msk [vmem:[%s2640_s24 + $0x68] sm:$0xf] %vm1161_vm1, %v1920_v13  ;;  %v1921_v27 = vpack.c.bf16 %v2030_v22, %v2030_v22  ;;  %v749_v28 = vpop.f32.mrb[27].mxu0  ;;  %v1275_v30 = vadd.f32 %v1274_v20, %v1273_v19  ;;  %v1472_v32 = vadd.f32 %v1471_v23, %v1470_v16  ;;  %v1389_v48 = vmul.f32 %v2030_v22, %v2030_v22  ;;  %v2863_v62 = vpop.f32.mrb[27].mxu1 }
 0x170   : > { %1186 = vst.msk [vmem:[%s2640_s24 + $0x60] sm:$0xf] %vm1161_vm1, %v1918_v17  ;;  %v1919_v34 = vpack.c.bf16 %v749_v28, %v749_v28  ;;  %v1473_v37 = vsel %vm1226_vm2, %v1386_v26, 0.0  ;;  %v1276_v38 = vsel %vm1226_vm2, %v749_v28, 0.0  ;;  %v1387_v39 = vmul.f32 %v749_v28, %v749_v28 }
 0x171   : > { %1189 = vst.msk [vmem:[%s2640_s24 + $0x6c] sm:$0xf] %vm1161_vm1, %v1921_v27  ;;  %v1474_v42 = vadd.f32 %v1473_v37, %v1472_v32  ;;  %v1277_v43 = vadd.f32 %v1276_v38, %v1275_v30  ;;  %v1477_v63 = vsel %vm1226_vm2, %v1388_v35, 0.0  ;;  %v1280_v1 = vsel %vm1226_vm2, %v2030_v22, 0.0 }
 0x172   : > { %1187 = vst.msk [vmem:[%s2640_s24 + $0x64] sm:$0xf] %vm1161_vm1, %v1919_v34  ;;  %v1475_v49 = vsel %vm1226_vm2, %v1387_v39, 0.0  ;;  %v1479_v15 = vsel %vm1226_vm2, %v1389_v48, 0.0  ;;  %v1939_v37 = vpack.c.bf16 %v2767_v45, %v2767_v45 }
 0x173   : > { %v1279_v52 = vadd.f32 %v1278_v47, %v1277_v43  ;;  %v1476_v54 = vadd.f32 %v1475_v49, %v1474_v42 }
 0x174   : > { %v2033_v57 = vpop.f32.mrb[28].mxu0  ;;  %v2879_v32 = vpop.f32.mrb[28].mxu1  ;;  %1207 = vst.msk [vmem:[%s2640_s24 + $0xb4] sm:$0xf] %vm1161_vm1, %v1939_v37  ;;  %v1296_v37 = vsel %vm1226_vm2, %v2663_v60, 0.0 }
 0x175   : > { %v1924_v4 = vpack.c.bf16 %v2033_v57, %v2033_v57  ;;  %v762_v5 = vpop.f32.mrb[29].mxu0  ;;  %v1478_v6 = vadd.f32 %v1477_v63, %v1476_v54  ;;  %v1281_v11 = vadd.f32 %v1280_v1, %v1279_v52  ;;  %v1392_v26 = vmul.f32 %v2033_v57, %v2033_v57  ;;  %v2885_v38 = vpop.f32.mrb[29].mxu1 }
 0x176   : > { %v1922_v8 = vpack.c.bf16 %v762_v5, %v762_v5  ;;  %v1282_v12 = vsel %vm1226_vm2, %v762_v5, 0.0  ;;  %v2034_v13 = vpop.f32.mrb[30].mxu0  ;;  %v1390_v16 = vmul.f32 %v762_v5, %v762_v5  ;;  %v1286_v39 = vsel %vm1226_vm2, %v2033_v57, 0.0  ;;  %v2891_v47 = vpop.f32.mrb[30].mxu1 }
 0x177   : > { %1192 = vst.msk [vmem:[%s2640_s24 + $0x78] sm:$0xf] %vm1161_vm1, %v1924_v4  ;;  %v1925_v17 = vpack.c.bf16 %v2034_v13, %v2034_v13  ;;  %v765_v19 = vpop.f32.mrb[31].mxu0  ;;  %v1283_v20 = vadd.f32 %v1282_v12, %v1281_v11  ;;  %v1480_v22 = vadd.f32 %v1479_v15, %v1478_v6  ;;  %v1393_v42 = vmul.f32 %v2034_v13, %v2034_v13  ;;  %v2897_v54 = vpop.f32.mrb[31].mxu1 }
 0x178   : > { %1190 = vst.msk [vmem:[%s2640_s24 + $0x70] sm:$0xf] %vm1161_vm1, %v1922_v8  ;;  %v1923_v23 = vpack.c.bf16 %v765_v19, %v765_v19  ;;  %v1481_v27 = vsel %vm1226_vm2, %v1390_v16, 0.0  ;;  %v1284_v28 = vsel %vm1226_vm2, %v765_v19, 0.0  ;;  %v1391_v30 = vmul.f32 %v765_v19, %v765_v19 }
 0x179   : > { %1193 = vst.msk [vmem:[%s2640_s24 + $0x7c] sm:$0xf] %vm1161_vm1, %v1925_v17  ;;  %v1482_v34 = vadd.f32 %v1481_v27, %v1480_v22  ;;  %v1285_v35 = vadd.f32 %v1284_v28, %v1283_v20  ;;  %v1944_v52 = vpack.c.bf16 %v2783_v10, %v2783_v10  ;;  %v1485_v57 = vsel %vm1226_vm2, %v1392_v26, 0.0 }
 0x17a   : > { %1191 = vst.msk [vmem:[%s2640_s24 + $0x74] sm:$0xf] %vm1161_vm1, %v1923_v23  ;;  %v1483_v43 = vsel %vm1226_vm2, %v1391_v30, 0.0  ;;  %v1288_v58 = vsel %vm1226_vm2, %v2034_v13, 0.0  ;;  %v1290_v63 = vsel %vm1226_vm2, %v2659_v56, 0.0  ;;  %v1942_v1 = vpack.c.bf16 %v2789_v14, %v2789_v14 }
 0x17b   : > { %v1287_v48 = vadd.f32 %v1286_v39, %v1285_v35  ;;  %v1484_v49 = vadd.f32 %v1483_v43, %v1482_v34  ;;  %1212 = vst.msk [vmem:[%s2640_s24 + $0xc8] sm:$0xf] %vm1161_vm1, %v1944_v52  ;;  %v1945_v6 = vpack.c.bf16 %v2793_v18, %v2793_v18  ;;  %v1487_v8 = vsel %vm1226_vm2, %v1393_v42, 0.0 }
 0x17c   : > { %v1489_v11 = vsel %vm1226_vm2, %v1394_v44, 0.0  ;;  %v1395_v12 = vmul.f32 %v2670_v0, %v2670_v0  ;;  %1210 = vst.msk [vmem:[%s2640_s24 + $0xc0] sm:$0xf] %vm1161_vm1, %v1942_v1  ;;  %v1943_v56 = vpack.c.bf16 %v2799_v25, %v2799_v25  ;;  %v1396_v16 = vmul.f32 %v2650_v51, %v2650_v51 }
 0x17d   : > { %v1486_v4 = vadd.f32 %v1485_v57, %v1484_v49  ;;  %v1289_v5 = vadd.f32 %v1288_v58, %v1287_v48  ;;  %1213 = vst.msk [vmem:[%s2640_s24 + $0xcc] sm:$0xf] %vm1161_vm1, %v1945_v6  ;;  %v1292_v17 = vsel %vm1226_vm2, %v2670_v0, 0.0  ;;  %v1948_v19 = vpack.c.bf16 %v2815_v53, %v2815_v53 }
 0x17e   : > { %1211 = vst.msk [vmem:[%s2640_s24 + $0xc4] sm:$0xf] %vm1161_vm1, %v1943_v56  ;;  %v1294_v20 = vsel %vm1226_vm2, %v2650_v51, 0.0  ;;  %v1946_v26 = vpack.c.bf16 %v2821_v59, %v2821_v59  ;;  %v1397_v27 = vmul.f32 %v2663_v60, %v2663_v60  ;;  %v1491_v28 = vsel %vm1226_vm2, %v1395_v12, 0.0 }
 0x17f   : > { %v1291_v13 = vadd.f32 %v1290_v63, %v1289_v5  ;;  %v1488_v15 = vadd.f32 %v1487_v8, %v1486_v4  ;;  %v1398_v0 = vmul.f32 %v2693_v24, %v2693_v24  ;;  %1216 = vst.msk [vmem:[%s2640_s24 + $0xd8] sm:$0xf] %vm1161_vm1, %v1948_v19  ;;  %v1949_v30 = vpack.c.bf16 %v2825_v3, %v2825_v3 }
 0x180   : > { %1214 = vst.msk [vmem:[%s2640_s24 + $0xd0] sm:$0xf] %vm1161_vm1, %v1946_v26  ;;  %v1493_v35 = vsel %vm1226_vm2, %v1396_v16, 0.0  ;;  %v1298_v39 = vsel %vm1226_vm2, %v2693_v24, 0.0  ;;  %v1947_v42 = vpack.c.bf16 %v2831_v9, %v2831_v9  ;;  %v1952_v48 = vpack.c.bf16 %v2847_v41, %v2847_v41 }
 0x181   : > { %v1490_v22 = vadd.f32 %v1489_v11, %v1488_v15  ;;  %v1293_v23 = vadd.f32 %v1292_v17, %v1291_v13  ;;  %1217 = vst.msk [vmem:[%s2640_s24 + $0xdc] sm:$0xf] %vm1161_vm1, %v1949_v30  ;;  %v1495_v49 = vsel %vm1226_vm2, %v1397_v27, 0.0  ;;  %v1497_v52 = vsel %vm1226_vm2, %v1398_v0, 0.0 }
 0x182   : > { %v1399_v60 = vmul.f32 %v2703_v33, %v2703_v33  ;;  %1215 = vst.msk [vmem:[%s2640_s24 + $0xd4] sm:$0xf] %vm1161_vm1, %v1947_v42  ;;  %v1950_v24 = vpack.c.bf16 %v2853_v46, %v2853_v46  ;;  %1220 = vst.msk [vmem:[%s2640_s24 + $0xe8] sm:$0xf] %vm1161_vm1, %v1952_v48  ;;  %v1400_v63 = vmul.f32 %v2687_v21, %v2687_v21  ;;  %v1300_v1 = vsel %vm1226_vm2, %v2703_v33, 0.0 }
 0x183   : > { %v1295_v51 = vadd.f32 %v1294_v20, %v1293_v23  ;;  %v1492_v34 = vadd.f32 %v1491_v28, %v1490_v22  ;;  %v1953_v4 = vpack.c.bf16 %v2857_v50, %v2857_v50  ;;  %v1302_v5 = vsel %vm1226_vm2, %v2687_v21, 0.0 }
 0x184   : > { %1218 = vst.msk [vmem:[%s2640_s24 + $0xe0] sm:$0xf] %vm1161_vm1, %v1950_v24  ;;  %v1951_v11 = vpack.c.bf16 %v2863_v62, %v2863_v62  ;;  %v1401_v12 = vmul.f32 %v2699_v29, %v2699_v29  ;;  %v1499_v33 = vsel %vm1226_vm2, %v1399_v60, 0.0  ;;  %v1402_v56 = vmul.f32 %v2725_v61, %v2725_v61 }
 0x185   : > { %v1494_v43 = vadd.f32 %v1493_v35, %v1492_v34  ;;  %v1297_v44 = vadd.f32 %v1296_v37, %v1295_v51  ;;  %1221 = vst.msk [vmem:[%s2640_s24 + $0xec] sm:$0xf] %vm1161_vm1, %v1953_v4  ;;  %v1956_v13 = vpack.c.bf16 %v2879_v32, %v2879_v32  ;;  %v1501_v16 = vsel %vm1226_vm2, %v1400_v63, 0.0 }
 0x186   : > { %1219 = vst.msk [vmem:[%s2640_s24 + $0xe4] sm:$0xf] %vm1161_vm1, %v1951_v11  ;;  %v1304_v17 = vsel %vm1226_vm2, %v2699_v29, 0.0  ;;  %v1306_v19 = vsel %vm1226_vm2, %v2725_v61, 0.0  ;;  %v1954_v20 = vpack.c.bf16 %v2885_v38, %v2885_v38  ;;  %v1957_v26 = vpack.c.bf16 %v2891_v47, %v2891_v47 }
 0x187   : > { %v1299_v57 = vadd.f32 %v1298_v39, %v1297_v44  ;;  %v1496_v58 = vadd.f32 %v1495_v49, %v1494_v43  ;;  %1224 = vst.msk [vmem:[%s2640_s24 + $0xf8] sm:$0xf] %vm1161_vm1, %v1956_v13  ;;  %v1503_v29 = vsel %vm1226_vm2, %v1401_v12, 0.0  ;;  %v1505_v61 = vsel %vm1226_vm2, %v1402_v56, 0.0 }
 0x188   : > { %v1403_v27 = vmul.f32 %v2735_v7, %v2735_v7  ;;  %1222 = vst.msk [vmem:[%s2640_s24 + $0xf0] sm:$0xf] %vm1161_vm1, %v1954_v20  ;;  %v1955_v28 = vpack.c.bf16 %v2897_v54, %v2897_v54  ;;  %1225 = vst.msk [vmem:[%s2640_s24 + $0xfc] sm:$0xf] %vm1161_vm1, %v1957_v26  ;;  %v1404_v51 = vmul.f32 %v2719_v55, %v2719_v55  ;;  %v1308_v34 = vsel %vm1226_vm2, %v2735_v7, 0.0 }
 0x189   : > { %v1498_v6 = vadd.f32 %v1497_v52, %v1496_v58  ;;  %v1301_v8 = vadd.f32 %v1300_v1, %v1299_v57 }
 0x18a   : > { %1223 = vst.msk [vmem:[%s2640_s24 + $0xf4] sm:$0xf] %vm1161_vm1, %v1955_v28 }
 0x18b   : > { %v1303_v21 = vadd.f32 %v1302_v5, %v1301_v8  ;;  %v1500_v15 = vadd.f32 %v1499_v33, %v1498_v6 }
 0x18d   : > { %v1502_v22 = vadd.f32 %v1501_v16, %v1500_v15  ;;  %v1305_v23 = vadd.f32 %v1304_v17, %v1303_v21 }
 0x18f   : > { %v1307_v0 = vadd.f32 %v1306_v19, %v1305_v23  ;;  %v1504_v30 = vadd.f32 %v1503_v29, %v1502_v22 }
 0x191   : > { %v1506_v35 = vadd.f32 %v1505_v61, %v1504_v30  ;;  %v1309_v37 = vadd.f32 %v1308_v34, %v1307_v0 }
 0x192   : > { %2260 = shalt.err (!%p2257_p11)
}
 0x193   : > { %s2261_s9 = scalar_lea.hbm %s3002_s23, 4096  ;;  %s2265_s7 = scalar_lea.hbm %s3210_s2, 16384 }
 0x194   : > { %p2262_p5 = scmp.ne.s32.totalorder %s3002_s23, %s2261_s9  ;;  %p2266_p3 = scmp.lt.u32.totalorder %s3002_s23, %s3210_s2 }
 0x195   : > { %p2267_p4 = scmp.lt.u32.totalorder %s2265_s7, %s2261_s9  ;;  %p2269_p13 = scmp.lt.u32.totalorder %s2261_s9, %s3002_s23 }
 0x196   : > { %p2263_p10 = pnand %p2262_p5, %p3222_p2 }
 0x197   : > { %p2268_p8 = por %p2267_p4, %p2266_p3 }
 0x198   : > { %p2264_p1 = pneg %p2263_p10 }
 0x199   : > { %p2270_p0 = por %p2269_p13, %p2268_p8 }
 0x19b   : > { %p2271_p12 = pnand %p2270_p0, %p2264_p1 }
 0x19d   : > { %2274 = shalt.err (!%p2271_p12)
}
 0x19e   : > { %s2372_s21 = smov 64   ;;  %s2373_s4 = smov 4   ;;  %v1310_v7 = vsel %vm1226_vm2, %v2719_v55, 0.0  ;;  %v1405_v39 = vmul.f32 %v2729_v2, %v2729_v2  ;;  %v1507_v42 = vsel %vm1226_vm2, %v1403_v27, 0.0  ;;  %v1406_v43 = vmul.f32 %v2757_v36, %v2757_v36 }
 0x19f   : > { %2079 = dma.vmem_to_hbm [thread:$0]  (%p3222_p2), %s3004_s29, 4096, %s3002_s23, %s1561_s18, %s2372_s21, %s2372_s21, %s2373_s4   ;;  %v1311_v44 = vadd.f32 %v1310_v7, %v1309_v37  ;;  %v1508_v48 = vadd.f32 %v1507_v42, %v1506_v35  ;;  %v1509_v49 = vsel %vm1226_vm2, %v1404_v51, 0.0  ;;  %v1312_v52 = vsel %vm1226_vm2, %v2729_v2, 0.0 }
 0x1a0   : > { %v1314_v60 = vsel %vm1226_vm2, %v2757_v36, 0.0  ;;  %v1511_v57 = vsel %vm1226_vm2, %v1405_v39, 0.0  ;;  %v1513_v58 = vsel %vm1226_vm2, %v1406_v43, 0.0  ;;  %v1407_v63 = vmul.f32 %v2767_v45, %v2767_v45  ;;  %s1752_s29 = sshll.u32 %s2556_s8, 3  ;;  %s1889_s6 = sshll.u32 %s2357_s15, 7 }
 0x1a1   : > { %v1510_v24 = vadd.f32 %v1509_v49, %v1508_v48  ;;  %v1313_v55 = vadd.f32 %v1312_v52, %v1311_v44  ;;  %v1408_v5 = vmul.f32 %v2751_v31, %v2751_v31  ;;  %v1316_v2 = vsel %vm1226_vm2, %v2767_v45, 0.0  ;;  %s259_s23 = scalar_lea.vmem [#allocation8], %s1752_s29  ;;  %s3160_s5 = scalar_lea.hbm %s3211_s3, %s1889_s6 }
 0x1a2   : > { %v1318_v36 = vsel %vm1226_vm2, %v2751_v31, 0.0  ;;  %v1409_v11 = vmul.f32 %v2761_v40, %v2761_v40  ;;  %v1515_v12 = vsel %vm1226_vm2, %v1407_v63, 0.0  ;;  %v1410_v33 = vmul.f32 %v2789_v14, %v2789_v14  ;;  %s1598_s18 = sshll.u32 %s259_s23, 4  ;;  %s1566_s19 = scalar_lea.sflag [#allocation9], %s2556_s8  ;;  %s3162_s18 = int_to_ptr.vmem [resolvable:$true] %s1598_s18 }
 0x1a3   : > { %v1315_v1 = vadd.f32 %v1314_v60, %v1313_v55  ;;  %v1512_v4 = vadd.f32 %v1511_v57, %v1510_v24  ;;  %v1517_v21 = vsel %vm1226_vm2, %v1408_v5, 0.0  ;;  %v1320_v45 = vsel %vm1226_vm2, %v2761_v40, 0.0  ;;  %s2275_s9 = scalar_lea.vmem %s3162_s18, 128  ;;  %s2374_s15 = smov [#allocation8]  }
 0x1a4   : > { %v1322_v15 = vsel %vm1226_vm2, %v2789_v14, 0.0  ;;  %v1519_v17 = vsel %vm1226_vm2, %v1409_v11, 0.0  ;;  %v1521_v19 = vsel %vm1226_vm2, %v1410_v33, 0.0  ;;  %v1411_v20 = vmul.f32 %v2799_v25, %v2799_v25  ;;  %p2276_p6 = scmp.ne.s32.totalorder %s3162_s18, %s2275_s9  ;;  %s2279_s22 = sshll.u32 %s2374_s15, 4  ;;  %s2280_s22 = int_to_ptr.vmem [resolvable:$false] %s2279_s22 }
 0x1a5   : > { %v1514_v6 = vadd.f32 %v1513_v58, %v1512_v4  ;;  %v1317_v8 = vadd.f32 %v1316_v2, %v1315_v1  ;;  %v1412_v26 = vmul.f32 %v2783_v10, %v2783_v10  ;;  %v1324_v40 = vsel %vm1226_vm2, %v2799_v25, 0.0  ;;  %s2281_s28 = scalar_lea.vmem %s2280_s22, 256  ;;  %p2282_p11 = scmp.lt.s32.totalorder %s3162_s18, %s2280_s22 }
 0x1a6   : > { %v1326_v14 = vsel %vm1226_vm2, %v2783_v10, 0.0  ;;  %v1413_v27 = vmul.f32 %v2793_v18, %v2793_v18  ;;  %v1523_v28 = vsel %vm1226_vm2, %v1411_v20, 0.0  ;;  %v1414_v0 = vmul.f32 %v2821_v59, %v2821_v59  ;;  %p2277_p7 = pnand %p2276_p6, %p3222_p2  ;;  %p2283_p5 = scmp.lt.s32.totalorder %s2281_s28, %s2275_s9 }
 0x1a7   : > { %v1319_v56 = vadd.f32 %v1318_v36, %v1317_v8  ;;  %v1516_v13 = vadd.f32 %v1515_v12, %v1514_v6  ;;  %v1525_v34 = vsel %vm1226_vm2, %v1412_v26, 0.0  ;;  %v1328_v25 = vsel %vm1226_vm2, %v2793_v18, 0.0 }
 0x1a8   : > { %v1330_v35 = vsel %vm1226_vm2, %v2821_v59, 0.0  ;;  %v1527_v7 = vsel %vm1226_vm2, %v1413_v27, 0.0  ;;  %v1529_v39 = vsel %vm1226_vm2, %v1414_v0, 0.0  ;;  %v1415_v42 = vmul.f32 %v2831_v9, %v2831_v9  ;;  %p2278_p9 = pneg %p2277_p7  ;;  %p2284_p10 = por %p2283_p5, %p2282_p11 }
 0x1a9   : > { %v1518_v16 = vadd.f32 %v1517_v21, %v1516_v13  ;;  %v1321_v31 = vadd.f32 %v1320_v45, %v1319_v56  ;;  %v1416_v48 = vmul.f32 %v2815_v53, %v2815_v53  ;;  %v1332_v18 = vsel %vm1226_vm2, %v2831_v9, 0.0 }
 0x1aa   : > { %v1334_v59 = vsel %vm1226_vm2, %v2815_v53, 0.0  ;;  %v1417_v60 = vmul.f32 %v2825_v3, %v2825_v3  ;;  %v1531_v24 = vsel %vm1226_vm2, %v1415_v42, 0.0  ;;  %v1418_v55 = vmul.f32 %v2853_v46, %v2853_v46  ;;  %p2285_p1 = pnand %p2284_p10, %p2278_p9 }
 0x1ab   : > { %v1323_v22 = vadd.f32 %v1322_v15, %v1321_v31  ;;  %v1520_v23 = vadd.f32 %v1519_v17, %v1518_v16  ;;  %v1533_v63 = vsel %vm1226_vm2, %v1416_v48, 0.0  ;;  %v1336_v9 = vsel %vm1226_vm2, %v2825_v3, 0.0 }
 0x1ac   : > { %v1338_v1 = vsel %vm1226_vm2, %v2853_v46, 0.0  ;;  %v1535_v5 = vsel %vm1226_vm2, %v1417_v60, 0.0  ;;  %v1537_v2 = vsel %vm1226_vm2, %v1418_v55, 0.0  ;;  %v1419_v6 = vmul.f32 %v2863_v62, %v2863_v62 }
 0x1ad   : > { %v1522_v29 = vadd.f32 %v1521_v19, %v1520_v23  ;;  %v1325_v61 = vadd.f32 %v1324_v40, %v1323_v22  ;;  %v1420_v11 = vmul.f32 %v2847_v41, %v2847_v41  ;;  %v1340_v3 = vsel %vm1226_vm2, %v2863_v62, 0.0 }
 0x1ae   : > { %v1342_v46 = vsel %vm1226_vm2, %v2847_v41, 0.0  ;;  %v1421_v56 = vmul.f32 %v2857_v50, %v2857_v50  ;;  %v1539_v13 = vsel %vm1226_vm2, %v1419_v6, 0.0  ;;  %v1422_v21 = vmul.f32 %v2885_v38, %v2885_v38 }
 0x1af   : > { %v1327_v30 = vadd.f32 %v1326_v14, %v1325_v61  ;;  %v1524_v51 = vadd.f32 %v1523_v28, %v1522_v29  ;;  %v1541_v16 = vsel %vm1226_vm2, %v1420_v11, 0.0  ;;  %v1344_v62 = vsel %vm1226_vm2, %v2857_v50, 0.0 }
 0x1b0   : > { %v1346_v31 = vsel %vm1226_vm2, %v2885_v38, 0.0  ;;  %v1543_v19 = vsel %vm1226_vm2, %v1421_v56, 0.0  ;;  %v1545_v20 = vsel %vm1226_vm2, %v1422_v21, 0.0  ;;  %v1423_v22 = vmul.f32 %v2897_v54, %v2897_v54 }
 0x1b1   : > { %v1526_v37 = vadd.f32 %v1525_v34, %v1524_v51  ;;  %v1329_v10 = vadd.f32 %v1328_v25, %v1327_v30  ;;  %v1424_v40 = vmul.f32 %v2879_v32, %v2879_v32  ;;  %v1348_v50 = vsel %vm1226_vm2, %v2897_v54, 0.0 }
 0x1b2   : > { %v1350_v61 = vsel %vm1226_vm2, %v2879_v32, 0.0  ;;  %v1425_v14 = vmul.f32 %v2891_v47, %v2891_v47  ;;  %v1547_v27 = vsel %vm1226_vm2, %v1423_v22, 0.0  ;;  %v1352_v51 = vsel %vm1226_vm2, %v2891_v47, 0.0 }
 0x1b3   : > { %v1331_v43 = vadd.f32 %v1330_v35, %v1329_v10  ;;  %v1528_v44 = vadd.f32 %v1527_v7, %v1526_v37  ;;  %v1549_v30 = vsel %vm1226_vm2, %v1424_v40, 0.0  ;;  %vm1360_vm3 = vcmask 57344  }
 0x1b4   : > { %v1551_v25 = vsel %vm1226_vm2, %v1425_v14, 0.0 }
 0x1b5   : > { %v1530_v49 = vadd.f32 %v1529_v39, %v1528_v44  ;;  %v1333_v52 = vadd.f32 %v1332_v18, %v1331_v43 }
 0x1b7   : > { %v1335_v57 = vadd.f32 %v1334_v59, %v1333_v52  ;;  %v1532_v58 = vadd.f32 %v1531_v24, %v1530_v49 }
 0x1b9   : > { %v1534_v4 = vadd.f32 %v1533_v63, %v1532_v58  ;;  %v1337_v53 = vadd.f32 %v1336_v9, %v1335_v57 }
 0x1bb   : > { %v1339_v8 = vadd.f32 %v1338_v1, %v1337_v53  ;;  %v1536_v36 = vadd.f32 %v1535_v5, %v1534_v4 }
 0x1bd   : > { %v1538_v12 = vadd.f32 %v1537_v2, %v1536_v36  ;;  %v1341_v33 = vadd.f32 %v1340_v3, %v1339_v8 }
 0x1bf   : > { %v1343_v45 = vadd.f32 %v1342_v46, %v1341_v33  ;;  %v1540_v15 = vadd.f32 %v1539_v13, %v1538_v12 }
 0x1c1   : > { %v1542_v17 = vadd.f32 %v1541_v16, %v1540_v15  ;;  %v1345_v41 = vadd.f32 %v1344_v62, %v1343_v45 }
 0x1c3   : > { %v1347_v23 = vadd.f32 %v1346_v31, %v1345_v41  ;;  %v1544_v26 = vadd.f32 %v1543_v19, %v1542_v17 }
 0x1c5   : > { %v1546_v29 = vadd.f32 %v1545_v20, %v1544_v26  ;;  %v1349_v38 = vadd.f32 %v1348_v50, %v1347_v23 }
 0x1c7   : > { %v1351_v28 = vadd.f32 %v1350_v61, %v1349_v38  ;;  %v1548_v0 = vadd.f32 %v1547_v27, %v1546_v29 }
 0x1c9   : > { %v1353_v54 = vadd.f32 %v1352_v51, %v1351_v28  ;;  %v1550_v34 = vadd.f32 %v1549_v30, %v1548_v0 }
 0x1cb   : > { %v1354_v35 = vrot.slane %v1353_v54, 4  ;;  %v1552_v37 = vadd.f32 %v1551_v25, %v1550_v34 }
 0x1cd   : > { %v1355_v32 = vadd.f32 %v1354_v35, %v1353_v54  ;;  %v1553_v10 = vrot.slane %v1552_v37, 4 }
 0x1cf   : > { %v1356_v7 = vrot.slane %v1355_v32, 2  ;;  %v1554_v39 = vadd.f32 %v1553_v10, %v1552_v37 }
 0x1d1   : > { %v1357_v42 = vadd.f32 %v1356_v7, %v1355_v32  ;;  %v1555_v43 = vrot.slane %v1554_v39, 2 }
 0x1d3   : > { %v1358_v44 = vrot.slane %v1357_v42, 1  ;;  %v1556_v48 = vadd.f32 %v1555_v43, %v1554_v39 }
 0x1d5   : > { %v1359_v47 = vadd.f32 %v1358_v44, %v1357_v42  ;;  %v1557_v18 = vrot.slane %v1556_v48, 1 }
 0x1d7   : > { %v1558_v49 = vadd.f32 %v1557_v18, %v1556_v48  ;;  %1361 = vst.msk [vmem:[%s259_s23] sm:$0x1] %vm1360_vm3, %v1359_v47 }
 0x1d9   : > { %1559 = vst.msk [vmem:[%s259_s23 + $0x1] sm:$0x1] %vm1360_vm3, %v1558_v49 }
 0x1da   : > { %2288 = shalt.err (!%p2285_p1)
}
 0x1db   : > { %s2289_s8 = scalar_lea.hbm %s3160_s5, 128  ;;  %s2293_s24 = scalar_lea.hbm %s3211_s3, 512 }
 0x1dc   : > { %p2290_p3 = scmp.ne.s32.totalorder %s3160_s5, %s2289_s8  ;;  %p2294_p13 = scmp.lt.u32.totalorder %s3160_s5, %s3211_s3 }
 0x1dd   : > { %p2295_p0 = scmp.lt.u32.totalorder %s2293_s24, %s2289_s8  ;;  %p2297_p6 = scmp.lt.u32.totalorder %s2289_s8, %s3160_s5 }
 0x1de   : > { %p2291_p4 = pnand %p2290_p3, %p3222_p2 }
 0x1df   : > { %p2296_p12 = por %p2295_p0, %p2294_p13 }
 0x1e0   : > { %p2292_p8 = pneg %p2291_p4 }
 0x1e1   : > { %p2298_p7 = por %p2297_p6, %p2296_p12 }
 0x1e3   : > { %p2299_p9 = pnand %p2298_p7, %p2292_p8 }
 0x1e5   : > { %2302 = shalt.err (!%p2299_p9)
}
 0x1e6   : > { %2080 = dma.vmem_to_hbm [thread:$0]  (%p3222_p2), %s3162_s18, 128, %s3160_s5, %s1566_s19  }
 0x1e7 PF: > { %p2098_p11 = scmp.ge.s32.totalorder %s2365_s17, 2  ;;  %s1610_s29 = sand.u32 1, %s2345_s12  }
 0x1e8   : > { %p3223_p5 = scmp.ne.s32.totalorder %s3217_s27, 0  ;;  %s1611_s6 = scalar_lea.sflag [#allocation4], %s1610_s29 }
 0x1ea   : > { %p2091_p10 = pnand %p2098_p11, %p3223_p5 }
 0x1ec   : > { %2336 = dma.done.wait (!%p2091_p10), %s1611_s6, 4096  }
 0x1ed   : > { %2338 = vsyncadd (!%p2091_p10), %s1611_s6, 4294963200  ;;  %s1620_s23 = scalar_lea.sflag [#allocation9], %s1610_s29 }
 0x1ee   : > { %2340 = dma.done.wait (!%p2091_p10), %s1620_s23, 128  }
 0x1ef   : > { %2342 = vsyncadd (!%p2091_p10), %s1620_s23, 4294967168  ;;  %s26_s17 = sadd.s32 1, %s2365_s17   ;;  %s3224_s12 = smov %s2349_s13 }
 0x1f0   : > { %p23_p1 = scmp.ge.s32.totalorder %s26_s17, 6   ;;  %s3225_s13 = smov %s2353_s14 }
 0x1f1   : > { %s3226_s14 = smov %s2451_s26  ;;  %s3227_s15 = smov %s2361_s16 }
 0x1f2   : > { %s3228_s16 = smov %s3230_s20  ;;  %25 = sbr.rel (!%p23_p1) target bundleno = 10 (0xa), region = 103 }
 0x1f9   :  { %1625 = vsyncpa [#allocation3], 1 }
 0x1fa   :  { %1627 = vsyncpa [#allocation3 + $0x1], 1 }
 0x1fb   :  { %1628 = vsyncpa [#allocation6], 1 }
 0x1fc   :  { %1630 = vsyncpa [#allocation6 + $0x1], 1 }
 0x1fd   :  { %1631 = vsyncpa [#allocation4], 1 }
 0x1fe   :  { %1633 = vsyncpa [#allocation4 + $0x1], 1 }
 0x1ff   :  { %1634 = vsyncpa [#allocation9], 1 }
 0x200   :  { %1636 = vsyncpa [#allocation9 + $0x1], 1 }

// kernel: a_call__.9
= control target key start
LH: loop header
LB: loop body
LE: loop exit
PB: predicated region body
PF: predicated region fallthrough
CT: control target
= control target key end

     0   :  { %7 = vsyncpa [#allocation3], 0  ;;  %s7315_s0 = inlined_call_operand.hbm [shape: bf16[4,2048,32], index: 0, kind: input, shape index: {}]   ;;  %s7316_s1 = inlined_call_operand.hbm [shape: bf16[4,32,128], index: 1, kind: input, shape index: {}]   ;;  %s7317_s2 = inlined_call_operand.hbm [shape: bf16[4,2048,3], index: 2, kind: output, shape index: {}]  }
   0x1   :  { %9 = vsyncpa [#allocation3 + $0x1], 0 }
   0x2   :  { %10 = vsyncpa [#allocation6], 0 }
   0x3   :  { %12 = vsyncpa [#allocation6 + $0x1], 0 }
   0x4   :  { %13 = vsyncpa [#allocation4], 0 }
   0x5   :  { %15 = vsyncpa [#allocation4 + $0x1], 0  ;;  %s6309_s9 = smov 0   ;;  %s6311_s10 = smov 0  }
   0x6   :  { %s6313_s11 = smov 0   ;;  %s6315_s12 = smov 0  }
   0x7   :  { %s6317_s13 = smov 0   ;;  %s6319_s14 = smov 0  }
   0x8 LB: > { %s4240_s15 = sadd.s32 4294967295, %s6285_s14   ;;  %s4241_s16 = sadd.s32 4294967294, %s6285_s14   ;;  %s6285_s14 = sphi %s6319_s14, %s21_s14   ;;  %s6281_s13 = sphi %s6317_s13, %s7334_s13   ;;  %s6277_s12 = sphi %s6315_s12, %s7333_s12   ;;  %s6273_s11 = sphi %s6313_s11, %s7332_s11   ;;  %s6269_s10 = sphi %s6311_s10, %s7331_s10   ;;  %s6265_s9 = sphi %s6309_s9, %s7330_s9  }
   0x9   : > { %s33_s17 = sadd.s32 1, %s6281_s13  ;;  %s42_s18 = sadd.s32 1, %s6273_s11 }
   0xa   : > { %p35_p0 = scmp.ge.s32.totalorder %s33_s17, 4  ;;  %p49_p1 = scmp.ne.s32.totalorder %s6273_s11, %s6269_s10 }
   0xb   : > { %p50_p2 = scmp.eq.s32.totalorder %s6285_s14, 0  ;;  %p55_p3 = scmp.ne.s32.totalorder %s6269_s10, %s6265_s9 }
   0xc   : > { %s7336_s17 = smov (%p35_p0, %s33_s17), 0  ;;  %p56_p5 = scmp.eq.s32.totalorder %s4240_s15, 0 }
   0xd   : > { %p6350_p4 = por %p50_p2, %p49_p1  ;;  %s37_s20 = ssub.s32 %s6281_s13, %s7336_s17 }
   0xe   : > { %p107_p6 = scmp.eq.s32.totalorder %s4240_s15, 3  ;;  %p40_p7 = scmp.eq.s32.totalorder %s37_s20, 0 }
   0xf   : > { %p6356_p8 = por %p56_p5, %p55_p3  ;;  %p113_p10 = scmp.eq.s32.totalorder %s4241_s16, 3 }
  0x10   : > { %p6360_p9 = por %p107_p6, %p49_p1  ;;  %p5443_p12 = scmp.lt.s32.totalorder %s6285_s14, 4 }
  0x11   : > { %s7321_s21 = scalar_select %p6356_p8, 1, 0 }
  0x12   : > { %s7322_s22 = scalar_select %p6360_p9, 1, 0 }
  0x13   : > { %s6365_s23 = scalar_select %p40_p7, %s6273_s11, %s42_s18  }
  0x14   : > { %p6367_p11 = por %p113_p10, %p55_p3  ;;  %s6373_s25 = sand.u32 1, %s6273_s11  }
  0x15   : > { %s4244_s26 = sshll.u32 %s6373_s25, 10  ;;  %s4773_s27 = sshll.u32 %s6281_s13, 14 }
  0x16   : > { %s7323_s24 = scalar_select %p6367_p11, 1, 0 }
  0x17   : > { %s6380_s30 = scalar_lea.hbm %s7315_s0, %s4773_s27  ;;  %s137_s3 = scalar_lea.vmem [#allocation2], %s4244_s26 }
  0x18   : > { %s146_s4 = sshll.u32 %s137_s3, 4  ;;  %p6386_p13 = pnand %p5443_p12, %p6350_p4  ;;  %s6382_s4 = int_to_ptr.vmem [resolvable:$true] %s146_s4 }
  0x19   : > { %s134_s6 = scalar_lea.sflag [#allocation3], %s6373_s25  ;;  %s6139_s7 = scalar_lea.hbm %s6380_s30, 16384 }
  0x1a   : > { %p6140_p1 = scmp.ne.s32.totalorder %s6380_s30, %s6139_s7  ;;  %p6141_p2 = pneg %p6386_p13 }
  0x1b   : > { %s6144_s16 = scalar_lea.hbm %s7315_s0, 65536  ;;  %p6145_p4 = scmp.lt.u32.totalorder %s6380_s30, %s7315_s0 }
  0x1c   : > { %p6142_p3 = pnand %p6141_p2, %p6140_p1  ;;  %p6146_p6 = scmp.lt.u32.totalorder %s6144_s16, %s6139_s7 }
  0x1d   : > { %p6148_p10 = scmp.lt.u32.totalorder %s6139_s7, %s6380_s30 }
  0x1e   : > { %p6143_p5 = pneg %p6142_p3  ;;  %p6147_p7 = por %p6146_p6, %p6145_p4 }
  0x20   : > { %p6149_p12 = por %p6148_p10, %p6147_p7 }
  0x22   : > { %p6150_p0 = pnand %p6149_p12, %p6143_p5 }
  0x24   : > { %6153 = shalt.err (!%p6150_p0)
}
  0x25   : > { %s6154_s20 = scalar_lea.vmem %s6382_s4, 16384  ;;  %s6287_s26 = smov [#allocation2]  }
  0x26   : > { %p6155_p1 = scmp.ne.s32.totalorder %s6382_s4, %s6154_s20  ;;  %s6159_s27 = sshll.u32 %s6287_s26, 4  ;;  %s6160_s27 = int_to_ptr.vmem [resolvable:$false] %s6159_s27 }
  0x27   : > { %s6161_s28 = scalar_lea.vmem %s6160_s27, 32768  ;;  %p6162_p9 = scmp.lt.s32.totalorder %s6382_s4, %s6160_s27 }
  0x28   : > { %p6157_p3 = pnand %p6155_p1, %p6141_p2  ;;  %p6163_p4 = scmp.lt.s32.totalorder %s6161_s28, %s6154_s20 }
  0x2a   : > { %p6158_p11 = pneg %p6157_p3  ;;  %p6164_p6 = por %p6163_p4, %p6162_p9 }
  0x2c   : > { %p6165_p7 = pnand %p6164_p6, %p6158_p11 }
  0x2e   : > { %6168 = shalt.err (!%p6165_p7)
}
  0x2f   : > { %s6288_s29 = smov 64   ;;  %s6289_s3 = smov 4  }
  0x30   : > { %5435 = dma.hbm_to_vmem [thread:$0]  (!%p6386_p13), %s6380_s30, 16384, %s6382_s4, %s134_s6, %s6288_s29, %s6288_s29, %s6289_s3  }
  0x31   : > { %p175_p9 = scmp.lt.s32.totalorder %s6285_s14, 5  ;;  %s4247_s7 = sshll.u32 %s6373_s25, 4 }
  0x32   : > { %s4774_s8 = sshll.u32 %s6281_s13, 8  ;;  %p7325_p11 = scmp.ge.s32.totalorder %s6285_s14, 1 }
  0x33   : > { %s6434_s19 = scalar_lea.hbm %s7316_s1, %s4774_s8  ;;  %s160_s20 = scalar_lea.vmem [#allocation5], %s4247_s7 }
  0x34   : > { %p6427_p0 = pnand %p7325_p11, %p175_p9  ;;  %s167_s26 = sshll.u32 %s160_s20, 4  ;;  %s6436_s26 = int_to_ptr.vmem [resolvable:$true] %s167_s26 }
  0x35   : > { %s157_s30 = scalar_lea.sflag [#allocation6], %s6373_s25  ;;  %s6169_s4 = scalar_lea.hbm %s6434_s19, 256 }
  0x36   : > { %p6170_p5 = scmp.ne.s32.totalorder %s6434_s19, %s6169_s4  ;;  %s6174_s28 = scalar_lea.hbm %s7316_s1, 1024 }
  0x37   : > { %p6175_p1 = scmp.lt.u32.totalorder %s6434_s19, %s7316_s1  ;;  %p6176_p3 = scmp.lt.u32.totalorder %s6174_s28, %s6169_s4 }
  0x38   : > { %p6172_p10 = pnand %p6170_p5, %p6141_p2  ;;  %p6178_p6 = scmp.lt.u32.totalorder %s6169_s4, %s6434_s19 }
  0x39   : > { %p6177_p4 = por %p6176_p3, %p6175_p1 }
  0x3a   : > { %p6173_p12 = pneg %p6172_p10 }
  0x3b   : > { %p6179_p7 = por %p6178_p6, %p6177_p4 }
  0x3d   : > { %p6180_p9 = pnand %p6179_p7, %p6173_p12 }
  0x3f   : > { %6183 = shalt.err (!%p6180_p9)
}
  0x40   : > { %s6184_s7 = scalar_lea.vmem %s6436_s26, 256  ;;  %s6290_s18 = smov [#allocation5]  }
  0x41   : > { %p6185_p11 = scmp.ne.s32.totalorder %s6436_s26, %s6184_s7  ;;  %s6189_s20 = sshll.u32 %s6290_s18, 4  ;;  %s6190_s20 = int_to_ptr.vmem [resolvable:$false] %s6189_s20 }
  0x42   : > { %s6191_s6 = scalar_lea.vmem %s6190_s20, 512  ;;  %p6192_p8 = scmp.lt.s32.totalorder %s6436_s26, %s6190_s20 }
  0x43   : > { %p6187_p5 = pnand %p6185_p11, %p6141_p2  ;;  %p6193_p1 = scmp.lt.s32.totalorder %s6191_s6, %s6184_s7 }
  0x45   : > { %p6188_p10 = pneg %p6187_p5  ;;  %p6194_p3 = por %p6193_p1, %p6192_p8 }
  0x47   : > { %p6195_p4 = pnand %p6194_p3, %p6188_p10 }
  0x49   : > { %6198 = shalt.err (!%p6195_p4)
}
  0x4a   : > { %5438 = dma.hbm_to_vmem [thread:$0]  (!%p6386_p13), %s6434_s19, 256, %s6436_s26, %s157_s30, %s6288_s29, %s6288_s29, %s6289_s3  }
  0x4b   : > { %179 = sbr.rel (%p6427_p0) target bundleno = 593 (0x251), region = 28  ;;  %s6470_s4 = sand.u32 (!%p6427_p0), 1, %s6269_s10  }
  0x4c   : > { %s4251_s27 = sshll.u32 (!%p6427_p0), %s6470_s4, 10  ;;  %s182_s5 = scalar_lea.sflag (!%p6427_p0), [#allocation3], %s6470_s4 }
  0x4d   : > { %s6476_s28 = scalar_lea.vmem (!%p6427_p0), [#allocation2], %s4251_s27  ;;  %p7327_p8 = scmp.ne.s32.totalorder (!%p6427_p0), %s7321_s21, 0 }
  0x52   : > { %6252 = dma.done.wait (%p7327_p8), %s182_s5, 16384  }
  0x53   : > { %6254 = vsyncadd (%p7327_p8), %s182_s5, 4294950912  ;;  %s4252_s25 = sshll.u32 %s6470_s4, 4  ;;  %s191_s29 = scalar_lea.sflag [#allocation6], %s6470_s4 }
  0x54   : > { %s194_s3 = scalar_lea.vmem [#allocation5], %s4252_s25 }
  0x55   : > { %6256 = dma.done.wait (%p7327_p8), %s191_s29, 256  }
  0x56   : > { %6258 = vsyncadd (%p7327_p8), %s191_s29, 4294967040  ;;  %v5497_v0 = vld [vmem:[%s194_s3] sm:$0xff]   ;;  %v5498_v1 = vld [vmem:[%s194_s3 + $0x8] sm:$0xff]   ;;  %vm1135_vm0 = vcmask 261120   ;;  %vm3857_vm1 = vcmask 19456   ;;  %s6724_s21 = scalar_lea.vmem [#allocation7], %s4251_s27 }
  0x57   : > { %5162 = vmatprep.subr.bf16.mxu0 %v5497_v0  ;;  %5422 = vmatprep.subr.bf16.mxu1 %v5497_v0  ;;  %v5499_v2 = vld [vmem:[%s6476_s28] sm:$0xff]   ;;  %v5501_v4 = vld [vmem:[%s6476_s28 + $0x8] sm:$0xff]   ;;  %v5503_v6 = vld [vmem:[%s6476_s28 + $0x10] sm:$0xff]   ;;  %s5031_s15 = sshll.u32 %s6277_s12, 14  ;;  %s4130_s19 = sshll.u32 %s6724_s21, 4  ;;  %s7261_s19 = int_to_ptr.vmem [resolvable:$true] %s4130_s19 }
  0x58   : > { %5163 = vmatpush3.bf16.msra.mxu0 %v5497_v0  ;;  %5424 = vmatpush3.bf16.msra.mxu1 %v5497_v0  ;;  %v5500_v3 = vld [vmem:[%s6476_s28 + $0x200] sm:$0xff]   ;;  %v5502_v5 = vld [vmem:[%s6476_s28 + $0x208] sm:$0xff]   ;;  %v5504_v7 = vld [vmem:[%s6476_s28 + $0x210] sm:$0xff]   ;;  %s7259_s12 = scalar_lea.hbm %s7317_s2, %s5031_s15  ;;  %s4115_s8 = scalar_lea.sflag [#allocation4], %s6470_s4 }
  0x59   : > { %5164 = vmatprep.subr.bf16.mxu0 %v5498_v1  ;;  %5423 = vmatprep.subr.bf16.mxu1 %v5498_v1  ;;  %v5505_v8 = vld [vmem:[%s6476_s28 + $0x18] sm:$0xff]   ;;  %v5507_v10 = vld [vmem:[%s6476_s28 + $0x20] sm:$0xff]   ;;  %v5509_v12 = vld [vmem:[%s6476_s28 + $0x28] sm:$0xff]   ;;  %s6199_s16 = scalar_lea.vmem %s7261_s19, 16384  ;;  %p7328_p2 = scmp.ne.s32.totalorder %s7322_s22, 0 }
  0x5a   : > { %5166 = vmatprep.mubr.msk.bf16.mxu0 %vm1135_vm0, %v5499_v2  ;;  %5294 = vmatprep.mubr.msk.bf16.mxu1 %vm1135_vm0, %v5500_v3  ;;  %v5506_v9 = vld [vmem:[%s6476_s28 + $0x218] sm:$0xff]   ;;  %v5508_v11 = vld [vmem:[%s6476_s28 + $0x220] sm:$0xff]   ;;  %v5510_v13 = vld [vmem:[%s6476_s28 + $0x228] sm:$0xff]   ;;  %p6200_p13 = scmp.ne.s32.totalorder %s7261_s19, %s6199_s16  ;;  %s6291_s7 = smov [#allocation7]  }
  0x5b   : > { %v5511_v14 = vld [vmem:[%s6476_s28 + $0x30] sm:$0xff]   ;;  %v5513_v16 = vld [vmem:[%s6476_s28 + $0x38] sm:$0xff]   ;;  %v5515_v18 = vld [vmem:[%s6476_s28 + $0x40] sm:$0xff]   ;;  %s6203_s18 = sshll.u32 %s6291_s7, 4  ;;  %s6204_s18 = int_to_ptr.vmem [resolvable:$false] %s6203_s18 }
  0x5c   : > { %5165 = vmatpush3.bf16.msra.mxu0 %v5498_v1  ;;  %5425 = vmatpush3.bf16.msra.mxu1 %v5498_v1  ;;  %v5512_v15 = vld [vmem:[%s6476_s28 + $0x230] sm:$0xff]   ;;  %v5514_v17 = vld [vmem:[%s6476_s28 + $0x238] sm:$0xff]   ;;  %v5516_v19 = vld [vmem:[%s6476_s28 + $0x240] sm:$0xff]   ;;  %p6201_p0 = pnand %p6200_p13, %p7328_p2  ;;  %s6205_s20 = scalar_lea.vmem %s6204_s18, 32768 }
  0x5d   : > { %v5517_v20 = vld [vmem:[%s6476_s28 + $0x48] sm:$0xff]   ;;  %v5519_v22 = vld [vmem:[%s6476_s28 + $0x50] sm:$0xff]   ;;  %v5521_v24 = vld [vmem:[%s6476_s28 + $0x58] sm:$0xff]   ;;  %p6206_p6 = scmp.lt.s32.totalorder %s7261_s19, %s6204_s18  ;;  %p6207_p7 = scmp.lt.s32.totalorder %s6205_s20, %s6199_s16 }
  0x5e   : > { %v5518_v21 = vld [vmem:[%s6476_s28 + $0x248] sm:$0xff]   ;;  %v5520_v23 = vld [vmem:[%s6476_s28 + $0x250] sm:$0xff]   ;;  %v5522_v25 = vld [vmem:[%s6476_s28 + $0x258] sm:$0xff]   ;;  %p6202_p12 = pneg %p6201_p0 }
  0x5f   : > { %5167 = vmatmul.mubr.msk.bf16.vlgmr.msra.gmra.mrb[0].mxu0 %vm1135_vm0, %v5501_v4  ;;  %5295 = vmatmul.mubr.msk.bf16.vlgmr.msra.gmra.mrb[0].mxu1 %vm1135_vm0, %v5502_v5  ;;  %v5523_v26 = vld [vmem:[%s6476_s28 + $0x60] sm:$0xff]   ;;  %v5525_v28 = vld [vmem:[%s6476_s28 + $0x68] sm:$0xff]   ;;  %v5527_v30 = vld [vmem:[%s6476_s28 + $0x70] sm:$0xff]   ;;  %p6208_p9 = por %p6207_p7, %p6206_p6 }
  0x60   : > { %5170 = vmatprep.mubr.msk.bf16.mxu0 %vm1135_vm0, %v5503_v6  ;;  %5298 = vmatprep.mubr.msk.bf16.mxu1 %vm1135_vm0, %v5504_v7  ;;  %v5524_v27 = vld [vmem:[%s6476_s28 + $0x260] sm:$0xff]   ;;  %v5526_v29 = vld [vmem:[%s6476_s28 + $0x268] sm:$0xff]   ;;  %v5528_v31 = vld [vmem:[%s6476_s28 + $0x270] sm:$0xff]  }
  0x61   : > { %v5529_v32 = vld [vmem:[%s6476_s28 + $0x78] sm:$0xff]   ;;  %v5531_v34 = vld [vmem:[%s6476_s28 + $0x80] sm:$0xff]   ;;  %v5533_v36 = vld [vmem:[%s6476_s28 + $0x88] sm:$0xff]   ;;  %p6209_p11 = pnand %p6208_p9, %p6202_p12 }
  0x62   : > { %v5530_v33 = vld [vmem:[%s6476_s28 + $0x278] sm:$0xff]   ;;  %v5532_v35 = vld [vmem:[%s6476_s28 + $0x280] sm:$0xff]   ;;  %v5534_v37 = vld [vmem:[%s6476_s28 + $0x288] sm:$0xff]  }
  0x63   : > { %v5535_v38 = vld [vmem:[%s6476_s28 + $0x90] sm:$0xff]   ;;  %v5537_v40 = vld [vmem:[%s6476_s28 + $0x98] sm:$0xff]   ;;  %v5539_v42 = vld [vmem:[%s6476_s28 + $0xa0] sm:$0xff]  }
  0x64   : > { %v5536_v39 = vld [vmem:[%s6476_s28 + $0x290] sm:$0xff]   ;;  %v5538_v41 = vld [vmem:[%s6476_s28 + $0x298] sm:$0xff]   ;;  %v5540_v43 = vld [vmem:[%s6476_s28 + $0x2a0] sm:$0xff]  }
  0x65   : > { %v5541_v44 = vld [vmem:[%s6476_s28 + $0xa8] sm:$0xff]   ;;  %v5543_v46 = vld [vmem:[%s6476_s28 + $0xb0] sm:$0xff]   ;;  %v5545_v48 = vld [vmem:[%s6476_s28 + $0xb8] sm:$0xff]  }
  0x66   : > { %v5542_v45 = vld [vmem:[%s6476_s28 + $0x2a8] sm:$0xff]   ;;  %v5544_v47 = vld [vmem:[%s6476_s28 + $0x2b0] sm:$0xff]   ;;  %v5546_v49 = vld [vmem:[%s6476_s28 + $0x2b8] sm:$0xff]  }
  0x67   : > { %5171 = vmatmul.mubr.msk.bf16.gmra.mrb[4].mxu0 %vm1135_vm0, %v5505_v8  ;;  %5299 = vmatmul.mubr.msk.bf16.gmra.mrb[4].mxu1 %vm1135_vm0, %v5506_v9  ;;  %v5547_v50 = vld [vmem:[%s6476_s28 + $0xc0] sm:$0xff]   ;;  %v5549_v52 = vld [vmem:[%s6476_s28 + $0xc8] sm:$0xff]   ;;  %v5551_v54 = vld [vmem:[%s6476_s28 + $0xd0] sm:$0xff]  }
  0x68   : > { %5174 = vmatprep.mubr.msk.bf16.mxu0 %vm1135_vm0, %v5507_v10  ;;  %5302 = vmatprep.mubr.msk.bf16.mxu1 %vm1135_vm0, %v5508_v11  ;;  %v5548_v51 = vld [vmem:[%s6476_s28 + $0x2c0] sm:$0xff]   ;;  %v5550_v53 = vld [vmem:[%s6476_s28 + $0x2c8] sm:$0xff]   ;;  %v5552_v55 = vld [vmem:[%s6476_s28 + $0x2d0] sm:$0xff]  }
  0x69   : > { %v5553_v56 = vld [vmem:[%s6476_s28 + $0xd8] sm:$0xff]   ;;  %v5555_v58 = vld [vmem:[%s6476_s28 + $0xe0] sm:$0xff]   ;;  %v5557_v60 = vld [vmem:[%s6476_s28 + $0xe8] sm:$0xff]  }
  0x6a   : > { %v5554_v57 = vld [vmem:[%s6476_s28 + $0x2d8] sm:$0xff]   ;;  %v5556_v59 = vld [vmem:[%s6476_s28 + $0x2e0] sm:$0xff]   ;;  %v5558_v61 = vld [vmem:[%s6476_s28 + $0x2e8] sm:$0xff]  }
  0x6b   : > { %v5559_v62 = vld [vmem:[%s6476_s28 + $0xf0] sm:$0xff]   ;;  %v5561_v0 = vld [vmem:[%s6476_s28 + $0xf8] sm:$0xff]   ;;  %v5563_v2 = vld [vmem:[%s6476_s28 + $0x100] sm:$0xff]  }
  0x6c   : > { %v5560_v63 = vld [vmem:[%s6476_s28 + $0x2f0] sm:$0xff]   ;;  %v5562_v1 = vld [vmem:[%s6476_s28 + $0x2f8] sm:$0xff]   ;;  %v5564_v3 = vld [vmem:[%s6476_s28 + $0x300] sm:$0xff]  }
  0x6d   : > { %v5565_v4 = vld [vmem:[%s6476_s28 + $0x108] sm:$0xff]   ;;  %v5567_v6 = vld [vmem:[%s6476_s28 + $0x110] sm:$0xff]   ;;  %v5569_v8 = vld [vmem:[%s6476_s28 + $0x118] sm:$0xff]  }
  0x6e   : > { %v5566_v5 = vld [vmem:[%s6476_s28 + $0x308] sm:$0xff]   ;;  %v5568_v7 = vld [vmem:[%s6476_s28 + $0x310] sm:$0xff]   ;;  %v5570_v9 = vld [vmem:[%s6476_s28 + $0x318] sm:$0xff]  }
  0x6f   : > { %5175 = vmatmul.mubr.msk.bf16.gmra.mrb[8].mxu0 %vm1135_vm0, %v5509_v12  ;;  %5303 = vmatmul.mubr.msk.bf16.gmra.mrb[8].mxu1 %vm1135_vm0, %v5510_v13  ;;  %v5571_v10 = vld [vmem:[%s6476_s28 + $0x120] sm:$0xff]   ;;  %v5573_v12 = vld [vmem:[%s6476_s28 + $0x128] sm:$0xff]  }
  0x70   : > { %5178 = vmatprep.mubr.msk.bf16.mxu0 %vm1135_vm0, %v5511_v14  ;;  %5306 = vmatprep.mubr.msk.bf16.mxu1 %vm1135_vm0, %v5512_v15  ;;  %v5572_v11 = vld [vmem:[%s6476_s28 + $0x320] sm:$0xff]   ;;  %v5574_v13 = vld [vmem:[%s6476_s28 + $0x328] sm:$0xff]   ;;  %v5575_v14 = vld [vmem:[%s6476_s28 + $0x130] sm:$0xff]  }
  0x71   : > { %v5576_v15 = vld [vmem:[%s6476_s28 + $0x330] sm:$0xff]  }
  0x77   : > { %5179 = vmatmul.mubr.msk.bf16.gmra.mrb[12].mxu0 %vm1135_vm0, %v5513_v16  ;;  %5307 = vmatmul.mubr.msk.bf16.gmra.mrb[12].mxu1 %vm1135_vm0, %v5514_v17  ;;  %v5577_v16 = vld [vmem:[%s6476_s28 + $0x138] sm:$0xff]  }
  0x78   : > { %5182 = vmatprep.mubr.msk.bf16.mxu0 %vm1135_vm0, %v5515_v18  ;;  %5310 = vmatprep.mubr.msk.bf16.mxu1 %vm1135_vm0, %v5516_v19  ;;  %v5578_v17 = vld [vmem:[%s6476_s28 + $0x338] sm:$0xff]   ;;  %v5579_v18 = vld [vmem:[%s6476_s28 + $0x140] sm:$0xff]  }
  0x79   : > { %v5580_v19 = vld [vmem:[%s6476_s28 + $0x340] sm:$0xff]  }
  0x7f   : > { %5183 = vmatmul.mubr.msk.bf16.gmra.mrb[16].mxu0 %vm1135_vm0, %v5517_v20  ;;  %5311 = vmatmul.mubr.msk.bf16.gmra.mrb[16].mxu1 %vm1135_vm0, %v5518_v21  ;;  %v5581_v20 = vld [vmem:[%s6476_s28 + $0x148] sm:$0xff]  }
  0x80   : > { %5186 = vmatprep.mubr.msk.bf16.mxu0 %vm1135_vm0, %v5519_v22  ;;  %5314 = vmatprep.mubr.msk.bf16.mxu1 %vm1135_vm0, %v5520_v23  ;;  %v5582_v21 = vld [vmem:[%s6476_s28 + $0x348] sm:$0xff]   ;;  %v5583_v22 = vld [vmem:[%s6476_s28 + $0x150] sm:$0xff]  }
  0x81   : > { %v5584_v23 = vld [vmem:[%s6476_s28 + $0x350] sm:$0xff]  }
  0x87   : > { %5187 = vmatmul.mubr.msk.bf16.gmra.mrb[20].mxu0 %vm1135_vm0, %v5521_v24  ;;  %5315 = vmatmul.mubr.msk.bf16.gmra.mrb[20].mxu1 %vm1135_vm0, %v5522_v25  ;;  %v5585_v24 = vld [vmem:[%s6476_s28 + $0x158] sm:$0xff]  }
  0x88   : > { %5190 = vmatprep.mubr.msk.bf16.mxu0 %vm1135_vm0, %v5523_v26  ;;  %5318 = vmatprep.mubr.msk.bf16.mxu1 %vm1135_vm0, %v5524_v27  ;;  %v5586_v25 = vld [vmem:[%s6476_s28 + $0x358] sm:$0xff]   ;;  %v5587_v26 = vld [vmem:[%s6476_s28 + $0x160] sm:$0xff]  }
  0x89   : > { %v5588_v27 = vld [vmem:[%s6476_s28 + $0x360] sm:$0xff]  }
  0x8f   : > { %5191 = vmatmul.mubr.msk.bf16.gmra.mrb[24].mxu0 %vm1135_vm0, %v5525_v28  ;;  %5319 = vmatmul.mubr.msk.bf16.gmra.mrb[24].mxu1 %vm1135_vm0, %v5526_v29  ;;  %v5589_v28 = vld [vmem:[%s6476_s28 + $0x168] sm:$0xff]  }
  0x90   : > { %5194 = vmatprep.mubr.msk.bf16.mxu0 %vm1135_vm0, %v5527_v30  ;;  %5322 = vmatprep.mubr.msk.bf16.mxu1 %vm1135_vm0, %v5528_v31  ;;  %v5590_v29 = vld [vmem:[%s6476_s28 + $0x368] sm:$0xff]   ;;  %v5591_v30 = vld [vmem:[%s6476_s28 + $0x170] sm:$0xff]  }
  0x91   : > { %v5592_v31 = vld [vmem:[%s6476_s28 + $0x370] sm:$0xff]  }
  0x97   : > { %5195 = vmatmul.mubr.msk.bf16.gmra.mrb[28].mxu0 %vm1135_vm0, %v5529_v32  ;;  %5323 = vmatmul.mubr.msk.bf16.gmra.mrb[28].mxu1 %vm1135_vm0, %v5530_v33  ;;  %v5593_v32 = vld [vmem:[%s6476_s28 + $0x178] sm:$0xff]  }
  0x98   : > { %5198 = vmatprep.mubr.msk.bf16.mxu0 %vm1135_vm0, %v5531_v34  ;;  %5326 = vmatprep.mubr.msk.bf16.mxu1 %vm1135_vm0, %v5532_v35  ;;  %v5594_v33 = vld [vmem:[%s6476_s28 + $0x378] sm:$0xff]   ;;  %v5595_v34 = vld [vmem:[%s6476_s28 + $0x180] sm:$0xff]  }
  0x99   : > { %v5596_v35 = vld [vmem:[%s6476_s28 + $0x380] sm:$0xff]  }
  0x9f   : > { %5199 = vmatmul.mubr.msk.bf16.gmra.mrb[32].mxu0 %vm1135_vm0, %v5533_v36  ;;  %5327 = vmatmul.mubr.msk.bf16.gmra.mrb[32].mxu1 %vm1135_vm0, %v5534_v37  ;;  %v5597_v36 = vld [vmem:[%s6476_s28 + $0x188] sm:$0xff]  }
  0xa0   : > { %5202 = vmatprep.mubr.msk.bf16.mxu0 %vm1135_vm0, %v5535_v38  ;;  %5330 = vmatprep.mubr.msk.bf16.mxu1 %vm1135_vm0, %v5536_v39  ;;  %v5598_v37 = vld [vmem:[%s6476_s28 + $0x388] sm:$0xff]   ;;  %v5599_v38 = vld [vmem:[%s6476_s28 + $0x190] sm:$0xff]  }
  0xa1   : > { %v5600_v39 = vld [vmem:[%s6476_s28 + $0x390] sm:$0xff]  }
  0xa7   : > { %5203 = vmatmul.mubr.msk.bf16.gmra.mrb[36].mxu0 %vm1135_vm0, %v5537_v40  ;;  %5331 = vmatmul.mubr.msk.bf16.gmra.mrb[36].mxu1 %vm1135_vm0, %v5538_v41  ;;  %v5601_v40 = vld [vmem:[%s6476_s28 + $0x198] sm:$0xff]  }
  0xa8   : > { %5206 = vmatprep.mubr.msk.bf16.mxu0 %vm1135_vm0, %v5539_v42  ;;  %5334 = vmatprep.mubr.msk.bf16.mxu1 %vm1135_vm0, %v5540_v43  ;;  %v5602_v41 = vld [vmem:[%s6476_s28 + $0x398] sm:$0xff]   ;;  %v5603_v42 = vld [vmem:[%s6476_s28 + $0x1a0] sm:$0xff]  }
  0xa9   : > { %v5604_v43 = vld [vmem:[%s6476_s28 + $0x3a0] sm:$0xff]  }
  0xaf   : > { %5207 = vmatmul.mubr.msk.bf16.gmra.mrb[40].mxu0 %vm1135_vm0, %v5541_v44  ;;  %5335 = vmatmul.mubr.msk.bf16.gmra.mrb[40].mxu1 %vm1135_vm0, %v5542_v45  ;;  %v5605_v44 = vld [vmem:[%s6476_s28 + $0x1a8] sm:$0xff]  }
  0xb0   : > { %5210 = vmatprep.mubr.msk.bf16.mxu0 %vm1135_vm0, %v5543_v46  ;;  %5338 = vmatprep.mubr.msk.bf16.mxu1 %vm1135_vm0, %v5544_v47  ;;  %v5606_v45 = vld [vmem:[%s6476_s28 + $0x3a8] sm:$0xff]   ;;  %v5607_v46 = vld [vmem:[%s6476_s28 + $0x1b0] sm:$0xff]  }
  0xb1   : > { %v5608_v47 = vld [vmem:[%s6476_s28 + $0x3b0] sm:$0xff]  }
  0xb7   : > { %5211 = vmatmul.mubr.msk.bf16.gmra.mrb[44].mxu0 %vm1135_vm0, %v5545_v48  ;;  %5339 = vmatmul.mubr.msk.bf16.gmra.mrb[44].mxu1 %vm1135_vm0, %v5546_v49 }
  0xb8   : > { %5214 = vmatprep.mubr.msk.bf16.mxu0 %vm1135_vm0, %v5547_v50  ;;  %5342 = vmatprep.mubr.msk.bf16.mxu1 %vm1135_vm0, %v5548_v51 }
  0xbf   : > { %5215 = vmatmul.mubr.msk.bf16.gmra.mrb[48].mxu0 %vm1135_vm0, %v5549_v52  ;;  %5343 = vmatmul.mubr.msk.bf16.gmra.mrb[48].mxu1 %vm1135_vm0, %v5550_v53  ;;  %v5609_v52 = vld [vmem:[%s6476_s28 + $0x1b8] sm:$0xff]  }
  0xc0   : > { %5218 = vmatprep.mubr.msk.bf16.mxu0 %vm1135_vm0, %v5551_v54  ;;  %5346 = vmatprep.mubr.msk.bf16.mxu1 %vm1135_vm0, %v5552_v55  ;;  %v5610_v53 = vld [vmem:[%s6476_s28 + $0x3b8] sm:$0xff]  }
  0xc7   : > { %5219 = vmatmul.mubr.msk.bf16.gmra.mrb[52].mxu0 %vm1135_vm0, %v5553_v56  ;;  %5347 = vmatmul.mubr.msk.bf16.gmra.mrb[52].mxu1 %vm1135_vm0, %v5554_v57  ;;  %v5611_v56 = vld [vmem:[%s6476_s28 + $0x1c0] sm:$0xff]  }
  0xc8   : > { %5222 = vmatprep.mubr.msk.bf16.mxu0 %vm1135_vm0, %v5555_v58  ;;  %5350 = vmatprep.mubr.msk.bf16.mxu1 %vm1135_vm0, %v5556_v59  ;;  %v5612_v57 = vld [vmem:[%s6476_s28 + $0x3c0] sm:$0xff]  }
  0xcf   : > { %5223 = vmatmul.mubr.msk.bf16.gmra.mrb[56].mxu0 %vm1135_vm0, %v5557_v60  ;;  %5351 = vmatmul.mubr.msk.bf16.gmra.mrb[56].mxu1 %vm1135_vm0, %v5558_v61 }
  0xd0   : > { %5226 = vmatprep.mubr.msk.bf16.mxu0 %vm1135_vm0, %v5559_v62  ;;  %5354 = vmatprep.mubr.msk.bf16.mxu1 %vm1135_vm0, %v5560_v63 }
  0xd7   : > { %5227 = vmatmul.mubr.msk.bf16.gmra.mrb[60].mxu0 %vm1135_vm0, %v5561_v0  ;;  %5355 = vmatmul.mubr.msk.bf16.gmra.mrb[60].mxu1 %vm1135_vm0, %v5562_v1  ;;  %v5613_v0 = vld [vmem:[%s6476_s28 + $0x1c8] sm:$0xff]  }
  0xd8   : > { %5230 = vmatprep.mubr.msk.bf16.mxu0 %vm1135_vm0, %v5563_v2  ;;  %5358 = vmatprep.mubr.msk.bf16.mxu1 %vm1135_vm0, %v5564_v3  ;;  %v5614_v1 = vld [vmem:[%s6476_s28 + $0x3c8] sm:$0xff]  }
  0xdf   : > { %5231 = vmatmul.mubr.msk.bf16.gmra.mrb[64].mxu0 %vm1135_vm0, %v5565_v4  ;;  %5359 = vmatmul.mubr.msk.bf16.gmra.mrb[64].mxu1 %vm1135_vm0, %v5566_v5  ;;  %v5615_v4 = vld [vmem:[%s6476_s28 + $0x1d0] sm:$0xff]  }
  0xe0   : > { %5234 = vmatprep.mubr.msk.bf16.mxu0 %vm1135_vm0, %v5567_v6  ;;  %5362 = vmatprep.mubr.msk.bf16.mxu1 %vm1135_vm0, %v5568_v7  ;;  %v5616_v5 = vld [vmem:[%s6476_s28 + $0x3d0] sm:$0xff]  }
  0xe7   : > { %5235 = vmatmul.mubr.msk.bf16.gmra.mrb[68].mxu0 %vm1135_vm0, %v5569_v8  ;;  %5363 = vmatmul.mubr.msk.bf16.gmra.mrb[68].mxu1 %vm1135_vm0, %v5570_v9 }
  0xe8   : > { %5238 = vmatprep.mubr.msk.bf16.mxu0 %vm1135_vm0, %v5571_v10  ;;  %5366 = vmatprep.mubr.msk.bf16.mxu1 %vm1135_vm0, %v5572_v11 }
  0xef   : > { %5239 = vmatmul.mubr.msk.bf16.gmra.mrb[72].mxu0 %vm1135_vm0, %v5573_v12  ;;  %5367 = vmatmul.mubr.msk.bf16.gmra.mrb[72].mxu1 %vm1135_vm0, %v5574_v13 }
  0xf0   : > { %5242 = vmatprep.mubr.msk.bf16.mxu0 %vm1135_vm0, %v5575_v14  ;;  %5370 = vmatprep.mubr.msk.bf16.mxu1 %vm1135_vm0, %v5576_v15 }
  0xf7   : > { %5243 = vmatmul.mubr.msk.bf16.gmra.mrb[76].mxu0 %vm1135_vm0, %v5577_v16  ;;  %5371 = vmatmul.mubr.msk.bf16.gmra.mrb[76].mxu1 %vm1135_vm0, %v5578_v17 }
  0xf8   : > { %5246 = vmatprep.mubr.msk.bf16.mxu0 %vm1135_vm0, %v5579_v18  ;;  %5374 = vmatprep.mubr.msk.bf16.mxu1 %vm1135_vm0, %v5580_v19 }
  0xff   : > { %5247 = vmatmul.mubr.msk.bf16.gmra.mrb[80].mxu0 %vm1135_vm0, %v5581_v20  ;;  %5375 = vmatmul.mubr.msk.bf16.gmra.mrb[80].mxu1 %vm1135_vm0, %v5582_v21 }
 0x100   : > { %5250 = vmatprep.mubr.msk.bf16.mxu0 %vm1135_vm0, %v5583_v22  ;;  %5378 = vmatprep.mubr.msk.bf16.mxu1 %vm1135_vm0, %v5584_v23 }
 0x107   : > { %5251 = vmatmul.mubr.msk.bf16.gmra.mrb[84].mxu0 %vm1135_vm0, %v5585_v24  ;;  %5379 = vmatmul.mubr.msk.bf16.gmra.mrb[84].mxu1 %vm1135_vm0, %v5586_v25  ;;  %v5617_v25 = vld [vmem:[%s6476_s28 + $0x1d8] sm:$0xff]  }
 0x108   : > { %5254 = vmatprep.mubr.msk.bf16.mxu0 %vm1135_vm0, %v5587_v26  ;;  %5382 = vmatprep.mubr.msk.bf16.mxu1 %vm1135_vm0, %v5588_v27  ;;  %v5618_v26 = vld [vmem:[%s6476_s28 + $0x3d8] sm:$0xff]  }
 0x10f   : > { %5255 = vmatmul.mubr.msk.bf16.gmra.mrb[88].mxu0 %vm1135_vm0, %v5589_v28  ;;  %5383 = vmatmul.mubr.msk.bf16.gmra.mrb[88].mxu1 %vm1135_vm0, %v5590_v29 }
 0x110   : > { %5258 = vmatprep.mubr.msk.bf16.mxu0 %vm1135_vm0, %v5591_v30  ;;  %5386 = vmatprep.mubr.msk.bf16.mxu1 %vm1135_vm0, %v5592_v31  ;;  %v5619_v31 = vld [vmem:[%s6476_s28 + $0x1e0] sm:$0xff]  }
 0x117   : > { %5259 = vmatmul.mubr.msk.bf16.gmra.mrb[92].mxu0 %vm1135_vm0, %v5593_v32  ;;  %5387 = vmatmul.mubr.msk.bf16.gmra.mrb[92].mxu1 %vm1135_vm0, %v5594_v33  ;;  %v5620_v32 = vld [vmem:[%s6476_s28 + $0x3e0] sm:$0xff]  }
 0x118   : > { %5262 = vmatprep.mubr.msk.bf16.mxu0 %vm1135_vm0, %v5595_v34  ;;  %5390 = vmatprep.mubr.msk.bf16.mxu1 %vm1135_vm0, %v5596_v35 }
 0x11f   : > { %5263 = vmatmul.mubr.msk.bf16.gmra.mrb[96].mxu0 %vm1135_vm0, %v5597_v36  ;;  %5391 = vmatmul.mubr.msk.bf16.gmra.mrb[96].mxu1 %vm1135_vm0, %v5598_v37 }
 0x120   : > { %5266 = vmatprep.mubr.msk.bf16.mxu0 %vm1135_vm0, %v5599_v38  ;;  %5394 = vmatprep.mubr.msk.bf16.mxu1 %vm1135_vm0, %v5600_v39 }
 0x127   : > { %5267 = vmatmul.mubr.msk.bf16.gmra.mrb[100].mxu0 %vm1135_vm0, %v5601_v40  ;;  %5395 = vmatmul.mubr.msk.bf16.gmra.mrb[100].mxu1 %vm1135_vm0, %v5602_v41 }
 0x128   : > { %5270 = vmatprep.mubr.msk.bf16.mxu0 %vm1135_vm0, %v5603_v42  ;;  %5398 = vmatprep.mubr.msk.bf16.mxu1 %vm1135_vm0, %v5604_v43 }
 0x12f   : > { %5271 = vmatmul.mubr.msk.bf16.gmra.mrb[104].mxu0 %vm1135_vm0, %v5605_v44  ;;  %5399 = vmatmul.mubr.msk.bf16.gmra.mrb[104].mxu1 %vm1135_vm0, %v5606_v45 }
 0x130   : > { %5274 = vmatprep.mubr.msk.bf16.mxu0 %vm1135_vm0, %v5607_v46  ;;  %5402 = vmatprep.mubr.msk.bf16.mxu1 %vm1135_vm0, %v5608_v47 }
 0x132   : > { %v5168_v48 = vpop.f32.mrb[0].mxu0  ;;  %v5296_v49 = vpop.f32.mrb[0].mxu1 }
 0x133   : > { %5627 = vtanh.f32 %v5168_v48  ;;  %v1554_v50 = vpop.f32.mrb[1].mxu0  ;;  %v2066_v51 = vpop.f32.mrb[1].mxu1 }
 0x134   : > { %5629 = vtanh.f32 %v5296_v49  ;;  %v5169_v54 = vpop.f32.mrb[2].mxu0  ;;  %v5297_v55 = vpop.f32.mrb[2].mxu1 }
 0x135   : > { %5631 = vtanh.f32 %v1554_v50  ;;  %v1557_v58 = vpop.f32.mrb[3].mxu0  ;;  %v2069_v59 = vpop.f32.mrb[3].mxu1 }
 0x136   : > { %5633 = vtanh.f32 %v2066_v51 }
 0x137   : > { %5635 = vtanh.f32 %v5169_v54  ;;  %5275 = vmatmul.mubr.msk.bf16.gmra.mrb[108].mxu0 %vm1135_vm0, %v5609_v52  ;;  %5403 = vmatmul.mubr.msk.bf16.gmra.mrb[108].mxu1 %vm1135_vm0, %v5610_v53  ;;  %v5621_v53 = vld [vmem:[%s6476_s28 + $0x1e8] sm:$0xff]  }
 0x138   : > { %5637 = vtanh.f32 %v5297_v55  ;;  %5278 = vmatprep.mubr.msk.bf16.mxu0 %vm1135_vm0, %v5611_v56  ;;  %5406 = vmatprep.mubr.msk.bf16.mxu1 %vm1135_vm0, %v5612_v57  ;;  %v5622_v54 = vld [vmem:[%s6476_s28 + $0x3e8] sm:$0xff]  }
 0x139   : > { %5639 = vtanh.f32 %v1557_v58 }
 0x13a   : > { %5641 = vtanh.f32 %v2069_v59  ;;  %v5172_v60 = vpop.f32.mrb[4].mxu0  ;;  %v5300_v61 = vpop.f32.mrb[4].mxu1  ;;  %v5623_v59 = vld [vmem:[%s6476_s28 + $0x1f0] sm:$0xff]  }
 0x13b   : > { %5643 = vtanh.f32 %v5172_v60  ;;  %v1570_v62 = vpop.f32.mrb[5].mxu0  ;;  %v2082_v63 = vpop.f32.mrb[5].mxu1  ;;  %v5624_v60 = vld [vmem:[%s6476_s28 + $0x3f0] sm:$0xff]  }
 0x13c   : > { %5645 = vtanh.f32 %v5300_v61  ;;  %v5173_v2 = vpop.f32.mrb[6].mxu0  ;;  %v5301_v3 = vpop.f32.mrb[6].mxu1 }
 0x13d   : > { %v5628_v6 = vpop.eup %5627  ;;  %5647 = vtanh.f32 %v1570_v62  ;;  %v1573_v7 = vpop.f32.mrb[7].mxu0 }
 0x13e   : > { %v2085_v8 = vpop.f32.mrb[7].mxu1  ;;  %v5630_v9 = vpop.eup %5629  ;;  %v4777_v10 = vpack.c.bf16 %v5628_v6, %v5628_v6  ;;  %5649 = vtanh.f32 %v2082_v63 }
 0x13f   : > { %v5632_v11 = vpop.eup %5631  ;;  %v4905_v12 = vpack.c.bf16 %v5630_v9, %v5630_v9  ;;  %5651 = vtanh.f32 %v5173_v2  ;;  %5279 = vmatmul.mubr.msk.bf16.gmra.mrb[112].mxu0 %vm1135_vm0, %v5613_v0  ;;  %5407 = vmatmul.mubr.msk.bf16.gmra.mrb[112].mxu1 %vm1135_vm0, %v5614_v1 }
 0x140   : > { %v5634_v13 = vpop.eup %5633  ;;  %3860 = vst.msk [vmem:[%s6724_s21 + $0x8] sm:$0xf] %vm3857_vm1, %v4777_v10  ;;  %v4775_v14 = vpack.c.bf16 %v5632_v11, %v5632_v11  ;;  %5653 = vtanh.f32 %v5301_v3  ;;  %5282 = vmatprep.mubr.msk.bf16.mxu0 %vm1135_vm0, %v5615_v4  ;;  %5410 = vmatprep.mubr.msk.bf16.mxu1 %vm1135_vm0, %v5616_v5 }
 0x141   : > { %v5636_v15 = vpop.eup %5635  ;;  %3988 = vst.msk [vmem:[%s6724_s21 + $0x208] sm:$0xf] %vm3857_vm1, %v4905_v12  ;;  %v4903_v16 = vpack.c.bf16 %v5634_v13, %v5634_v13  ;;  %5655 = vtanh.f32 %v1573_v7 }
 0x142   : > { %v5638_v17 = vpop.eup %5637  ;;  %3858 = vst.msk [vmem:[%s6724_s21] sm:$0xf] %vm3857_vm1, %v4775_v14  ;;  %v4778_v18 = vpack.c.bf16 %v5636_v15, %v5636_v15  ;;  %5657 = vtanh.f32 %v2085_v8  ;;  %v5176_v19 = vpop.f32.mrb[8].mxu0 }
 0x143   : > { %v5304_v20 = vpop.f32.mrb[8].mxu1  ;;  %v5640_v21 = vpop.eup %5639  ;;  %3986 = vst.msk [vmem:[%s6724_s21 + $0x200] sm:$0xf] %vm3857_vm1, %v4903_v16  ;;  %v4906_v22 = vpack.c.bf16 %v5638_v17, %v5638_v17  ;;  %5659 = vtanh.f32 %v5176_v19  ;;  %v5625_v17 = vld [vmem:[%s6476_s28 + $0x1f8] sm:$0xff]  }
 0x144   : > { %v1586_v23 = vpop.f32.mrb[9].mxu0  ;;  %v2098_v24 = vpop.f32.mrb[9].mxu1  ;;  %3861 = vst.msk [vmem:[%s6724_s21 + $0xc] sm:$0xf] %vm3857_vm1, %v4778_v18  ;;  %v4776_v28 = vpack.c.bf16 %v5640_v21, %v5640_v21  ;;  %5661 = vtanh.f32 %v5304_v20  ;;  %v5626_v18 = vld [vmem:[%s6476_s28 + $0x3f8] sm:$0xff]  }
 0x145   : > { %v5642_v27 = vpop.eup %5641  ;;  %v5177_v29 = vpop.f32.mrb[10].mxu0  ;;  %3989 = vst.msk [vmem:[%s6724_s21 + $0x20c] sm:$0xf] %vm3857_vm1, %v4906_v22  ;;  %5663 = vtanh.f32 %v1586_v23 }
 0x146   : > { %v5305_v30 = vpop.f32.mrb[10].mxu1  ;;  %v5644_v33 = vpop.eup %5643  ;;  %v4904_v34 = vpack.c.bf16 %v5642_v27, %v5642_v27  ;;  %3859 = vst.msk [vmem:[%s6724_s21 + $0x4] sm:$0xf] %vm3857_vm1, %v4776_v28  ;;  %5665 = vtanh.f32 %v2098_v24 }
 0x147   : > { %v1589_v35 = vpop.f32.mrb[11].mxu0  ;;  %v2101_v36 = vpop.f32.mrb[11].mxu1  ;;  %v4781_v38 = vpack.c.bf16 %v5644_v33, %v5644_v33  ;;  %5667 = vtanh.f32 %v5177_v29  ;;  %5283 = vmatmul.mubr.msk.bf16.gmra.mrb[116].mxu0 %vm1135_vm0, %v5617_v25  ;;  %5411 = vmatmul.mubr.msk.bf16.gmra.mrb[116].mxu1 %vm1135_vm0, %v5618_v26 }
 0x148   : > { %v5646_v37 = vpop.eup %5645  ;;  %3987 = vst.msk [vmem:[%s6724_s21 + $0x204] sm:$0xf] %vm3857_vm1, %v4904_v34  ;;  %5669 = vtanh.f32 %v5305_v30  ;;  %5286 = vmatprep.mubr.msk.bf16.mxu0 %vm1135_vm0, %v5619_v31  ;;  %5414 = vmatprep.mubr.msk.bf16.mxu1 %vm1135_vm0, %v5620_v32 }
 0x149   : > { %v5648_v39 = vpop.eup %5647  ;;  %v4909_v40 = vpack.c.bf16 %v5646_v37, %v5646_v37  ;;  %3864 = vst.msk [vmem:[%s6724_s21 + $0x18] sm:$0xf] %vm3857_vm1, %v4781_v38  ;;  %5671 = vtanh.f32 %v1589_v35 }
 0x14a   : > { %v5650_v41 = vpop.eup %5649  ;;  %v4779_v42 = vpack.c.bf16 %v5648_v39, %v5648_v39  ;;  %5673 = vtanh.f32 %v2101_v36  ;;  %v5180_v47 = vpop.f32.mrb[12].mxu0 }
 0x14b   : > { %v5652_v43 = vpop.eup %5651  ;;  %3992 = vst.msk [vmem:[%s6724_s21 + $0x218] sm:$0xf] %vm3857_vm1, %v4909_v40  ;;  %v4907_v44 = vpack.c.bf16 %v5650_v41, %v5650_v41  ;;  %v5308_v48 = vpop.f32.mrb[12].mxu1  ;;  %5675 = vtanh.f32 %v5180_v47 }
 0x14c   : > { %v5654_v45 = vpop.eup %5653  ;;  %3862 = vst.msk [vmem:[%s6724_s21 + $0x10] sm:$0xf] %vm3857_vm1, %v4779_v42  ;;  %v4782_v46 = vpack.c.bf16 %v5652_v43, %v5652_v43  ;;  %v1602_v51 = vpop.f32.mrb[13].mxu0  ;;  %5677 = vtanh.f32 %v5308_v48 }
 0x14d   : > { %v5656_v49 = vpop.eup %5655  ;;  %3990 = vst.msk [vmem:[%s6724_s21 + $0x210] sm:$0xf] %vm3857_vm1, %v4907_v44  ;;  %v4910_v50 = vpack.c.bf16 %v5654_v45, %v5654_v45  ;;  %v2114_v52 = vpop.f32.mrb[13].mxu1  ;;  %5679 = vtanh.f32 %v1602_v51 }
 0x14e   : > { %v5658_v55 = vpop.eup %5657  ;;  %3865 = vst.msk [vmem:[%s6724_s21 + $0x1c] sm:$0xf] %vm3857_vm1, %v4782_v46  ;;  %v4780_v56 = vpack.c.bf16 %v5656_v49, %v5656_v49  ;;  %v5181_v57 = vpop.f32.mrb[14].mxu0  ;;  %5681 = vtanh.f32 %v2114_v52 }
 0x14f   : > { %v5309_v58 = vpop.f32.mrb[14].mxu1  ;;  %v5660_v61 = vpop.eup %5659  ;;  %3993 = vst.msk [vmem:[%s6724_s21 + $0x21c] sm:$0xf] %vm3857_vm1, %v4910_v50  ;;  %v4908_v62 = vpack.c.bf16 %v5658_v55, %v5658_v55  ;;  %5683 = vtanh.f32 %v5181_v57  ;;  %5287 = vmatmul.mubr.msk.bf16.gmra.mrb[120].mxu0 %vm1135_vm0, %v5621_v53  ;;  %5415 = vmatmul.mubr.msk.bf16.gmra.mrb[120].mxu1 %vm1135_vm0, %v5622_v54 }
 0x150   : > { %v1605_v63 = vpop.f32.mrb[15].mxu0  ;;  %v2117_v0 = vpop.f32.mrb[15].mxu1  ;;  %3863 = vst.msk [vmem:[%s6724_s21 + $0x14] sm:$0xf] %vm3857_vm1, %v4780_v56  ;;  %v4785_v2 = vpack.c.bf16 %v5660_v61, %v5660_v61  ;;  %5685 = vtanh.f32 %v5309_v58  ;;  %5290 = vmatprep.mubr.msk.bf16.mxu0 %vm1135_vm0, %v5623_v59  ;;  %5418 = vmatprep.mubr.msk.bf16.mxu1 %vm1135_vm0, %v5624_v60 }
 0x151   : > { %v5662_v1 = vpop.eup %5661  ;;  %3991 = vst.msk [vmem:[%s6724_s21 + $0x214] sm:$0xf] %vm3857_vm1, %v4908_v62  ;;  %5687 = vtanh.f32 %v1605_v63 }
 0x152   : > { %v5664_v3 = vpop.eup %5663  ;;  %v4913_v4 = vpack.c.bf16 %v5662_v1, %v5662_v1  ;;  %3868 = vst.msk [vmem:[%s6724_s21 + $0x28] sm:$0xf] %vm3857_vm1, %v4785_v2  ;;  %5689 = vtanh.f32 %v2117_v0  ;;  %v5184_v11 = vpop.f32.mrb[16].mxu0 }
 0x153   : > { %v5666_v5 = vpop.eup %5665  ;;  %v4783_v6 = vpack.c.bf16 %v5664_v3, %v5664_v3  ;;  %v5312_v12 = vpop.f32.mrb[16].mxu1  ;;  %5691 = vtanh.f32 %v5184_v11 }
 0x154   : > { %v5668_v7 = vpop.eup %5667  ;;  %3996 = vst.msk [vmem:[%s6724_s21 + $0x228] sm:$0xf] %vm3857_vm1, %v4913_v4  ;;  %v4911_v8 = vpack.c.bf16 %v5666_v5, %v5666_v5  ;;  %v1618_v15 = vpop.f32.mrb[17].mxu0  ;;  %5693 = vtanh.f32 %v5312_v12 }
 0x155   : > { %v5670_v9 = vpop.eup %5669  ;;  %3866 = vst.msk [vmem:[%s6724_s21 + $0x20] sm:$0xf] %vm3857_vm1, %v4783_v6  ;;  %v4786_v10 = vpack.c.bf16 %v5668_v7, %v5668_v7  ;;  %v2130_v16 = vpop.f32.mrb[17].mxu1  ;;  %5695 = vtanh.f32 %v1618_v15 }
 0x156   : > { %v5672_v13 = vpop.eup %5671  ;;  %3994 = vst.msk [vmem:[%s6724_s21 + $0x220] sm:$0xf] %vm3857_vm1, %v4911_v8  ;;  %v4914_v14 = vpack.c.bf16 %v5670_v9, %v5670_v9  ;;  %v5185_v21 = vpop.f32.mrb[18].mxu0  ;;  %5697 = vtanh.f32 %v2130_v16 }
 0x157   : > { %v5674_v19 = vpop.eup %5673  ;;  %3869 = vst.msk [vmem:[%s6724_s21 + $0x2c] sm:$0xf] %vm3857_vm1, %v4786_v10  ;;  %v4784_v20 = vpack.c.bf16 %v5672_v13, %v5672_v13  ;;  %v5313_v22 = vpop.f32.mrb[18].mxu1  ;;  %5699 = vtanh.f32 %v5185_v21  ;;  %5291 = vmatmul.mubr.msk.bf16.gmra.mrb[124].mxu0 %vm1135_vm0, %v5625_v17  ;;  %5419 = vmatmul.mubr.msk.bf16.gmra.mrb[124].mxu1 %vm1135_vm0, %v5626_v18 }
 0x158   : > { %v5676_v23 = vpop.eup %5675  ;;  %3997 = vst.msk [vmem:[%s6724_s21 + $0x22c] sm:$0xf] %vm3857_vm1, %v4914_v14  ;;  %v4912_v24 = vpack.c.bf16 %v5674_v19, %v5674_v19  ;;  %v1621_v25 = vpop.f32.mrb[19].mxu0  ;;  %5701 = vtanh.f32 %v5313_v22 }
 0x159   : > { %v2133_v26 = vpop.f32.mrb[19].mxu1  ;;  %v5678_v27 = vpop.eup %5677  ;;  %3867 = vst.msk [vmem:[%s6724_s21 + $0x24] sm:$0xf] %vm3857_vm1, %v4784_v20  ;;  %v4789_v28 = vpack.c.bf16 %v5676_v23, %v5676_v23  ;;  %5703 = vtanh.f32 %v1621_v25 }
 0x15a   : > { %v5680_v29 = vpop.eup %5679  ;;  %3995 = vst.msk [vmem:[%s6724_s21 + $0x224] sm:$0xf] %vm3857_vm1, %v4912_v24  ;;  %v4917_v30 = vpack.c.bf16 %v5678_v27, %v5678_v27  ;;  %5705 = vtanh.f32 %v2133_v26  ;;  %v5188_v37 = vpop.f32.mrb[20].mxu0 }
 0x15b   : > { %v5682_v31 = vpop.eup %5681  ;;  %3872 = vst.msk [vmem:[%s6724_s21 + $0x38] sm:$0xf] %vm3857_vm1, %v4789_v28  ;;  %v4787_v32 = vpack.c.bf16 %v5680_v29, %v5680_v29  ;;  %v5316_v38 = vpop.f32.mrb[20].mxu1  ;;  %5707 = vtanh.f32 %v5188_v37 }
 0x15c   : > { %v5684_v33 = vpop.eup %5683  ;;  %4000 = vst.msk [vmem:[%s6724_s21 + $0x238] sm:$0xf] %vm3857_vm1, %v4917_v30  ;;  %v4915_v34 = vpack.c.bf16 %v5682_v31, %v5682_v31  ;;  %v1634_v41 = vpop.f32.mrb[21].mxu0  ;;  %5709 = vtanh.f32 %v5316_v38 }
 0x15d   : > { %v5686_v35 = vpop.eup %5685  ;;  %3870 = vst.msk [vmem:[%s6724_s21 + $0x30] sm:$0xf] %vm3857_vm1, %v4787_v32  ;;  %v4790_v36 = vpack.c.bf16 %v5684_v33, %v5684_v33  ;;  %v2146_v42 = vpop.f32.mrb[21].mxu1  ;;  %5711 = vtanh.f32 %v1634_v41 }
 0x15e   : > { %v5688_v39 = vpop.eup %5687  ;;  %3998 = vst.msk [vmem:[%s6724_s21 + $0x230] sm:$0xf] %vm3857_vm1, %v4915_v34  ;;  %v4918_v40 = vpack.c.bf16 %v5686_v35, %v5686_v35  ;;  %v5189_v45 = vpop.f32.mrb[22].mxu0  ;;  %5713 = vtanh.f32 %v2146_v42 }
 0x15f   : > { %v5690_v43 = vpop.eup %5689  ;;  %3873 = vst.msk [vmem:[%s6724_s21 + $0x3c] sm:$0xf] %vm3857_vm1, %v4790_v36  ;;  %v4788_v44 = vpack.c.bf16 %v5688_v39, %v5688_v39  ;;  %v5317_v46 = vpop.f32.mrb[22].mxu1  ;;  %5715 = vtanh.f32 %v5189_v45 }
 0x160   : > { %v5692_v47 = vpop.eup %5691  ;;  %4001 = vst.msk [vmem:[%s6724_s21 + $0x23c] sm:$0xf] %vm3857_vm1, %v4918_v40  ;;  %v4916_v48 = vpack.c.bf16 %v5690_v43, %v5690_v43  ;;  %v1637_v49 = vpop.f32.mrb[23].mxu0  ;;  %5717 = vtanh.f32 %v5317_v46 }
 0x161   : > { %v2149_v50 = vpop.f32.mrb[23].mxu1  ;;  %v5694_v51 = vpop.eup %5693  ;;  %3871 = vst.msk [vmem:[%s6724_s21 + $0x34] sm:$0xf] %vm3857_vm1, %v4788_v44  ;;  %v4793_v52 = vpack.c.bf16 %v5692_v47, %v5692_v47  ;;  %5719 = vtanh.f32 %v1637_v49 }
 0x162   : > { %v5696_v53 = vpop.eup %5695  ;;  %3999 = vst.msk [vmem:[%s6724_s21 + $0x234] sm:$0xf] %vm3857_vm1, %v4916_v48  ;;  %v4921_v54 = vpack.c.bf16 %v5694_v51, %v5694_v51  ;;  %5721 = vtanh.f32 %v2149_v50  ;;  %v5192_v61 = vpop.f32.mrb[24].mxu0 }
 0x163   : > { %v5698_v55 = vpop.eup %5697  ;;  %3876 = vst.msk [vmem:[%s6724_s21 + $0x48] sm:$0xf] %vm3857_vm1, %v4793_v52  ;;  %v4791_v56 = vpack.c.bf16 %v5696_v53, %v5696_v53  ;;  %v5320_v62 = vpop.f32.mrb[24].mxu1  ;;  %5723 = vtanh.f32 %v5192_v61 }
 0x164   : > { %v5700_v57 = vpop.eup %5699  ;;  %4004 = vst.msk [vmem:[%s6724_s21 + $0x248] sm:$0xf] %vm3857_vm1, %v4921_v54  ;;  %v4919_v58 = vpack.c.bf16 %v5698_v55, %v5698_v55  ;;  %v1650_v1 = vpop.f32.mrb[25].mxu0  ;;  %5725 = vtanh.f32 %v5320_v62 }
 0x165   : > { %v5702_v59 = vpop.eup %5701  ;;  %3874 = vst.msk [vmem:[%s6724_s21 + $0x40] sm:$0xf] %vm3857_vm1, %v4791_v56  ;;  %v4794_v60 = vpack.c.bf16 %v5700_v57, %v5700_v57  ;;  %v2162_v2 = vpop.f32.mrb[25].mxu1  ;;  %5727 = vtanh.f32 %v1650_v1 }
 0x166   : > { %v5704_v63 = vpop.eup %5703  ;;  %4002 = vst.msk [vmem:[%s6724_s21 + $0x240] sm:$0xf] %vm3857_vm1, %v4919_v58  ;;  %v4922_v0 = vpack.c.bf16 %v5702_v59, %v5702_v59  ;;  %v5193_v5 = vpop.f32.mrb[26].mxu0  ;;  %5729 = vtanh.f32 %v2162_v2 }
 0x167   : > { %v5706_v3 = vpop.eup %5705  ;;  %3877 = vst.msk [vmem:[%s6724_s21 + $0x4c] sm:$0xf] %vm3857_vm1, %v4794_v60  ;;  %v4792_v4 = vpack.c.bf16 %v5704_v63, %v5704_v63  ;;  %v5321_v6 = vpop.f32.mrb[26].mxu1  ;;  %5731 = vtanh.f32 %v5193_v5 }
 0x168   : > { %v5708_v7 = vpop.eup %5707  ;;  %4005 = vst.msk [vmem:[%s6724_s21 + $0x24c] sm:$0xf] %vm3857_vm1, %v4922_v0  ;;  %v4920_v8 = vpack.c.bf16 %v5706_v3, %v5706_v3  ;;  %v1653_v9 = vpop.f32.mrb[27].mxu0  ;;  %5733 = vtanh.f32 %v5321_v6 }
 0x169   : > { %v2165_v10 = vpop.f32.mrb[27].mxu1  ;;  %v5710_v11 = vpop.eup %5709  ;;  %3875 = vst.msk [vmem:[%s6724_s21 + $0x44] sm:$0xf] %vm3857_vm1, %v4792_v4  ;;  %v4797_v12 = vpack.c.bf16 %v5708_v7, %v5708_v7  ;;  %5735 = vtanh.f32 %v1653_v9 }
 0x16a   : > { %v5712_v13 = vpop.eup %5711  ;;  %4003 = vst.msk [vmem:[%s6724_s21 + $0x244] sm:$0xf] %vm3857_vm1, %v4920_v8  ;;  %v4925_v14 = vpack.c.bf16 %v5710_v11, %v5710_v11  ;;  %5737 = vtanh.f32 %v2165_v10  ;;  %v5196_v21 = vpop.f32.mrb[28].mxu0 }
 0x16b   : > { %v5714_v15 = vpop.eup %5713  ;;  %3880 = vst.msk [vmem:[%s6724_s21 + $0x58] sm:$0xf] %vm3857_vm1, %v4797_v12  ;;  %v4795_v16 = vpack.c.bf16 %v5712_v13, %v5712_v13  ;;  %v5324_v22 = vpop.f32.mrb[28].mxu1  ;;  %5739 = vtanh.f32 %v5196_v21 }
 0x16c   : > { %v5716_v17 = vpop.eup %5715  ;;  %4008 = vst.msk [vmem:[%s6724_s21 + $0x258] sm:$0xf] %vm3857_vm1, %v4925_v14  ;;  %v4923_v18 = vpack.c.bf16 %v5714_v15, %v5714_v15  ;;  %v1666_v25 = vpop.f32.mrb[29].mxu0  ;;  %5741 = vtanh.f32 %v5324_v22 }
 0x16d   : > { %v5718_v19 = vpop.eup %5717  ;;  %3878 = vst.msk [vmem:[%s6724_s21 + $0x50] sm:$0xf] %vm3857_vm1, %v4795_v16  ;;  %v4798_v20 = vpack.c.bf16 %v5716_v17, %v5716_v17  ;;  %v2178_v26 = vpop.f32.mrb[29].mxu1  ;;  %5743 = vtanh.f32 %v1666_v25 }
 0x16e   : > { %v5720_v23 = vpop.eup %5719  ;;  %4006 = vst.msk [vmem:[%s6724_s21 + $0x250] sm:$0xf] %vm3857_vm1, %v4923_v18  ;;  %v4926_v24 = vpack.c.bf16 %v5718_v19, %v5718_v19  ;;  %v5197_v29 = vpop.f32.mrb[30].mxu0  ;;  %5745 = vtanh.f32 %v2178_v26 }
 0x16f   : > { %v5722_v27 = vpop.eup %5721  ;;  %3881 = vst.msk [vmem:[%s6724_s21 + $0x5c] sm:$0xf] %vm3857_vm1, %v4798_v20  ;;  %v4796_v28 = vpack.c.bf16 %v5720_v23, %v5720_v23  ;;  %v5325_v30 = vpop.f32.mrb[30].mxu1  ;;  %5747 = vtanh.f32 %v5197_v29 }
 0x170   : > { %v5724_v31 = vpop.eup %5723  ;;  %4009 = vst.msk [vmem:[%s6724_s21 + $0x25c] sm:$0xf] %vm3857_vm1, %v4926_v24  ;;  %v4924_v32 = vpack.c.bf16 %v5722_v27, %v5722_v27  ;;  %v1669_v33 = vpop.f32.mrb[31].mxu0  ;;  %5749 = vtanh.f32 %v5325_v30 }
 0x171   : > { %v2181_v34 = vpop.f32.mrb[31].mxu1  ;;  %v5726_v35 = vpop.eup %5725  ;;  %3879 = vst.msk [vmem:[%s6724_s21 + $0x54] sm:$0xf] %vm3857_vm1, %v4796_v28  ;;  %v4801_v36 = vpack.c.bf16 %v5724_v31, %v5724_v31  ;;  %5751 = vtanh.f32 %v1669_v33 }
 0x172   : > { %v5728_v37 = vpop.eup %5727  ;;  %4007 = vst.msk [vmem:[%s6724_s21 + $0x254] sm:$0xf] %vm3857_vm1, %v4924_v32  ;;  %v4929_v38 = vpack.c.bf16 %v5726_v35, %v5726_v35  ;;  %5753 = vtanh.f32 %v2181_v34  ;;  %v5200_v45 = vpop.f32.mrb[32].mxu0 }
 0x173   : > { %v5730_v39 = vpop.eup %5729  ;;  %3884 = vst.msk [vmem:[%s6724_s21 + $0x68] sm:$0xf] %vm3857_vm1, %v4801_v36  ;;  %v4799_v40 = vpack.c.bf16 %v5728_v37, %v5728_v37  ;;  %v5328_v46 = vpop.f32.mrb[32].mxu1  ;;  %5755 = vtanh.f32 %v5200_v45 }
 0x174   : > { %v5732_v41 = vpop.eup %5731  ;;  %4012 = vst.msk [vmem:[%s6724_s21 + $0x268] sm:$0xf] %vm3857_vm1, %v4929_v38  ;;  %v4927_v42 = vpack.c.bf16 %v5730_v39, %v5730_v39  ;;  %v1682_v49 = vpop.f32.mrb[33].mxu0  ;;  %5757 = vtanh.f32 %v5328_v46 }
 0x175   : > { %v5734_v43 = vpop.eup %5733  ;;  %3882 = vst.msk [vmem:[%s6724_s21 + $0x60] sm:$0xf] %vm3857_vm1, %v4799_v40  ;;  %v4802_v44 = vpack.c.bf16 %v5732_v41, %v5732_v41  ;;  %v2194_v50 = vpop.f32.mrb[33].mxu1  ;;  %5759 = vtanh.f32 %v1682_v49 }
 0x176   : > { %v5736_v47 = vpop.eup %5735  ;;  %4010 = vst.msk [vmem:[%s6724_s21 + $0x260] sm:$0xf] %vm3857_vm1, %v4927_v42  ;;  %v4930_v48 = vpack.c.bf16 %v5734_v43, %v5734_v43  ;;  %v5201_v53 = vpop.f32.mrb[34].mxu0  ;;  %5761 = vtanh.f32 %v2194_v50 }
 0x177   : > { %v5738_v51 = vpop.eup %5737  ;;  %3885 = vst.msk [vmem:[%s6724_s21 + $0x6c] sm:$0xf] %vm3857_vm1, %v4802_v44  ;;  %v4800_v52 = vpack.c.bf16 %v5736_v47, %v5736_v47  ;;  %v5329_v54 = vpop.f32.mrb[34].mxu1  ;;  %5763 = vtanh.f32 %v5201_v53 }
 0x178   : > { %v5740_v55 = vpop.eup %5739  ;;  %4013 = vst.msk [vmem:[%s6724_s21 + $0x26c] sm:$0xf] %vm3857_vm1, %v4930_v48  ;;  %v4928_v56 = vpack.c.bf16 %v5738_v51, %v5738_v51  ;;  %v1685_v57 = vpop.f32.mrb[35].mxu0  ;;  %5765 = vtanh.f32 %v5329_v54 }
 0x179   : > { %v2197_v58 = vpop.f32.mrb[35].mxu1  ;;  %v5742_v59 = vpop.eup %5741  ;;  %3883 = vst.msk [vmem:[%s6724_s21 + $0x64] sm:$0xf] %vm3857_vm1, %v4800_v52  ;;  %v4805_v60 = vpack.c.bf16 %v5740_v55, %v5740_v55  ;;  %5767 = vtanh.f32 %v1685_v57 }
 0x17a   : > { %v5744_v61 = vpop.eup %5743  ;;  %4011 = vst.msk [vmem:[%s6724_s21 + $0x264] sm:$0xf] %vm3857_vm1, %v4928_v56  ;;  %v4933_v62 = vpack.c.bf16 %v5742_v59, %v5742_v59  ;;  %5769 = vtanh.f32 %v2197_v58  ;;  %v5204_v5 = vpop.f32.mrb[36].mxu0 }
 0x17b   : > { %v5746_v63 = vpop.eup %5745  ;;  %3888 = vst.msk [vmem:[%s6724_s21 + $0x78] sm:$0xf] %vm3857_vm1, %v4805_v60  ;;  %v4803_v0 = vpack.c.bf16 %v5744_v61, %v5744_v61  ;;  %v5332_v6 = vpop.f32.mrb[36].mxu1  ;;  %5771 = vtanh.f32 %v5204_v5 }
 0x17c   : > { %v5748_v1 = vpop.eup %5747  ;;  %4016 = vst.msk [vmem:[%s6724_s21 + $0x278] sm:$0xf] %vm3857_vm1, %v4933_v62  ;;  %v4931_v2 = vpack.c.bf16 %v5746_v63, %v5746_v63  ;;  %v1698_v9 = vpop.f32.mrb[37].mxu0  ;;  %5773 = vtanh.f32 %v5332_v6 }
 0x17d   : > { %v5750_v3 = vpop.eup %5749  ;;  %3886 = vst.msk [vmem:[%s6724_s21 + $0x70] sm:$0xf] %vm3857_vm1, %v4803_v0  ;;  %v4806_v4 = vpack.c.bf16 %v5748_v1, %v5748_v1  ;;  %v2210_v10 = vpop.f32.mrb[37].mxu1  ;;  %5775 = vtanh.f32 %v1698_v9 }
 0x17e   : > { %v5752_v7 = vpop.eup %5751  ;;  %4014 = vst.msk [vmem:[%s6724_s21 + $0x270] sm:$0xf] %vm3857_vm1, %v4931_v2  ;;  %v4934_v8 = vpack.c.bf16 %v5750_v3, %v5750_v3  ;;  %v5205_v13 = vpop.f32.mrb[38].mxu0  ;;  %5777 = vtanh.f32 %v2210_v10 }
 0x17f   : > { %v5754_v11 = vpop.eup %5753  ;;  %3889 = vst.msk [vmem:[%s6724_s21 + $0x7c] sm:$0xf] %vm3857_vm1, %v4806_v4  ;;  %v4804_v12 = vpack.c.bf16 %v5752_v7, %v5752_v7  ;;  %v5333_v14 = vpop.f32.mrb[38].mxu1  ;;  %5779 = vtanh.f32 %v5205_v13 }
 0x180   : > { %v5756_v15 = vpop.eup %5755  ;;  %4017 = vst.msk [vmem:[%s6724_s21 + $0x27c] sm:$0xf] %vm3857_vm1, %v4934_v8  ;;  %v4932_v16 = vpack.c.bf16 %v5754_v11, %v5754_v11  ;;  %v1701_v17 = vpop.f32.mrb[39].mxu0  ;;  %5781 = vtanh.f32 %v5333_v14 }
 0x181   : > { %v2213_v18 = vpop.f32.mrb[39].mxu1  ;;  %v5758_v19 = vpop.eup %5757  ;;  %3887 = vst.msk [vmem:[%s6724_s21 + $0x74] sm:$0xf] %vm3857_vm1, %v4804_v12  ;;  %v4809_v20 = vpack.c.bf16 %v5756_v15, %v5756_v15  ;;  %5783 = vtanh.f32 %v1701_v17 }
 0x182   : > { %v5760_v21 = vpop.eup %5759  ;;  %4015 = vst.msk [vmem:[%s6724_s21 + $0x274] sm:$0xf] %vm3857_vm1, %v4932_v16  ;;  %v4937_v22 = vpack.c.bf16 %v5758_v19, %v5758_v19  ;;  %5785 = vtanh.f32 %v2213_v18  ;;  %v5208_v29 = vpop.f32.mrb[40].mxu0 }
 0x183   : > { %v5762_v23 = vpop.eup %5761  ;;  %3892 = vst.msk [vmem:[%s6724_s21 + $0x88] sm:$0xf] %vm3857_vm1, %v4809_v20  ;;  %v4807_v24 = vpack.c.bf16 %v5760_v21, %v5760_v21  ;;  %v5336_v30 = vpop.f32.mrb[40].mxu1  ;;  %5787 = vtanh.f32 %v5208_v29 }
 0x184   : > { %v5764_v25 = vpop.eup %5763  ;;  %4020 = vst.msk [vmem:[%s6724_s21 + $0x288] sm:$0xf] %vm3857_vm1, %v4937_v22  ;;  %v4935_v26 = vpack.c.bf16 %v5762_v23, %v5762_v23  ;;  %v1714_v33 = vpop.f32.mrb[41].mxu0  ;;  %5789 = vtanh.f32 %v5336_v30 }
 0x185   : > { %v5766_v27 = vpop.eup %5765  ;;  %3890 = vst.msk [vmem:[%s6724_s21 + $0x80] sm:$0xf] %vm3857_vm1, %v4807_v24  ;;  %v4810_v28 = vpack.c.bf16 %v5764_v25, %v5764_v25  ;;  %v2226_v34 = vpop.f32.mrb[41].mxu1  ;;  %5791 = vtanh.f32 %v1714_v33 }
 0x186   : > { %v5768_v31 = vpop.eup %5767  ;;  %4018 = vst.msk [vmem:[%s6724_s21 + $0x280] sm:$0xf] %vm3857_vm1, %v4935_v26  ;;  %v4938_v32 = vpack.c.bf16 %v5766_v27, %v5766_v27  ;;  %v5209_v37 = vpop.f32.mrb[42].mxu0  ;;  %5793 = vtanh.f32 %v2226_v34 }
 0x187   : > { %v5770_v35 = vpop.eup %5769  ;;  %3893 = vst.msk [vmem:[%s6724_s21 + $0x8c] sm:$0xf] %vm3857_vm1, %v4810_v28  ;;  %v4808_v36 = vpack.c.bf16 %v5768_v31, %v5768_v31  ;;  %v5337_v38 = vpop.f32.mrb[42].mxu1  ;;  %5795 = vtanh.f32 %v5209_v37 }
 0x188   : > { %v5772_v39 = vpop.eup %5771  ;;  %4021 = vst.msk [vmem:[%s6724_s21 + $0x28c] sm:$0xf] %vm3857_vm1, %v4938_v32  ;;  %v4936_v40 = vpack.c.bf16 %v5770_v35, %v5770_v35  ;;  %v1717_v41 = vpop.f32.mrb[43].mxu0  ;;  %5797 = vtanh.f32 %v5337_v38 }
 0x189   : > { %v2229_v42 = vpop.f32.mrb[43].mxu1  ;;  %v5774_v43 = vpop.eup %5773  ;;  %3891 = vst.msk [vmem:[%s6724_s21 + $0x84] sm:$0xf] %vm3857_vm1, %v4808_v36  ;;  %v4813_v44 = vpack.c.bf16 %v5772_v39, %v5772_v39  ;;  %5799 = vtanh.f32 %v1717_v41 }
 0x18a   : > { %v5776_v45 = vpop.eup %5775  ;;  %4019 = vst.msk [vmem:[%s6724_s21 + $0x284] sm:$0xf] %vm3857_vm1, %v4936_v40  ;;  %v4941_v46 = vpack.c.bf16 %v5774_v43, %v5774_v43  ;;  %5801 = vtanh.f32 %v2229_v42  ;;  %v5212_v53 = vpop.f32.mrb[44].mxu0 }
 0x18b   : > { %v5778_v47 = vpop.eup %5777  ;;  %3896 = vst.msk [vmem:[%s6724_s21 + $0x98] sm:$0xf] %vm3857_vm1, %v4813_v44  ;;  %v4811_v48 = vpack.c.bf16 %v5776_v45, %v5776_v45  ;;  %v5340_v54 = vpop.f32.mrb[44].mxu1  ;;  %5803 = vtanh.f32 %v5212_v53 }
 0x18c   : > { %v5780_v49 = vpop.eup %5779  ;;  %4024 = vst.msk [vmem:[%s6724_s21 + $0x298] sm:$0xf] %vm3857_vm1, %v4941_v46  ;;  %v4939_v50 = vpack.c.bf16 %v5778_v47, %v5778_v47  ;;  %v1730_v57 = vpop.f32.mrb[45].mxu0  ;;  %5805 = vtanh.f32 %v5340_v54 }
 0x18d   : > { %v5782_v51 = vpop.eup %5781  ;;  %3894 = vst.msk [vmem:[%s6724_s21 + $0x90] sm:$0xf] %vm3857_vm1, %v4811_v48  ;;  %v4814_v52 = vpack.c.bf16 %v5780_v49, %v5780_v49  ;;  %v2242_v58 = vpop.f32.mrb[45].mxu1  ;;  %5807 = vtanh.f32 %v1730_v57 }
 0x18e   : > { %v5784_v55 = vpop.eup %5783  ;;  %4022 = vst.msk [vmem:[%s6724_s21 + $0x290] sm:$0xf] %vm3857_vm1, %v4939_v50  ;;  %v4942_v56 = vpack.c.bf16 %v5782_v51, %v5782_v51  ;;  %v5213_v61 = vpop.f32.mrb[46].mxu0  ;;  %5809 = vtanh.f32 %v2242_v58 }
 0x18f   : > { %v5786_v59 = vpop.eup %5785  ;;  %3897 = vst.msk [vmem:[%s6724_s21 + $0x9c] sm:$0xf] %vm3857_vm1, %v4814_v52  ;;  %v4812_v60 = vpack.c.bf16 %v5784_v55, %v5784_v55  ;;  %v5341_v62 = vpop.f32.mrb[46].mxu1  ;;  %5811 = vtanh.f32 %v5213_v61 }
 0x190   : > { %v5788_v63 = vpop.eup %5787  ;;  %4025 = vst.msk [vmem:[%s6724_s21 + $0x29c] sm:$0xf] %vm3857_vm1, %v4942_v56  ;;  %v4940_v0 = vpack.c.bf16 %v5786_v59, %v5786_v59  ;;  %v1733_v1 = vpop.f32.mrb[47].mxu0  ;;  %5813 = vtanh.f32 %v5341_v62 }
 0x191   : > { %v2245_v2 = vpop.f32.mrb[47].mxu1  ;;  %v5790_v3 = vpop.eup %5789  ;;  %3895 = vst.msk [vmem:[%s6724_s21 + $0x94] sm:$0xf] %vm3857_vm1, %v4812_v60  ;;  %v4817_v4 = vpack.c.bf16 %v5788_v63, %v5788_v63  ;;  %5815 = vtanh.f32 %v1733_v1 }
 0x192   : > { %v5792_v5 = vpop.eup %5791  ;;  %4023 = vst.msk [vmem:[%s6724_s21 + $0x294] sm:$0xf] %vm3857_vm1, %v4940_v0  ;;  %v4945_v6 = vpack.c.bf16 %v5790_v3, %v5790_v3  ;;  %5817 = vtanh.f32 %v2245_v2  ;;  %v5216_v13 = vpop.f32.mrb[48].mxu0 }
 0x193   : > { %v5794_v7 = vpop.eup %5793  ;;  %3900 = vst.msk [vmem:[%s6724_s21 + $0xa8] sm:$0xf] %vm3857_vm1, %v4817_v4  ;;  %v4815_v8 = vpack.c.bf16 %v5792_v5, %v5792_v5  ;;  %v5344_v14 = vpop.f32.mrb[48].mxu1  ;;  %5819 = vtanh.f32 %v5216_v13 }
 0x194   : > { %v5796_v9 = vpop.eup %5795  ;;  %4028 = vst.msk [vmem:[%s6724_s21 + $0x2a8] sm:$0xf] %vm3857_vm1, %v4945_v6  ;;  %v4943_v10 = vpack.c.bf16 %v5794_v7, %v5794_v7  ;;  %v1746_v17 = vpop.f32.mrb[49].mxu0  ;;  %5821 = vtanh.f32 %v5344_v14 }
 0x195   : > { %v5798_v11 = vpop.eup %5797  ;;  %3898 = vst.msk [vmem:[%s6724_s21 + $0xa0] sm:$0xf] %vm3857_vm1, %v4815_v8  ;;  %v4818_v12 = vpack.c.bf16 %v5796_v9, %v5796_v9  ;;  %v2258_v18 = vpop.f32.mrb[49].mxu1  ;;  %5823 = vtanh.f32 %v1746_v17 }
 0x196   : > { %v5800_v15 = vpop.eup %5799  ;;  %4026 = vst.msk [vmem:[%s6724_s21 + $0x2a0] sm:$0xf] %vm3857_vm1, %v4943_v10  ;;  %v4946_v16 = vpack.c.bf16 %v5798_v11, %v5798_v11  ;;  %v5217_v21 = vpop.f32.mrb[50].mxu0  ;;  %5825 = vtanh.f32 %v2258_v18 }
 0x197   : > { %v5802_v19 = vpop.eup %5801  ;;  %3901 = vst.msk [vmem:[%s6724_s21 + $0xac] sm:$0xf] %vm3857_vm1, %v4818_v12  ;;  %v4816_v20 = vpack.c.bf16 %v5800_v15, %v5800_v15  ;;  %v5345_v22 = vpop.f32.mrb[50].mxu1  ;;  %5827 = vtanh.f32 %v5217_v21 }
 0x198   : > { %v5804_v23 = vpop.eup %5803  ;;  %4029 = vst.msk [vmem:[%s6724_s21 + $0x2ac] sm:$0xf] %vm3857_vm1, %v4946_v16  ;;  %v4944_v24 = vpack.c.bf16 %v5802_v19, %v5802_v19  ;;  %v1749_v25 = vpop.f32.mrb[51].mxu0  ;;  %5829 = vtanh.f32 %v5345_v22 }
 0x199   : > { %v2261_v26 = vpop.f32.mrb[51].mxu1  ;;  %v5806_v27 = vpop.eup %5805  ;;  %3899 = vst.msk [vmem:[%s6724_s21 + $0xa4] sm:$0xf] %vm3857_vm1, %v4816_v20  ;;  %v4821_v28 = vpack.c.bf16 %v5804_v23, %v5804_v23  ;;  %5831 = vtanh.f32 %v1749_v25 }
 0x19a   : > { %v5808_v29 = vpop.eup %5807  ;;  %4027 = vst.msk [vmem:[%s6724_s21 + $0x2a4] sm:$0xf] %vm3857_vm1, %v4944_v24  ;;  %v4949_v30 = vpack.c.bf16 %v5806_v27, %v5806_v27  ;;  %5833 = vtanh.f32 %v2261_v26  ;;  %v5220_v37 = vpop.f32.mrb[52].mxu0 }
 0x19b   : > { %v5810_v31 = vpop.eup %5809  ;;  %3904 = vst.msk [vmem:[%s6724_s21 + $0xb8] sm:$0xf] %vm3857_vm1, %v4821_v28  ;;  %v4819_v32 = vpack.c.bf16 %v5808_v29, %v5808_v29  ;;  %v5348_v38 = vpop.f32.mrb[52].mxu1  ;;  %5835 = vtanh.f32 %v5220_v37 }
 0x19c   : > { %v5812_v33 = vpop.eup %5811  ;;  %4032 = vst.msk [vmem:[%s6724_s21 + $0x2b8] sm:$0xf] %vm3857_vm1, %v4949_v30  ;;  %v4947_v34 = vpack.c.bf16 %v5810_v31, %v5810_v31  ;;  %v1762_v41 = vpop.f32.mrb[53].mxu0  ;;  %5837 = vtanh.f32 %v5348_v38 }
 0x19d   : > { %v5814_v35 = vpop.eup %5813  ;;  %3902 = vst.msk [vmem:[%s6724_s21 + $0xb0] sm:$0xf] %vm3857_vm1, %v4819_v32  ;;  %v4822_v36 = vpack.c.bf16 %v5812_v33, %v5812_v33  ;;  %v2274_v42 = vpop.f32.mrb[53].mxu1  ;;  %5839 = vtanh.f32 %v1762_v41 }
 0x19e   : > { %v5816_v39 = vpop.eup %5815  ;;  %4030 = vst.msk [vmem:[%s6724_s21 + $0x2b0] sm:$0xf] %vm3857_vm1, %v4947_v34  ;;  %v4950_v40 = vpack.c.bf16 %v5814_v35, %v5814_v35  ;;  %v5221_v45 = vpop.f32.mrb[54].mxu0  ;;  %5841 = vtanh.f32 %v2274_v42 }
 0x19f   : > { %v5818_v43 = vpop.eup %5817  ;;  %3905 = vst.msk [vmem:[%s6724_s21 + $0xbc] sm:$0xf] %vm3857_vm1, %v4822_v36  ;;  %v4820_v44 = vpack.c.bf16 %v5816_v39, %v5816_v39  ;;  %v5349_v46 = vpop.f32.mrb[54].mxu1  ;;  %5843 = vtanh.f32 %v5221_v45 }
 0x1a0   : > { %v5820_v47 = vpop.eup %5819  ;;  %4033 = vst.msk [vmem:[%s6724_s21 + $0x2bc] sm:$0xf] %vm3857_vm1, %v4950_v40  ;;  %v4948_v48 = vpack.c.bf16 %v5818_v43, %v5818_v43  ;;  %v1765_v49 = vpop.f32.mrb[55].mxu0  ;;  %5845 = vtanh.f32 %v5349_v46 }
 0x1a1   : > { %v2277_v50 = vpop.f32.mrb[55].mxu1  ;;  %v5822_v51 = vpop.eup %5821  ;;  %3903 = vst.msk [vmem:[%s6724_s21 + $0xb4] sm:$0xf] %vm3857_vm1, %v4820_v44  ;;  %v4825_v52 = vpack.c.bf16 %v5820_v47, %v5820_v47  ;;  %5847 = vtanh.f32 %v1765_v49 }
 0x1a2   : > { %v5824_v53 = vpop.eup %5823  ;;  %4031 = vst.msk [vmem:[%s6724_s21 + $0x2b4] sm:$0xf] %vm3857_vm1, %v4948_v48  ;;  %v4953_v54 = vpack.c.bf16 %v5822_v51, %v5822_v51  ;;  %5849 = vtanh.f32 %v2277_v50  ;;  %v5224_v61 = vpop.f32.mrb[56].mxu0 }
 0x1a3   : > { %v5826_v55 = vpop.eup %5825  ;;  %3908 = vst.msk [vmem:[%s6724_s21 + $0xc8] sm:$0xf] %vm3857_vm1, %v4825_v52  ;;  %v4823_v56 = vpack.c.bf16 %v5824_v53, %v5824_v53  ;;  %v5352_v62 = vpop.f32.mrb[56].mxu1  ;;  %5851 = vtanh.f32 %v5224_v61 }
 0x1a4   : > { %v5828_v57 = vpop.eup %5827  ;;  %4036 = vst.msk [vmem:[%s6724_s21 + $0x2c8] sm:$0xf] %vm3857_vm1, %v4953_v54  ;;  %v4951_v58 = vpack.c.bf16 %v5826_v55, %v5826_v55  ;;  %v1778_v1 = vpop.f32.mrb[57].mxu0  ;;  %5853 = vtanh.f32 %v5352_v62 }
 0x1a5   : > { %v5830_v59 = vpop.eup %5829  ;;  %3906 = vst.msk [vmem:[%s6724_s21 + $0xc0] sm:$0xf] %vm3857_vm1, %v4823_v56  ;;  %v4826_v60 = vpack.c.bf16 %v5828_v57, %v5828_v57  ;;  %v2290_v2 = vpop.f32.mrb[57].mxu1  ;;  %5855 = vtanh.f32 %v1778_v1 }
 0x1a6   : > { %v5832_v63 = vpop.eup %5831  ;;  %4034 = vst.msk [vmem:[%s6724_s21 + $0x2c0] sm:$0xf] %vm3857_vm1, %v4951_v58  ;;  %v4954_v0 = vpack.c.bf16 %v5830_v59, %v5830_v59  ;;  %v5225_v5 = vpop.f32.mrb[58].mxu0  ;;  %5857 = vtanh.f32 %v2290_v2 }
 0x1a7   : > { %v5834_v3 = vpop.eup %5833  ;;  %3909 = vst.msk [vmem:[%s6724_s21 + $0xcc] sm:$0xf] %vm3857_vm1, %v4826_v60  ;;  %v4824_v4 = vpack.c.bf16 %v5832_v63, %v5832_v63  ;;  %v5353_v6 = vpop.f32.mrb[58].mxu1  ;;  %5859 = vtanh.f32 %v5225_v5 }
 0x1a8   : > { %v5836_v7 = vpop.eup %5835  ;;  %4037 = vst.msk [vmem:[%s6724_s21 + $0x2cc] sm:$0xf] %vm3857_vm1, %v4954_v0  ;;  %v4952_v8 = vpack.c.bf16 %v5834_v3, %v5834_v3  ;;  %v1781_v9 = vpop.f32.mrb[59].mxu0  ;;  %5861 = vtanh.f32 %v5353_v6 }
 0x1a9   : > { %v2293_v10 = vpop.f32.mrb[59].mxu1  ;;  %v5838_v11 = vpop.eup %5837  ;;  %3907 = vst.msk [vmem:[%s6724_s21 + $0xc4] sm:$0xf] %vm3857_vm1, %v4824_v4  ;;  %v4829_v12 = vpack.c.bf16 %v5836_v7, %v5836_v7  ;;  %5863 = vtanh.f32 %v1781_v9 }
 0x1aa   : > { %v5840_v13 = vpop.eup %5839  ;;  %4035 = vst.msk [vmem:[%s6724_s21 + $0x2c4] sm:$0xf] %vm3857_vm1, %v4952_v8  ;;  %v4957_v14 = vpack.c.bf16 %v5838_v11, %v5838_v11  ;;  %5865 = vtanh.f32 %v2293_v10  ;;  %v5228_v21 = vpop.f32.mrb[60].mxu0 }
 0x1ab   : > { %v5842_v15 = vpop.eup %5841  ;;  %3912 = vst.msk [vmem:[%s6724_s21 + $0xd8] sm:$0xf] %vm3857_vm1, %v4829_v12  ;;  %v4827_v16 = vpack.c.bf16 %v5840_v13, %v5840_v13  ;;  %v5356_v22 = vpop.f32.mrb[60].mxu1  ;;  %5867 = vtanh.f32 %v5228_v21 }
 0x1ac   : > { %v5844_v17 = vpop.eup %5843  ;;  %4040 = vst.msk [vmem:[%s6724_s21 + $0x2d8] sm:$0xf] %vm3857_vm1, %v4957_v14  ;;  %v4955_v18 = vpack.c.bf16 %v5842_v15, %v5842_v15  ;;  %v1794_v25 = vpop.f32.mrb[61].mxu0  ;;  %5869 = vtanh.f32 %v5356_v22 }
 0x1ad   : > { %v5846_v19 = vpop.eup %5845  ;;  %3910 = vst.msk [vmem:[%s6724_s21 + $0xd0] sm:$0xf] %vm3857_vm1, %v4827_v16  ;;  %v4830_v20 = vpack.c.bf16 %v5844_v17, %v5844_v17  ;;  %v2306_v26 = vpop.f32.mrb[61].mxu1  ;;  %5871 = vtanh.f32 %v1794_v25 }
 0x1ae   : > { %v5848_v23 = vpop.eup %5847  ;;  %4038 = vst.msk [vmem:[%s6724_s21 + $0x2d0] sm:$0xf] %vm3857_vm1, %v4955_v18  ;;  %v4958_v24 = vpack.c.bf16 %v5846_v19, %v5846_v19  ;;  %v5229_v29 = vpop.f32.mrb[62].mxu0  ;;  %5873 = vtanh.f32 %v2306_v26 }
 0x1af   : > { %v5850_v27 = vpop.eup %5849  ;;  %3913 = vst.msk [vmem:[%s6724_s21 + $0xdc] sm:$0xf] %vm3857_vm1, %v4830_v20  ;;  %v4828_v28 = vpack.c.bf16 %v5848_v23, %v5848_v23  ;;  %v5357_v30 = vpop.f32.mrb[62].mxu1  ;;  %5875 = vtanh.f32 %v5229_v29 }
 0x1b0   : > { %v5852_v31 = vpop.eup %5851  ;;  %4041 = vst.msk [vmem:[%s6724_s21 + $0x2dc] sm:$0xf] %vm3857_vm1, %v4958_v24  ;;  %v4956_v32 = vpack.c.bf16 %v5850_v27, %v5850_v27  ;;  %v1797_v33 = vpop.f32.mrb[63].mxu0  ;;  %5877 = vtanh.f32 %v5357_v30 }
 0x1b1   : > { %v2309_v34 = vpop.f32.mrb[63].mxu1  ;;  %v5854_v35 = vpop.eup %5853  ;;  %3911 = vst.msk [vmem:[%s6724_s21 + $0xd4] sm:$0xf] %vm3857_vm1, %v4828_v28  ;;  %v4833_v36 = vpack.c.bf16 %v5852_v31, %v5852_v31  ;;  %5879 = vtanh.f32 %v1797_v33 }
 0x1b2   : > { %v5856_v37 = vpop.eup %5855  ;;  %4039 = vst.msk [vmem:[%s6724_s21 + $0x2d4] sm:$0xf] %vm3857_vm1, %v4956_v32  ;;  %v4961_v38 = vpack.c.bf16 %v5854_v35, %v5854_v35  ;;  %5881 = vtanh.f32 %v2309_v34  ;;  %v5232_v45 = vpop.f32.mrb[64].mxu0 }
 0x1b3   : > { %v5858_v39 = vpop.eup %5857  ;;  %3916 = vst.msk [vmem:[%s6724_s21 + $0xe8] sm:$0xf] %vm3857_vm1, %v4833_v36  ;;  %v4831_v40 = vpack.c.bf16 %v5856_v37, %v5856_v37  ;;  %v5360_v46 = vpop.f32.mrb[64].mxu1  ;;  %5883 = vtanh.f32 %v5232_v45 }
 0x1b4   : > { %v5860_v41 = vpop.eup %5859  ;;  %4044 = vst.msk [vmem:[%s6724_s21 + $0x2e8] sm:$0xf] %vm3857_vm1, %v4961_v38  ;;  %v4959_v42 = vpack.c.bf16 %v5858_v39, %v5858_v39  ;;  %v1810_v49 = vpop.f32.mrb[65].mxu0  ;;  %5885 = vtanh.f32 %v5360_v46 }
 0x1b5   : > { %v5862_v43 = vpop.eup %5861  ;;  %3914 = vst.msk [vmem:[%s6724_s21 + $0xe0] sm:$0xf] %vm3857_vm1, %v4831_v40  ;;  %v4834_v44 = vpack.c.bf16 %v5860_v41, %v5860_v41  ;;  %v2322_v50 = vpop.f32.mrb[65].mxu1  ;;  %5887 = vtanh.f32 %v1810_v49 }
 0x1b6   : > { %v5864_v47 = vpop.eup %5863  ;;  %4042 = vst.msk [vmem:[%s6724_s21 + $0x2e0] sm:$0xf] %vm3857_vm1, %v4959_v42  ;;  %v4962_v48 = vpack.c.bf16 %v5862_v43, %v5862_v43  ;;  %v5233_v53 = vpop.f32.mrb[66].mxu0  ;;  %5889 = vtanh.f32 %v2322_v50 }
 0x1b7   : > { %v5866_v51 = vpop.eup %5865  ;;  %3917 = vst.msk [vmem:[%s6724_s21 + $0xec] sm:$0xf] %vm3857_vm1, %v4834_v44  ;;  %v4832_v52 = vpack.c.bf16 %v5864_v47, %v5864_v47  ;;  %v5361_v54 = vpop.f32.mrb[66].mxu1  ;;  %5891 = vtanh.f32 %v5233_v53 }
 0x1b8   : > { %v5868_v55 = vpop.eup %5867  ;;  %4045 = vst.msk [vmem:[%s6724_s21 + $0x2ec] sm:$0xf] %vm3857_vm1, %v4962_v48  ;;  %v4960_v56 = vpack.c.bf16 %v5866_v51, %v5866_v51  ;;  %v1813_v57 = vpop.f32.mrb[67].mxu0  ;;  %5893 = vtanh.f32 %v5361_v54 }
 0x1b9   : > { %v2325_v58 = vpop.f32.mrb[67].mxu1  ;;  %v5870_v59 = vpop.eup %5869  ;;  %3915 = vst.msk [vmem:[%s6724_s21 + $0xe4] sm:$0xf] %vm3857_vm1, %v4832_v52  ;;  %v4837_v60 = vpack.c.bf16 %v5868_v55, %v5868_v55  ;;  %5895 = vtanh.f32 %v1813_v57 }
 0x1ba   : > { %v5872_v61 = vpop.eup %5871  ;;  %4043 = vst.msk [vmem:[%s6724_s21 + $0x2e4] sm:$0xf] %vm3857_vm1, %v4960_v56  ;;  %v4965_v62 = vpack.c.bf16 %v5870_v59, %v5870_v59  ;;  %5897 = vtanh.f32 %v2325_v58  ;;  %v5236_v5 = vpop.f32.mrb[68].mxu0 }
 0x1bb   : > { %v5874_v63 = vpop.eup %5873  ;;  %3920 = vst.msk [vmem:[%s6724_s21 + $0xf8] sm:$0xf] %vm3857_vm1, %v4837_v60  ;;  %v4835_v0 = vpack.c.bf16 %v5872_v61, %v5872_v61  ;;  %v5364_v6 = vpop.f32.mrb[68].mxu1  ;;  %5899 = vtanh.f32 %v5236_v5 }
 0x1bc   : > { %v5876_v1 = vpop.eup %5875  ;;  %4048 = vst.msk [vmem:[%s6724_s21 + $0x2f8] sm:$0xf] %vm3857_vm1, %v4965_v62  ;;  %v4963_v2 = vpack.c.bf16 %v5874_v63, %v5874_v63  ;;  %v1826_v9 = vpop.f32.mrb[69].mxu0  ;;  %5901 = vtanh.f32 %v5364_v6 }
 0x1bd   : > { %v5878_v3 = vpop.eup %5877  ;;  %3918 = vst.msk [vmem:[%s6724_s21 + $0xf0] sm:$0xf] %vm3857_vm1, %v4835_v0  ;;  %v4838_v4 = vpack.c.bf16 %v5876_v1, %v5876_v1  ;;  %v2338_v10 = vpop.f32.mrb[69].mxu1  ;;  %5903 = vtanh.f32 %v1826_v9 }
 0x1be   : > { %v5880_v7 = vpop.eup %5879  ;;  %4046 = vst.msk [vmem:[%s6724_s21 + $0x2f0] sm:$0xf] %vm3857_vm1, %v4963_v2  ;;  %v4966_v8 = vpack.c.bf16 %v5878_v3, %v5878_v3  ;;  %v5237_v13 = vpop.f32.mrb[70].mxu0  ;;  %5905 = vtanh.f32 %v2338_v10 }
 0x1bf   : > { %v5882_v11 = vpop.eup %5881  ;;  %3921 = vst.msk [vmem:[%s6724_s21 + $0xfc] sm:$0xf] %vm3857_vm1, %v4838_v4  ;;  %v4836_v12 = vpack.c.bf16 %v5880_v7, %v5880_v7  ;;  %v5365_v14 = vpop.f32.mrb[70].mxu1  ;;  %5907 = vtanh.f32 %v5237_v13 }
 0x1c0   : > { %v5884_v15 = vpop.eup %5883  ;;  %4049 = vst.msk [vmem:[%s6724_s21 + $0x2fc] sm:$0xf] %vm3857_vm1, %v4966_v8  ;;  %v4964_v16 = vpack.c.bf16 %v5882_v11, %v5882_v11  ;;  %v1829_v17 = vpop.f32.mrb[71].mxu0  ;;  %5909 = vtanh.f32 %v5365_v14 }
 0x1c1   : > { %v2341_v18 = vpop.f32.mrb[71].mxu1  ;;  %v5886_v19 = vpop.eup %5885  ;;  %3919 = vst.msk [vmem:[%s6724_s21 + $0xf4] sm:$0xf] %vm3857_vm1, %v4836_v12  ;;  %v4841_v20 = vpack.c.bf16 %v5884_v15, %v5884_v15  ;;  %5911 = vtanh.f32 %v1829_v17 }
 0x1c2   : > { %v5888_v21 = vpop.eup %5887  ;;  %4047 = vst.msk [vmem:[%s6724_s21 + $0x2f4] sm:$0xf] %vm3857_vm1, %v4964_v16  ;;  %v4969_v22 = vpack.c.bf16 %v5886_v19, %v5886_v19  ;;  %5913 = vtanh.f32 %v2341_v18  ;;  %v5240_v29 = vpop.f32.mrb[72].mxu0 }
 0x1c3   : > { %v5890_v23 = vpop.eup %5889  ;;  %3924 = vst.msk [vmem:[%s6724_s21 + $0x108] sm:$0xf] %vm3857_vm1, %v4841_v20  ;;  %v4839_v24 = vpack.c.bf16 %v5888_v21, %v5888_v21  ;;  %v5368_v30 = vpop.f32.mrb[72].mxu1  ;;  %5915 = vtanh.f32 %v5240_v29 }
 0x1c4   : > { %v5892_v25 = vpop.eup %5891  ;;  %4052 = vst.msk [vmem:[%s6724_s21 + $0x308] sm:$0xf] %vm3857_vm1, %v4969_v22  ;;  %v4967_v26 = vpack.c.bf16 %v5890_v23, %v5890_v23  ;;  %v1842_v33 = vpop.f32.mrb[73].mxu0  ;;  %5917 = vtanh.f32 %v5368_v30 }
 0x1c5   : > { %v5894_v27 = vpop.eup %5893  ;;  %3922 = vst.msk [vmem:[%s6724_s21 + $0x100] sm:$0xf] %vm3857_vm1, %v4839_v24  ;;  %v4842_v28 = vpack.c.bf16 %v5892_v25, %v5892_v25  ;;  %v2354_v34 = vpop.f32.mrb[73].mxu1  ;;  %5919 = vtanh.f32 %v1842_v33 }
 0x1c6   : > { %v5896_v31 = vpop.eup %5895  ;;  %4050 = vst.msk [vmem:[%s6724_s21 + $0x300] sm:$0xf] %vm3857_vm1, %v4967_v26  ;;  %v4970_v32 = vpack.c.bf16 %v5894_v27, %v5894_v27  ;;  %v5241_v37 = vpop.f32.mrb[74].mxu0  ;;  %5921 = vtanh.f32 %v2354_v34 }
 0x1c7   : > { %v5898_v35 = vpop.eup %5897  ;;  %3925 = vst.msk [vmem:[%s6724_s21 + $0x10c] sm:$0xf] %vm3857_vm1, %v4842_v28  ;;  %v4840_v36 = vpack.c.bf16 %v5896_v31, %v5896_v31  ;;  %v5369_v38 = vpop.f32.mrb[74].mxu1  ;;  %5923 = vtanh.f32 %v5241_v37 }
 0x1c8   : > { %v5900_v39 = vpop.eup %5899  ;;  %4053 = vst.msk [vmem:[%s6724_s21 + $0x30c] sm:$0xf] %vm3857_vm1, %v4970_v32  ;;  %v4968_v40 = vpack.c.bf16 %v5898_v35, %v5898_v35  ;;  %v1845_v41 = vpop.f32.mrb[75].mxu0  ;;  %5925 = vtanh.f32 %v5369_v38 }
 0x1c9   : > { %v2357_v42 = vpop.f32.mrb[75].mxu1  ;;  %v5902_v43 = vpop.eup %5901  ;;  %3923 = vst.msk [vmem:[%s6724_s21 + $0x104] sm:$0xf] %vm3857_vm1, %v4840_v36  ;;  %v4845_v44 = vpack.c.bf16 %v5900_v39, %v5900_v39  ;;  %5927 = vtanh.f32 %v1845_v41 }
 0x1ca   : > { %v5904_v45 = vpop.eup %5903  ;;  %4051 = vst.msk [vmem:[%s6724_s21 + $0x304] sm:$0xf] %vm3857_vm1, %v4968_v40  ;;  %v4973_v46 = vpack.c.bf16 %v5902_v43, %v5902_v43  ;;  %5929 = vtanh.f32 %v2357_v42  ;;  %v5244_v53 = vpop.f32.mrb[76].mxu0 }
 0x1cb   : > { %v5906_v47 = vpop.eup %5905  ;;  %3928 = vst.msk [vmem:[%s6724_s21 + $0x118] sm:$0xf] %vm3857_vm1, %v4845_v44  ;;  %v4843_v48 = vpack.c.bf16 %v5904_v45, %v5904_v45  ;;  %v5372_v54 = vpop.f32.mrb[76].mxu1  ;;  %5931 = vtanh.f32 %v5244_v53 }
 0x1cc   : > { %v5908_v49 = vpop.eup %5907  ;;  %4056 = vst.msk [vmem:[%s6724_s21 + $0x318] sm:$0xf] %vm3857_vm1, %v4973_v46  ;;  %v4971_v50 = vpack.c.bf16 %v5906_v47, %v5906_v47  ;;  %v1858_v57 = vpop.f32.mrb[77].mxu0  ;;  %5933 = vtanh.f32 %v5372_v54 }
 0x1cd   : > { %v5910_v51 = vpop.eup %5909  ;;  %3926 = vst.msk [vmem:[%s6724_s21 + $0x110] sm:$0xf] %vm3857_vm1, %v4843_v48  ;;  %v4846_v52 = vpack.c.bf16 %v5908_v49, %v5908_v49  ;;  %v2370_v58 = vpop.f32.mrb[77].mxu1  ;;  %5935 = vtanh.f32 %v1858_v57 }
 0x1ce   : > { %v5912_v55 = vpop.eup %5911  ;;  %4054 = vst.msk [vmem:[%s6724_s21 + $0x310] sm:$0xf] %vm3857_vm1, %v4971_v50  ;;  %v4974_v56 = vpack.c.bf16 %v5910_v51, %v5910_v51  ;;  %v5245_v61 = vpop.f32.mrb[78].mxu0  ;;  %5937 = vtanh.f32 %v2370_v58 }
 0x1cf   : > { %v5914_v59 = vpop.eup %5913  ;;  %3929 = vst.msk [vmem:[%s6724_s21 + $0x11c] sm:$0xf] %vm3857_vm1, %v4846_v52  ;;  %v4844_v60 = vpack.c.bf16 %v5912_v55, %v5912_v55  ;;  %v5373_v62 = vpop.f32.mrb[78].mxu1  ;;  %5939 = vtanh.f32 %v5245_v61 }
 0x1d0   : > { %v5916_v63 = vpop.eup %5915  ;;  %4057 = vst.msk [vmem:[%s6724_s21 + $0x31c] sm:$0xf] %vm3857_vm1, %v4974_v56  ;;  %v4972_v0 = vpack.c.bf16 %v5914_v59, %v5914_v59  ;;  %v1861_v1 = vpop.f32.mrb[79].mxu0  ;;  %5941 = vtanh.f32 %v5373_v62 }
 0x1d1   : > { %v2373_v2 = vpop.f32.mrb[79].mxu1  ;;  %v5918_v3 = vpop.eup %5917  ;;  %3927 = vst.msk [vmem:[%s6724_s21 + $0x114] sm:$0xf] %vm3857_vm1, %v4844_v60  ;;  %v4849_v4 = vpack.c.bf16 %v5916_v63, %v5916_v63  ;;  %5943 = vtanh.f32 %v1861_v1 }
 0x1d2   : > { %v5920_v5 = vpop.eup %5919  ;;  %4055 = vst.msk [vmem:[%s6724_s21 + $0x314] sm:$0xf] %vm3857_vm1, %v4972_v0  ;;  %v4977_v6 = vpack.c.bf16 %v5918_v3, %v5918_v3  ;;  %5945 = vtanh.f32 %v2373_v2  ;;  %v5248_v13 = vpop.f32.mrb[80].mxu0 }
 0x1d3   : > { %v5922_v7 = vpop.eup %5921  ;;  %3932 = vst.msk [vmem:[%s6724_s21 + $0x128] sm:$0xf] %vm3857_vm1, %v4849_v4  ;;  %v4847_v8 = vpack.c.bf16 %v5920_v5, %v5920_v5  ;;  %v5376_v14 = vpop.f32.mrb[80].mxu1  ;;  %5947 = vtanh.f32 %v5248_v13 }
 0x1d4   : > { %v5924_v9 = vpop.eup %5923  ;;  %4060 = vst.msk [vmem:[%s6724_s21 + $0x328] sm:$0xf] %vm3857_vm1, %v4977_v6  ;;  %v4975_v10 = vpack.c.bf16 %v5922_v7, %v5922_v7  ;;  %v1874_v17 = vpop.f32.mrb[81].mxu0  ;;  %5949 = vtanh.f32 %v5376_v14 }
 0x1d5   : > { %v5926_v11 = vpop.eup %5925  ;;  %3930 = vst.msk [vmem:[%s6724_s21 + $0x120] sm:$0xf] %vm3857_vm1, %v4847_v8  ;;  %v4850_v12 = vpack.c.bf16 %v5924_v9, %v5924_v9  ;;  %v2386_v18 = vpop.f32.mrb[81].mxu1  ;;  %5951 = vtanh.f32 %v1874_v17 }
 0x1d6   : > { %v5928_v15 = vpop.eup %5927  ;;  %4058 = vst.msk [vmem:[%s6724_s21 + $0x320] sm:$0xf] %vm3857_vm1, %v4975_v10  ;;  %v4978_v16 = vpack.c.bf16 %v5926_v11, %v5926_v11  ;;  %v5249_v21 = vpop.f32.mrb[82].mxu0  ;;  %5953 = vtanh.f32 %v2386_v18 }
 0x1d7   : > { %v5930_v19 = vpop.eup %5929  ;;  %3933 = vst.msk [vmem:[%s6724_s21 + $0x12c] sm:$0xf] %vm3857_vm1, %v4850_v12  ;;  %v4848_v20 = vpack.c.bf16 %v5928_v15, %v5928_v15  ;;  %v5377_v22 = vpop.f32.mrb[82].mxu1  ;;  %5955 = vtanh.f32 %v5249_v21 }
 0x1d8   : > { %v5932_v23 = vpop.eup %5931  ;;  %4061 = vst.msk [vmem:[%s6724_s21 + $0x32c] sm:$0xf] %vm3857_vm1, %v4978_v16  ;;  %v4976_v24 = vpack.c.bf16 %v5930_v19, %v5930_v19  ;;  %v1877_v25 = vpop.f32.mrb[83].mxu0  ;;  %5957 = vtanh.f32 %v5377_v22 }
 0x1d9   : > { %v2389_v26 = vpop.f32.mrb[83].mxu1  ;;  %v5934_v27 = vpop.eup %5933  ;;  %3931 = vst.msk [vmem:[%s6724_s21 + $0x124] sm:$0xf] %vm3857_vm1, %v4848_v20  ;;  %v4853_v28 = vpack.c.bf16 %v5932_v23, %v5932_v23  ;;  %5959 = vtanh.f32 %v1877_v25 }
 0x1da   : > { %v5936_v29 = vpop.eup %5935  ;;  %4059 = vst.msk [vmem:[%s6724_s21 + $0x324] sm:$0xf] %vm3857_vm1, %v4976_v24  ;;  %v4981_v30 = vpack.c.bf16 %v5934_v27, %v5934_v27  ;;  %5961 = vtanh.f32 %v2389_v26  ;;  %v5252_v37 = vpop.f32.mrb[84].mxu0 }
 0x1db   : > { %v5938_v31 = vpop.eup %5937  ;;  %3936 = vst.msk [vmem:[%s6724_s21 + $0x138] sm:$0xf] %vm3857_vm1, %v4853_v28  ;;  %v4851_v32 = vpack.c.bf16 %v5936_v29, %v5936_v29  ;;  %v5380_v38 = vpop.f32.mrb[84].mxu1  ;;  %5963 = vtanh.f32 %v5252_v37 }
 0x1dc   : > { %v5940_v33 = vpop.eup %5939  ;;  %4064 = vst.msk [vmem:[%s6724_s21 + $0x338] sm:$0xf] %vm3857_vm1, %v4981_v30  ;;  %v4979_v34 = vpack.c.bf16 %v5938_v31, %v5938_v31  ;;  %v1890_v41 = vpop.f32.mrb[85].mxu0  ;;  %5965 = vtanh.f32 %v5380_v38 }
 0x1dd   : > { %v5942_v35 = vpop.eup %5941  ;;  %3934 = vst.msk [vmem:[%s6724_s21 + $0x130] sm:$0xf] %vm3857_vm1, %v4851_v32  ;;  %v4854_v36 = vpack.c.bf16 %v5940_v33, %v5940_v33  ;;  %v2402_v42 = vpop.f32.mrb[85].mxu1  ;;  %5967 = vtanh.f32 %v1890_v41 }
 0x1de   : > { %v5944_v39 = vpop.eup %5943  ;;  %4062 = vst.msk [vmem:[%s6724_s21 + $0x330] sm:$0xf] %vm3857_vm1, %v4979_v34  ;;  %v4982_v40 = vpack.c.bf16 %v5942_v35, %v5942_v35  ;;  %v5253_v45 = vpop.f32.mrb[86].mxu0  ;;  %5969 = vtanh.f32 %v2402_v42 }
 0x1df   : > { %v5946_v43 = vpop.eup %5945  ;;  %3937 = vst.msk [vmem:[%s6724_s21 + $0x13c] sm:$0xf] %vm3857_vm1, %v4854_v36  ;;  %v4852_v44 = vpack.c.bf16 %v5944_v39, %v5944_v39  ;;  %v5381_v46 = vpop.f32.mrb[86].mxu1  ;;  %5971 = vtanh.f32 %v5253_v45 }
 0x1e0   : > { %v5948_v47 = vpop.eup %5947  ;;  %4065 = vst.msk [vmem:[%s6724_s21 + $0x33c] sm:$0xf] %vm3857_vm1, %v4982_v40  ;;  %v4980_v48 = vpack.c.bf16 %v5946_v43, %v5946_v43  ;;  %v1893_v49 = vpop.f32.mrb[87].mxu0  ;;  %5973 = vtanh.f32 %v5381_v46 }
 0x1e1   : > { %v2405_v50 = vpop.f32.mrb[87].mxu1  ;;  %v5950_v51 = vpop.eup %5949  ;;  %3935 = vst.msk [vmem:[%s6724_s21 + $0x134] sm:$0xf] %vm3857_vm1, %v4852_v44  ;;  %v4857_v52 = vpack.c.bf16 %v5948_v47, %v5948_v47  ;;  %5975 = vtanh.f32 %v1893_v49 }
 0x1e2   : > { %v5952_v53 = vpop.eup %5951  ;;  %4063 = vst.msk [vmem:[%s6724_s21 + $0x334] sm:$0xf] %vm3857_vm1, %v4980_v48  ;;  %v4985_v54 = vpack.c.bf16 %v5950_v51, %v5950_v51  ;;  %5977 = vtanh.f32 %v2405_v50  ;;  %v5256_v61 = vpop.f32.mrb[88].mxu0 }
 0x1e3   : > { %v5954_v55 = vpop.eup %5953  ;;  %3940 = vst.msk [vmem:[%s6724_s21 + $0x148] sm:$0xf] %vm3857_vm1, %v4857_v52  ;;  %v4855_v56 = vpack.c.bf16 %v5952_v53, %v5952_v53  ;;  %v5384_v62 = vpop.f32.mrb[88].mxu1  ;;  %5979 = vtanh.f32 %v5256_v61 }
 0x1e4   : > { %v5956_v57 = vpop.eup %5955  ;;  %4068 = vst.msk [vmem:[%s6724_s21 + $0x348] sm:$0xf] %vm3857_vm1, %v4985_v54  ;;  %v4983_v58 = vpack.c.bf16 %v5954_v55, %v5954_v55  ;;  %v1906_v1 = vpop.f32.mrb[89].mxu0  ;;  %5981 = vtanh.f32 %v5384_v62 }
 0x1e5   : > { %v5958_v59 = vpop.eup %5957  ;;  %3938 = vst.msk [vmem:[%s6724_s21 + $0x140] sm:$0xf] %vm3857_vm1, %v4855_v56  ;;  %v4858_v60 = vpack.c.bf16 %v5956_v57, %v5956_v57  ;;  %v2418_v2 = vpop.f32.mrb[89].mxu1  ;;  %5983 = vtanh.f32 %v1906_v1 }
 0x1e6   : > { %v5960_v63 = vpop.eup %5959  ;;  %4066 = vst.msk [vmem:[%s6724_s21 + $0x340] sm:$0xf] %vm3857_vm1, %v4983_v58  ;;  %v4986_v0 = vpack.c.bf16 %v5958_v59, %v5958_v59  ;;  %v5257_v5 = vpop.f32.mrb[90].mxu0  ;;  %5985 = vtanh.f32 %v2418_v2 }
 0x1e7   : > { %v5962_v3 = vpop.eup %5961  ;;  %3941 = vst.msk [vmem:[%s6724_s21 + $0x14c] sm:$0xf] %vm3857_vm1, %v4858_v60  ;;  %v4856_v4 = vpack.c.bf16 %v5960_v63, %v5960_v63  ;;  %v5385_v6 = vpop.f32.mrb[90].mxu1  ;;  %5987 = vtanh.f32 %v5257_v5 }
 0x1e8   : > { %v5964_v7 = vpop.eup %5963  ;;  %4069 = vst.msk [vmem:[%s6724_s21 + $0x34c] sm:$0xf] %vm3857_vm1, %v4986_v0  ;;  %v4984_v8 = vpack.c.bf16 %v5962_v3, %v5962_v3  ;;  %v1909_v9 = vpop.f32.mrb[91].mxu0  ;;  %5989 = vtanh.f32 %v5385_v6 }
 0x1e9   : > { %v2421_v10 = vpop.f32.mrb[91].mxu1  ;;  %v5966_v11 = vpop.eup %5965  ;;  %3939 = vst.msk [vmem:[%s6724_s21 + $0x144] sm:$0xf] %vm3857_vm1, %v4856_v4  ;;  %v4861_v12 = vpack.c.bf16 %v5964_v7, %v5964_v7  ;;  %5991 = vtanh.f32 %v1909_v9 }
 0x1ea   : > { %v5968_v13 = vpop.eup %5967  ;;  %4067 = vst.msk [vmem:[%s6724_s21 + $0x344] sm:$0xf] %vm3857_vm1, %v4984_v8  ;;  %v4989_v14 = vpack.c.bf16 %v5966_v11, %v5966_v11  ;;  %5993 = vtanh.f32 %v2421_v10  ;;  %v5260_v21 = vpop.f32.mrb[92].mxu0 }
 0x1eb   : > { %v5970_v15 = vpop.eup %5969  ;;  %3944 = vst.msk [vmem:[%s6724_s21 + $0x158] sm:$0xf] %vm3857_vm1, %v4861_v12  ;;  %v4859_v16 = vpack.c.bf16 %v5968_v13, %v5968_v13  ;;  %v5388_v22 = vpop.f32.mrb[92].mxu1  ;;  %5995 = vtanh.f32 %v5260_v21 }
 0x1ec   : > { %v5972_v17 = vpop.eup %5971  ;;  %4072 = vst.msk [vmem:[%s6724_s21 + $0x358] sm:$0xf] %vm3857_vm1, %v4989_v14  ;;  %v4987_v18 = vpack.c.bf16 %v5970_v15, %v5970_v15  ;;  %v1922_v25 = vpop.f32.mrb[93].mxu0  ;;  %5997 = vtanh.f32 %v5388_v22 }
 0x1ed   : > { %v5974_v19 = vpop.eup %5973  ;;  %3942 = vst.msk [vmem:[%s6724_s21 + $0x150] sm:$0xf] %vm3857_vm1, %v4859_v16  ;;  %v4862_v20 = vpack.c.bf16 %v5972_v17, %v5972_v17  ;;  %v2434_v26 = vpop.f32.mrb[93].mxu1  ;;  %5999 = vtanh.f32 %v1922_v25 }
 0x1ee   : > { %v5976_v23 = vpop.eup %5975  ;;  %4070 = vst.msk [vmem:[%s6724_s21 + $0x350] sm:$0xf] %vm3857_vm1, %v4987_v18  ;;  %v4990_v24 = vpack.c.bf16 %v5974_v19, %v5974_v19  ;;  %v5261_v29 = vpop.f32.mrb[94].mxu0  ;;  %6001 = vtanh.f32 %v2434_v26 }
 0x1ef   : > { %v5978_v27 = vpop.eup %5977  ;;  %3945 = vst.msk [vmem:[%s6724_s21 + $0x15c] sm:$0xf] %vm3857_vm1, %v4862_v20  ;;  %v4860_v28 = vpack.c.bf16 %v5976_v23, %v5976_v23  ;;  %v5389_v30 = vpop.f32.mrb[94].mxu1  ;;  %6003 = vtanh.f32 %v5261_v29 }
 0x1f0   : > { %v5980_v31 = vpop.eup %5979  ;;  %4073 = vst.msk [vmem:[%s6724_s21 + $0x35c] sm:$0xf] %vm3857_vm1, %v4990_v24  ;;  %v4988_v32 = vpack.c.bf16 %v5978_v27, %v5978_v27  ;;  %v1925_v33 = vpop.f32.mrb[95].mxu0  ;;  %6005 = vtanh.f32 %v5389_v30 }
 0x1f1   : > { %v2437_v34 = vpop.f32.mrb[95].mxu1  ;;  %v5982_v35 = vpop.eup %5981  ;;  %3943 = vst.msk [vmem:[%s6724_s21 + $0x154] sm:$0xf] %vm3857_vm1, %v4860_v28  ;;  %v4865_v36 = vpack.c.bf16 %v5980_v31, %v5980_v31  ;;  %6007 = vtanh.f32 %v1925_v33 }
 0x1f2   : > { %v5984_v37 = vpop.eup %5983  ;;  %4071 = vst.msk [vmem:[%s6724_s21 + $0x354] sm:$0xf] %vm3857_vm1, %v4988_v32  ;;  %v4993_v38 = vpack.c.bf16 %v5982_v35, %v5982_v35  ;;  %6009 = vtanh.f32 %v2437_v34  ;;  %v5264_v45 = vpop.f32.mrb[96].mxu0 }
 0x1f3   : > { %v5986_v39 = vpop.eup %5985  ;;  %3948 = vst.msk [vmem:[%s6724_s21 + $0x168] sm:$0xf] %vm3857_vm1, %v4865_v36  ;;  %v4863_v40 = vpack.c.bf16 %v5984_v37, %v5984_v37  ;;  %v5392_v46 = vpop.f32.mrb[96].mxu1  ;;  %6011 = vtanh.f32 %v5264_v45 }
 0x1f4   : > { %v5988_v41 = vpop.eup %5987  ;;  %4076 = vst.msk [vmem:[%s6724_s21 + $0x368] sm:$0xf] %vm3857_vm1, %v4993_v38  ;;  %v4991_v42 = vpack.c.bf16 %v5986_v39, %v5986_v39  ;;  %v1938_v49 = vpop.f32.mrb[97].mxu0  ;;  %6013 = vtanh.f32 %v5392_v46 }
 0x1f5   : > { %v5990_v43 = vpop.eup %5989  ;;  %3946 = vst.msk [vmem:[%s6724_s21 + $0x160] sm:$0xf] %vm3857_vm1, %v4863_v40  ;;  %v4866_v44 = vpack.c.bf16 %v5988_v41, %v5988_v41  ;;  %v2450_v50 = vpop.f32.mrb[97].mxu1  ;;  %6015 = vtanh.f32 %v1938_v49 }
 0x1f6   : > { %v5992_v47 = vpop.eup %5991  ;;  %4074 = vst.msk [vmem:[%s6724_s21 + $0x360] sm:$0xf] %vm3857_vm1, %v4991_v42  ;;  %v4994_v48 = vpack.c.bf16 %v5990_v43, %v5990_v43  ;;  %v5265_v53 = vpop.f32.mrb[98].mxu0  ;;  %6017 = vtanh.f32 %v2450_v50 }
 0x1f7   : > { %v5994_v51 = vpop.eup %5993  ;;  %3949 = vst.msk [vmem:[%s6724_s21 + $0x16c] sm:$0xf] %vm3857_vm1, %v4866_v44  ;;  %v4864_v52 = vpack.c.bf16 %v5992_v47, %v5992_v47  ;;  %v5393_v54 = vpop.f32.mrb[98].mxu1  ;;  %6019 = vtanh.f32 %v5265_v53 }
 0x1f8   : > { %v5996_v55 = vpop.eup %5995  ;;  %4077 = vst.msk [vmem:[%s6724_s21 + $0x36c] sm:$0xf] %vm3857_vm1, %v4994_v48  ;;  %v4992_v56 = vpack.c.bf16 %v5994_v51, %v5994_v51  ;;  %v1941_v57 = vpop.f32.mrb[99].mxu0  ;;  %6021 = vtanh.f32 %v5393_v54 }
 0x1f9   : > { %v2453_v58 = vpop.f32.mrb[99].mxu1  ;;  %v5998_v59 = vpop.eup %5997  ;;  %3947 = vst.msk [vmem:[%s6724_s21 + $0x164] sm:$0xf] %vm3857_vm1, %v4864_v52  ;;  %v4869_v60 = vpack.c.bf16 %v5996_v55, %v5996_v55  ;;  %6023 = vtanh.f32 %v1941_v57 }
 0x1fa   : > { %v6000_v61 = vpop.eup %5999  ;;  %4075 = vst.msk [vmem:[%s6724_s21 + $0x364] sm:$0xf] %vm3857_vm1, %v4992_v56  ;;  %v4997_v62 = vpack.c.bf16 %v5998_v59, %v5998_v59  ;;  %6025 = vtanh.f32 %v2453_v58  ;;  %v5268_v5 = vpop.f32.mrb[100].mxu0 }
 0x1fb   : > { %v6002_v63 = vpop.eup %6001  ;;  %3952 = vst.msk [vmem:[%s6724_s21 + $0x178] sm:$0xf] %vm3857_vm1, %v4869_v60  ;;  %v4867_v0 = vpack.c.bf16 %v6000_v61, %v6000_v61  ;;  %v5396_v6 = vpop.f32.mrb[100].mxu1  ;;  %6027 = vtanh.f32 %v5268_v5 }
 0x1fc   : > { %v6004_v1 = vpop.eup %6003  ;;  %4080 = vst.msk [vmem:[%s6724_s21 + $0x378] sm:$0xf] %vm3857_vm1, %v4997_v62  ;;  %v4995_v2 = vpack.c.bf16 %v6002_v63, %v6002_v63  ;;  %v1954_v9 = vpop.f32.mrb[101].mxu0  ;;  %6029 = vtanh.f32 %v5396_v6 }
 0x1fd   : > { %v6006_v3 = vpop.eup %6005  ;;  %3950 = vst.msk [vmem:[%s6724_s21 + $0x170] sm:$0xf] %vm3857_vm1, %v4867_v0  ;;  %v4870_v4 = vpack.c.bf16 %v6004_v1, %v6004_v1  ;;  %v2466_v10 = vpop.f32.mrb[101].mxu1  ;;  %6031 = vtanh.f32 %v1954_v9 }
 0x1fe   : > { %v6008_v7 = vpop.eup %6007  ;;  %4078 = vst.msk [vmem:[%s6724_s21 + $0x370] sm:$0xf] %vm3857_vm1, %v4995_v2  ;;  %v4998_v8 = vpack.c.bf16 %v6006_v3, %v6006_v3  ;;  %v5269_v13 = vpop.f32.mrb[102].mxu0  ;;  %6033 = vtanh.f32 %v2466_v10 }
 0x1ff   : > { %v6010_v11 = vpop.eup %6009  ;;  %3953 = vst.msk [vmem:[%s6724_s21 + $0x17c] sm:$0xf] %vm3857_vm1, %v4870_v4  ;;  %v4868_v12 = vpack.c.bf16 %v6008_v7, %v6008_v7  ;;  %v5397_v14 = vpop.f32.mrb[102].mxu1  ;;  %6035 = vtanh.f32 %v5269_v13 }
 0x200   : > { %v6012_v15 = vpop.eup %6011  ;;  %4081 = vst.msk [vmem:[%s6724_s21 + $0x37c] sm:$0xf] %vm3857_vm1, %v4998_v8  ;;  %v4996_v16 = vpack.c.bf16 %v6010_v11, %v6010_v11  ;;  %v1957_v17 = vpop.f32.mrb[103].mxu0  ;;  %6037 = vtanh.f32 %v5397_v14 }
 0x201   : > { %v2469_v18 = vpop.f32.mrb[103].mxu1  ;;  %v6014_v19 = vpop.eup %6013  ;;  %3951 = vst.msk [vmem:[%s6724_s21 + $0x174] sm:$0xf] %vm3857_vm1, %v4868_v12  ;;  %v4873_v20 = vpack.c.bf16 %v6012_v15, %v6012_v15  ;;  %6039 = vtanh.f32 %v1957_v17 }
 0x202   : > { %v6016_v21 = vpop.eup %6015  ;;  %4079 = vst.msk [vmem:[%s6724_s21 + $0x374] sm:$0xf] %vm3857_vm1, %v4996_v16  ;;  %v5001_v22 = vpack.c.bf16 %v6014_v19, %v6014_v19  ;;  %6041 = vtanh.f32 %v2469_v18  ;;  %v5272_v29 = vpop.f32.mrb[104].mxu0 }
 0x203   : > { %v6018_v23 = vpop.eup %6017  ;;  %3956 = vst.msk [vmem:[%s6724_s21 + $0x188] sm:$0xf] %vm3857_vm1, %v4873_v20  ;;  %v4871_v24 = vpack.c.bf16 %v6016_v21, %v6016_v21  ;;  %v5400_v30 = vpop.f32.mrb[104].mxu1  ;;  %6043 = vtanh.f32 %v5272_v29 }
 0x204   : > { %v6020_v25 = vpop.eup %6019  ;;  %4084 = vst.msk [vmem:[%s6724_s21 + $0x388] sm:$0xf] %vm3857_vm1, %v5001_v22  ;;  %v4999_v26 = vpack.c.bf16 %v6018_v23, %v6018_v23  ;;  %v1970_v33 = vpop.f32.mrb[105].mxu0  ;;  %6045 = vtanh.f32 %v5400_v30 }
 0x205   : > { %v6022_v27 = vpop.eup %6021  ;;  %3954 = vst.msk [vmem:[%s6724_s21 + $0x180] sm:$0xf] %vm3857_vm1, %v4871_v24  ;;  %v4874_v28 = vpack.c.bf16 %v6020_v25, %v6020_v25  ;;  %v2482_v34 = vpop.f32.mrb[105].mxu1  ;;  %6047 = vtanh.f32 %v1970_v33 }
 0x206   : > { %v6024_v31 = vpop.eup %6023  ;;  %4082 = vst.msk [vmem:[%s6724_s21 + $0x380] sm:$0xf] %vm3857_vm1, %v4999_v26  ;;  %v5002_v32 = vpack.c.bf16 %v6022_v27, %v6022_v27  ;;  %v5273_v37 = vpop.f32.mrb[106].mxu0  ;;  %6049 = vtanh.f32 %v2482_v34 }
 0x207   : > { %v6026_v35 = vpop.eup %6025  ;;  %3957 = vst.msk [vmem:[%s6724_s21 + $0x18c] sm:$0xf] %vm3857_vm1, %v4874_v28  ;;  %v4872_v36 = vpack.c.bf16 %v6024_v31, %v6024_v31  ;;  %v5401_v38 = vpop.f32.mrb[106].mxu1  ;;  %6051 = vtanh.f32 %v5273_v37 }
 0x208   : > { %v6028_v39 = vpop.eup %6027  ;;  %4085 = vst.msk [vmem:[%s6724_s21 + $0x38c] sm:$0xf] %vm3857_vm1, %v5002_v32  ;;  %v5000_v40 = vpack.c.bf16 %v6026_v35, %v6026_v35  ;;  %v1973_v41 = vpop.f32.mrb[107].mxu0  ;;  %6053 = vtanh.f32 %v5401_v38 }
 0x209   : > { %v2485_v42 = vpop.f32.mrb[107].mxu1  ;;  %v6030_v43 = vpop.eup %6029  ;;  %3955 = vst.msk [vmem:[%s6724_s21 + $0x184] sm:$0xf] %vm3857_vm1, %v4872_v36  ;;  %v4877_v44 = vpack.c.bf16 %v6028_v39, %v6028_v39  ;;  %6055 = vtanh.f32 %v1973_v41 }
 0x20a   : > { %v6032_v45 = vpop.eup %6031  ;;  %4083 = vst.msk [vmem:[%s6724_s21 + $0x384] sm:$0xf] %vm3857_vm1, %v5000_v40  ;;  %v5005_v46 = vpack.c.bf16 %v6030_v43, %v6030_v43  ;;  %6057 = vtanh.f32 %v2485_v42  ;;  %v5276_v53 = vpop.f32.mrb[108].mxu0 }
 0x20b   : > { %v6034_v47 = vpop.eup %6033  ;;  %3960 = vst.msk [vmem:[%s6724_s21 + $0x198] sm:$0xf] %vm3857_vm1, %v4877_v44  ;;  %v4875_v48 = vpack.c.bf16 %v6032_v45, %v6032_v45  ;;  %v5404_v54 = vpop.f32.mrb[108].mxu1  ;;  %6059 = vtanh.f32 %v5276_v53 }
 0x20c   : > { %v6036_v49 = vpop.eup %6035  ;;  %4088 = vst.msk [vmem:[%s6724_s21 + $0x398] sm:$0xf] %vm3857_vm1, %v5005_v46  ;;  %v5003_v50 = vpack.c.bf16 %v6034_v47, %v6034_v47  ;;  %v1986_v57 = vpop.f32.mrb[109].mxu0  ;;  %6061 = vtanh.f32 %v5404_v54 }
 0x20d   : > { %v6038_v51 = vpop.eup %6037  ;;  %3958 = vst.msk [vmem:[%s6724_s21 + $0x190] sm:$0xf] %vm3857_vm1, %v4875_v48  ;;  %v4878_v52 = vpack.c.bf16 %v6036_v49, %v6036_v49  ;;  %v2498_v58 = vpop.f32.mrb[109].mxu1  ;;  %6063 = vtanh.f32 %v1986_v57 }
 0x20e   : > { %v6040_v55 = vpop.eup %6039  ;;  %4086 = vst.msk [vmem:[%s6724_s21 + $0x390] sm:$0xf] %vm3857_vm1, %v5003_v50  ;;  %v5006_v56 = vpack.c.bf16 %v6038_v51, %v6038_v51  ;;  %v5277_v61 = vpop.f32.mrb[110].mxu0  ;;  %6065 = vtanh.f32 %v2498_v58 }
 0x20f   : > { %v6042_v59 = vpop.eup %6041  ;;  %3961 = vst.msk [vmem:[%s6724_s21 + $0x19c] sm:$0xf] %vm3857_vm1, %v4878_v52  ;;  %v4876_v60 = vpack.c.bf16 %v6040_v55, %v6040_v55  ;;  %v5405_v62 = vpop.f32.mrb[110].mxu1  ;;  %6067 = vtanh.f32 %v5277_v61 }
 0x210   : > { %v6044_v63 = vpop.eup %6043  ;;  %4089 = vst.msk [vmem:[%s6724_s21 + $0x39c] sm:$0xf] %vm3857_vm1, %v5006_v56  ;;  %v5004_v0 = vpack.c.bf16 %v6042_v59, %v6042_v59  ;;  %v1989_v1 = vpop.f32.mrb[111].mxu0  ;;  %6069 = vtanh.f32 %v5405_v62 }
 0x211   : > { %v2501_v2 = vpop.f32.mrb[111].mxu1  ;;  %v6046_v3 = vpop.eup %6045  ;;  %3959 = vst.msk [vmem:[%s6724_s21 + $0x194] sm:$0xf] %vm3857_vm1, %v4876_v60  ;;  %v4881_v4 = vpack.c.bf16 %v6044_v63, %v6044_v63  ;;  %6071 = vtanh.f32 %v1989_v1 }
 0x212   : > { %v6048_v5 = vpop.eup %6047  ;;  %4087 = vst.msk [vmem:[%s6724_s21 + $0x394] sm:$0xf] %vm3857_vm1, %v5004_v0  ;;  %v5009_v6 = vpack.c.bf16 %v6046_v3, %v6046_v3  ;;  %6073 = vtanh.f32 %v2501_v2  ;;  %v5280_v13 = vpop.f32.mrb[112].mxu0 }
 0x213   : > { %v6050_v7 = vpop.eup %6049  ;;  %3964 = vst.msk [vmem:[%s6724_s21 + $0x1a8] sm:$0xf] %vm3857_vm1, %v4881_v4  ;;  %v4879_v8 = vpack.c.bf16 %v6048_v5, %v6048_v5  ;;  %v5408_v14 = vpop.f32.mrb[112].mxu1  ;;  %6075 = vtanh.f32 %v5280_v13 }
 0x214   : > { %v6052_v9 = vpop.eup %6051  ;;  %4092 = vst.msk [vmem:[%s6724_s21 + $0x3a8] sm:$0xf] %vm3857_vm1, %v5009_v6  ;;  %v5007_v10 = vpack.c.bf16 %v6050_v7, %v6050_v7  ;;  %v2002_v17 = vpop.f32.mrb[113].mxu0  ;;  %6077 = vtanh.f32 %v5408_v14 }
 0x215   : > { %v6054_v11 = vpop.eup %6053  ;;  %3962 = vst.msk [vmem:[%s6724_s21 + $0x1a0] sm:$0xf] %vm3857_vm1, %v4879_v8  ;;  %v4882_v12 = vpack.c.bf16 %v6052_v9, %v6052_v9  ;;  %v2514_v18 = vpop.f32.mrb[113].mxu1  ;;  %6079 = vtanh.f32 %v2002_v17 }
 0x216   : > { %v6056_v15 = vpop.eup %6055  ;;  %4090 = vst.msk [vmem:[%s6724_s21 + $0x3a0] sm:$0xf] %vm3857_vm1, %v5007_v10  ;;  %v5010_v16 = vpack.c.bf16 %v6054_v11, %v6054_v11  ;;  %v5281_v21 = vpop.f32.mrb[114].mxu0  ;;  %6081 = vtanh.f32 %v2514_v18 }
 0x217   : > { %v6058_v19 = vpop.eup %6057  ;;  %3965 = vst.msk [vmem:[%s6724_s21 + $0x1ac] sm:$0xf] %vm3857_vm1, %v4882_v12  ;;  %v4880_v20 = vpack.c.bf16 %v6056_v15, %v6056_v15  ;;  %v5409_v22 = vpop.f32.mrb[114].mxu1  ;;  %6083 = vtanh.f32 %v5281_v21 }
 0x218   : > { %v6060_v23 = vpop.eup %6059  ;;  %4093 = vst.msk [vmem:[%s6724_s21 + $0x3ac] sm:$0xf] %vm3857_vm1, %v5010_v16  ;;  %v5008_v24 = vpack.c.bf16 %v6058_v19, %v6058_v19  ;;  %v2005_v25 = vpop.f32.mrb[115].mxu0  ;;  %6085 = vtanh.f32 %v5409_v22 }
 0x219   : > { %v2517_v26 = vpop.f32.mrb[115].mxu1  ;;  %v6062_v27 = vpop.eup %6061  ;;  %3963 = vst.msk [vmem:[%s6724_s21 + $0x1a4] sm:$0xf] %vm3857_vm1, %v4880_v20  ;;  %v4885_v28 = vpack.c.bf16 %v6060_v23, %v6060_v23  ;;  %6087 = vtanh.f32 %v2005_v25 }
 0x21a   : > { %v6064_v29 = vpop.eup %6063  ;;  %4091 = vst.msk [vmem:[%s6724_s21 + $0x3a4] sm:$0xf] %vm3857_vm1, %v5008_v24  ;;  %v5013_v30 = vpack.c.bf16 %v6062_v27, %v6062_v27  ;;  %6089 = vtanh.f32 %v2517_v26  ;;  %v5284_v37 = vpop.f32.mrb[116].mxu0 }
 0x21b   : > { %v6066_v31 = vpop.eup %6065  ;;  %3968 = vst.msk [vmem:[%s6724_s21 + $0x1b8] sm:$0xf] %vm3857_vm1, %v4885_v28  ;;  %v4883_v32 = vpack.c.bf16 %v6064_v29, %v6064_v29  ;;  %v5412_v38 = vpop.f32.mrb[116].mxu1  ;;  %6091 = vtanh.f32 %v5284_v37 }
 0x21c   : > { %v6068_v33 = vpop.eup %6067  ;;  %4096 = vst.msk [vmem:[%s6724_s21 + $0x3b8] sm:$0xf] %vm3857_vm1, %v5013_v30  ;;  %v5011_v34 = vpack.c.bf16 %v6066_v31, %v6066_v31  ;;  %v2018_v41 = vpop.f32.mrb[117].mxu0  ;;  %6093 = vtanh.f32 %v5412_v38 }
 0x21d   : > { %v6070_v35 = vpop.eup %6069  ;;  %3966 = vst.msk [vmem:[%s6724_s21 + $0x1b0] sm:$0xf] %vm3857_vm1, %v4883_v32  ;;  %v4886_v36 = vpack.c.bf16 %v6068_v33, %v6068_v33  ;;  %v2530_v42 = vpop.f32.mrb[117].mxu1  ;;  %6095 = vtanh.f32 %v2018_v41 }
 0x21e   : > { %v6072_v39 = vpop.eup %6071  ;;  %4094 = vst.msk [vmem:[%s6724_s21 + $0x3b0] sm:$0xf] %vm3857_vm1, %v5011_v34  ;;  %v5014_v40 = vpack.c.bf16 %v6070_v35, %v6070_v35  ;;  %v5285_v45 = vpop.f32.mrb[118].mxu0  ;;  %6097 = vtanh.f32 %v2530_v42 }
 0x21f   : > { %v6074_v43 = vpop.eup %6073  ;;  %3969 = vst.msk [vmem:[%s6724_s21 + $0x1bc] sm:$0xf] %vm3857_vm1, %v4886_v36  ;;  %v4884_v44 = vpack.c.bf16 %v6072_v39, %v6072_v39  ;;  %v5413_v46 = vpop.f32.mrb[118].mxu1  ;;  %6099 = vtanh.f32 %v5285_v45 }
 0x220   : > { %v6076_v47 = vpop.eup %6075  ;;  %4097 = vst.msk [vmem:[%s6724_s21 + $0x3bc] sm:$0xf] %vm3857_vm1, %v5014_v40  ;;  %v5012_v48 = vpack.c.bf16 %v6074_v43, %v6074_v43  ;;  %v2021_v49 = vpop.f32.mrb[119].mxu0  ;;  %6101 = vtanh.f32 %v5413_v46 }
 0x221   : > { %v2533_v50 = vpop.f32.mrb[119].mxu1  ;;  %v6078_v51 = vpop.eup %6077  ;;  %3967 = vst.msk [vmem:[%s6724_s21 + $0x1b4] sm:$0xf] %vm3857_vm1, %v4884_v44  ;;  %v4889_v52 = vpack.c.bf16 %v6076_v47, %v6076_v47  ;;  %6103 = vtanh.f32 %v2021_v49 }
 0x222   : > { %v6080_v53 = vpop.eup %6079  ;;  %4095 = vst.msk [vmem:[%s6724_s21 + $0x3b4] sm:$0xf] %vm3857_vm1, %v5012_v48  ;;  %v5017_v54 = vpack.c.bf16 %v6078_v51, %v6078_v51  ;;  %6105 = vtanh.f32 %v2533_v50  ;;  %v5288_v61 = vpop.f32.mrb[120].mxu0 }
 0x223   : > { %v6082_v55 = vpop.eup %6081  ;;  %3972 = vst.msk [vmem:[%s6724_s21 + $0x1c8] sm:$0xf] %vm3857_vm1, %v4889_v52  ;;  %v4887_v56 = vpack.c.bf16 %v6080_v53, %v6080_v53  ;;  %v5416_v62 = vpop.f32.mrb[120].mxu1  ;;  %6107 = vtanh.f32 %v5288_v61 }
 0x224   : > { %v6084_v57 = vpop.eup %6083  ;;  %4100 = vst.msk [vmem:[%s6724_s21 + $0x3c8] sm:$0xf] %vm3857_vm1, %v5017_v54  ;;  %v5015_v58 = vpack.c.bf16 %v6082_v55, %v6082_v55  ;;  %v2034_v1 = vpop.f32.mrb[121].mxu0  ;;  %6109 = vtanh.f32 %v5416_v62 }
 0x225   : > { %v6086_v59 = vpop.eup %6085  ;;  %3970 = vst.msk [vmem:[%s6724_s21 + $0x1c0] sm:$0xf] %vm3857_vm1, %v4887_v56  ;;  %v4890_v60 = vpack.c.bf16 %v6084_v57, %v6084_v57  ;;  %v2546_v2 = vpop.f32.mrb[121].mxu1  ;;  %6111 = vtanh.f32 %v2034_v1 }
 0x226   : > { %v6088_v63 = vpop.eup %6087  ;;  %4098 = vst.msk [vmem:[%s6724_s21 + $0x3c0] sm:$0xf] %vm3857_vm1, %v5015_v58  ;;  %v5018_v0 = vpack.c.bf16 %v6086_v59, %v6086_v59  ;;  %v5289_v5 = vpop.f32.mrb[122].mxu0  ;;  %6113 = vtanh.f32 %v2546_v2 }
 0x227   : > { %v6090_v3 = vpop.eup %6089  ;;  %3973 = vst.msk [vmem:[%s6724_s21 + $0x1cc] sm:$0xf] %vm3857_vm1, %v4890_v60  ;;  %v4888_v4 = vpack.c.bf16 %v6088_v63, %v6088_v63  ;;  %v5417_v6 = vpop.f32.mrb[122].mxu1  ;;  %6115 = vtanh.f32 %v5289_v5 }
 0x228   : > { %v6092_v7 = vpop.eup %6091  ;;  %4101 = vst.msk [vmem:[%s6724_s21 + $0x3cc] sm:$0xf] %vm3857_vm1, %v5018_v0  ;;  %v5016_v8 = vpack.c.bf16 %v6090_v3, %v6090_v3  ;;  %v2037_v9 = vpop.f32.mrb[123].mxu0  ;;  %6117 = vtanh.f32 %v5417_v6 }
 0x229   : > { %v2549_v10 = vpop.f32.mrb[123].mxu1  ;;  %v6094_v11 = vpop.eup %6093  ;;  %3971 = vst.msk [vmem:[%s6724_s21 + $0x1c4] sm:$0xf] %vm3857_vm1, %v4888_v4  ;;  %v4893_v12 = vpack.c.bf16 %v6092_v7, %v6092_v7  ;;  %6119 = vtanh.f32 %v2037_v9 }
 0x22a   : > { %v6096_v13 = vpop.eup %6095  ;;  %4099 = vst.msk [vmem:[%s6724_s21 + $0x3c4] sm:$0xf] %vm3857_vm1, %v5016_v8  ;;  %v5021_v14 = vpack.c.bf16 %v6094_v11, %v6094_v11  ;;  %6121 = vtanh.f32 %v2549_v10  ;;  %v5292_v21 = vpop.f32.mrb[124].mxu0 }
 0x22b   : > { %v6098_v15 = vpop.eup %6097  ;;  %3976 = vst.msk [vmem:[%s6724_s21 + $0x1d8] sm:$0xf] %vm3857_vm1, %v4893_v12  ;;  %v4891_v16 = vpack.c.bf16 %v6096_v13, %v6096_v13  ;;  %v5420_v22 = vpop.f32.mrb[124].mxu1  ;;  %6123 = vtanh.f32 %v5292_v21 }
 0x22c   : > { %v6100_v17 = vpop.eup %6099  ;;  %4104 = vst.msk [vmem:[%s6724_s21 + $0x3d8] sm:$0xf] %vm3857_vm1, %v5021_v14  ;;  %v5019_v18 = vpack.c.bf16 %v6098_v15, %v6098_v15  ;;  %v2050_v25 = vpop.f32.mrb[125].mxu0  ;;  %6125 = vtanh.f32 %v5420_v22 }
 0x22d   : > { %v6102_v19 = vpop.eup %6101  ;;  %3974 = vst.msk [vmem:[%s6724_s21 + $0x1d0] sm:$0xf] %vm3857_vm1, %v4891_v16  ;;  %v4894_v20 = vpack.c.bf16 %v6100_v17, %v6100_v17  ;;  %v2562_v26 = vpop.f32.mrb[125].mxu1  ;;  %6127 = vtanh.f32 %v2050_v25 }
 0x22e   : > { %v6104_v23 = vpop.eup %6103  ;;  %4102 = vst.msk [vmem:[%s6724_s21 + $0x3d0] sm:$0xf] %vm3857_vm1, %v5019_v18  ;;  %v5022_v24 = vpack.c.bf16 %v6102_v19, %v6102_v19  ;;  %v5293_v29 = vpop.f32.mrb[126].mxu0  ;;  %6129 = vtanh.f32 %v2562_v26 }
 0x22f   : > { %v6106_v27 = vpop.eup %6105  ;;  %3977 = vst.msk [vmem:[%s6724_s21 + $0x1dc] sm:$0xf] %vm3857_vm1, %v4894_v20  ;;  %v4892_v28 = vpack.c.bf16 %v6104_v23, %v6104_v23  ;;  %v5421_v30 = vpop.f32.mrb[126].mxu1  ;;  %6131 = vtanh.f32 %v5293_v29 }
 0x230   : > { %v6108_v31 = vpop.eup %6107  ;;  %4105 = vst.msk [vmem:[%s6724_s21 + $0x3dc] sm:$0xf] %vm3857_vm1, %v5022_v24  ;;  %v5020_v32 = vpack.c.bf16 %v6106_v27, %v6106_v27  ;;  %v2053_v33 = vpop.f32.mrb[127].mxu0  ;;  %6133 = vtanh.f32 %v5421_v30 }
 0x231   : > { %v2565_v34 = vpop.f32.mrb[127].mxu1  ;;  %v6110_v35 = vpop.eup %6109  ;;  %3975 = vst.msk [vmem:[%s6724_s21 + $0x1d4] sm:$0xf] %vm3857_vm1, %v4892_v28  ;;  %v4897_v36 = vpack.c.bf16 %v6108_v31, %v6108_v31  ;;  %6135 = vtanh.f32 %v2053_v33 }
 0x232   : > { %v6112_v37 = vpop.eup %6111  ;;  %4103 = vst.msk [vmem:[%s6724_s21 + $0x3d4] sm:$0xf] %vm3857_vm1, %v5020_v32  ;;  %v5025_v38 = vpack.c.bf16 %v6110_v35, %v6110_v35  ;;  %6137 = vtanh.f32 %v2565_v34 }
 0x233   : > { %v6114_v39 = vpop.eup %6113  ;;  %3980 = vst.msk [vmem:[%s6724_s21 + $0x1e8] sm:$0xf] %vm3857_vm1, %v4897_v36  ;;  %v4895_v40 = vpack.c.bf16 %v6112_v37, %v6112_v37 }
 0x234   : > { %v6116_v41 = vpop.eup %6115  ;;  %4108 = vst.msk [vmem:[%s6724_s21 + $0x3e8] sm:$0xf] %vm3857_vm1, %v5025_v38  ;;  %v5023_v42 = vpack.c.bf16 %v6114_v39, %v6114_v39 }
 0x235   : > { %v6118_v43 = vpop.eup %6117  ;;  %3978 = vst.msk [vmem:[%s6724_s21 + $0x1e0] sm:$0xf] %vm3857_vm1, %v4895_v40  ;;  %v4898_v44 = vpack.c.bf16 %v6116_v41, %v6116_v41 }
 0x236   : > { %v6120_v45 = vpop.eup %6119  ;;  %4106 = vst.msk [vmem:[%s6724_s21 + $0x3e0] sm:$0xf] %vm3857_vm1, %v5023_v42  ;;  %v5026_v46 = vpack.c.bf16 %v6118_v43, %v6118_v43 }
 0x237   : > { %v6122_v47 = vpop.eup %6121  ;;  %3981 = vst.msk [vmem:[%s6724_s21 + $0x1ec] sm:$0xf] %vm3857_vm1, %v4898_v44  ;;  %v4896_v48 = vpack.c.bf16 %v6120_v45, %v6120_v45 }
 0x238   : > { %v6124_v49 = vpop.eup %6123  ;;  %4109 = vst.msk [vmem:[%s6724_s21 + $0x3ec] sm:$0xf] %vm3857_vm1, %v5026_v46  ;;  %v5024_v50 = vpack.c.bf16 %v6122_v47, %v6122_v47 }
 0x239   : > { %v6126_v51 = vpop.eup %6125  ;;  %3979 = vst.msk [vmem:[%s6724_s21 + $0x1e4] sm:$0xf] %vm3857_vm1, %v4896_v48  ;;  %v4901_v52 = vpack.c.bf16 %v6124_v49, %v6124_v49 }
 0x23a   : > { %v6128_v53 = vpop.eup %6127  ;;  %4107 = vst.msk [vmem:[%s6724_s21 + $0x3e4] sm:$0xf] %vm3857_vm1, %v5024_v50  ;;  %v5029_v54 = vpack.c.bf16 %v6126_v51, %v6126_v51 }
 0x23b   : > { %v6130_v55 = vpop.eup %6129  ;;  %3984 = vst.msk [vmem:[%s6724_s21 + $0x1f8] sm:$0xf] %vm3857_vm1, %v4901_v52  ;;  %v4899_v56 = vpack.c.bf16 %v6128_v53, %v6128_v53 }
 0x23c   : > { %v6132_v57 = vpop.eup %6131  ;;  %4112 = vst.msk [vmem:[%s6724_s21 + $0x3f8] sm:$0xf] %vm3857_vm1, %v5029_v54  ;;  %v5027_v58 = vpack.c.bf16 %v6130_v55, %v6130_v55 }
 0x23d   : > { %v6134_v59 = vpop.eup %6133  ;;  %3982 = vst.msk [vmem:[%s6724_s21 + $0x1f0] sm:$0xf] %vm3857_vm1, %v4899_v56  ;;  %v4902_v60 = vpack.c.bf16 %v6132_v57, %v6132_v57 }
 0x23e   : > { %v6136_v61 = vpop.eup %6135  ;;  %4110 = vst.msk [vmem:[%s6724_s21 + $0x3f0] sm:$0xf] %vm3857_vm1, %v5027_v58  ;;  %v5030_v62 = vpack.c.bf16 %v6134_v59, %v6134_v59 }
 0x23f   : > { %v6138_v63 = vpop.eup %6137  ;;  %3985 = vst.msk [vmem:[%s6724_s21 + $0x1fc] sm:$0xf] %vm3857_vm1, %v4902_v60  ;;  %v4900_v0 = vpack.c.bf16 %v6136_v61, %v6136_v61 }
 0x240   : > { %4113 = vst.msk [vmem:[%s6724_s21 + $0x3fc] sm:$0xf] %vm3857_vm1, %v5030_v62  ;;  %v5028_v1 = vpack.c.bf16 %v6138_v63, %v6138_v63 }
 0x241   : > { %3983 = vst.msk [vmem:[%s6724_s21 + $0x1f4] sm:$0xf] %vm3857_vm1, %v4900_v0 }
 0x242   : > { %4111 = vst.msk [vmem:[%s6724_s21 + $0x3f4] sm:$0xf] %vm3857_vm1, %v5028_v1 }
 0x243   : > { %6212 = shalt.err (!%p6209_p11)
}
 0x244   : > { %s6213_s6 = scalar_lea.hbm %s7259_s12, 16384  ;;  %s6217_s28 = scalar_lea.hbm %s7317_s2, 65536 }
 0x245   : > { %p6214_p5 = scmp.ne.s32.totalorder %s7259_s12, %s6213_s6  ;;  %p6218_p3 = scmp.lt.u32.totalorder %s7259_s12, %s7317_s2 }
 0x246   : > { %p6219_p4 = scmp.lt.u32.totalorder %s6217_s28, %s6213_s6  ;;  %p6221_p13 = scmp.lt.u32.totalorder %s6213_s6, %s7259_s12 }
 0x247   : > { %p6215_p10 = pnand %p6214_p5, %p7328_p2 }
 0x248   : > { %p6220_p8 = por %p6219_p4, %p6218_p3 }
 0x249   : > { %p6216_p1 = pneg %p6215_p10 }
 0x24a   : > { %p6222_p0 = por %p6221_p13, %p6220_p8 }
 0x24c   : > { %p6223_p12 = pnand %p6222_p0, %p6216_p1 }
 0x24e   : > { %6226 = shalt.err (!%p6223_p12)
}
 0x24f   : > { %s6292_s3 = smov 64   ;;  %s6293_s21 = smov 4  }
 0x250   : > { %5430 = dma.vmem_to_hbm [thread:$0]  (%p7328_p2), %s7261_s19, 16384, %s7259_s12, %s4115_s8, %s6292_s3, %s6292_s3, %s6293_s21  }
 0x251 PF: > { %p5444_p6 = scmp.ge.s32.totalorder %s6285_s14, 2  ;;  %s4145_s15 = sand.u32 1, %s6265_s9  }
 0x252   : > { %p7329_p7 = scmp.ne.s32.totalorder %s7323_s24, 0  ;;  %s4146_s26 = scalar_lea.sflag [#allocation4], %s4145_s15 }
 0x254   : > { %p5440_p9 = pnand %p5444_p6, %p7329_p7 }
 0x256   : > { %6260 = dma.done.wait (!%p5440_p9), %s4146_s26, 16384  }
 0x257   : > { %6262 = vsyncadd (!%p5440_p9), %s4146_s26, 4294950912  ;;  %s21_s14 = sadd.s32 1, %s6285_s14   ;;  %s7330_s9 = smov %s6269_s10 }
 0x258   : > { %p18_p11 = scmp.ge.s32.totalorder %s21_s14, 6   ;;  %s7331_s10 = smov %s6273_s11 }
 0x259   : > { %s7332_s11 = smov %s6365_s23  ;;  %s7333_s12 = smov %s6281_s13 }
 0x25a   : > { %s7334_s13 = smov %s7336_s17  ;;  %20 = sbr.rel (!%p18_p11) target bundleno = 8 (0x8), region = 86 }
 0x261   :  { %4151 = vsyncpa [#allocation3], 1 }
 0x262   :  { %4153 = vsyncpa [#allocation3 + $0x1], 1 }
 0x263   :  { %4154 = vsyncpa [#allocation6], 1 }
 0x264   :  { %4156 = vsyncpa [#allocation6 + $0x1], 1 }
 0x265   :  { %4157 = vsyncpa [#allocation4], 1 }
 0x266   :  { %4159 = vsyncpa [#allocation4 + $0x1], 1 }

</bundles_post_ra>
